<compile_context>
chip_gen: v6e
topology: v6e:2x2x1
jax: 0.10.0
libtpu: 0.0.40
codegen_flags: <defaults>
</compile_context>

<pallas_src>
import jax
import jax.numpy as jnp
from jax.experimental import pallas as pl
from jax.experimental.pallas import tpu as pltpu

LANE = 128
TK = 256          # K-tile over the flattened-image contraction dimension


def _round_up(x, m):
    return (x + m - 1) // m * m


def fusion_mlp_kernel(img_ref, wimg_ref, aux_ref,
                      w1a_ref, w1bc_ref, b1_ref,
                      w2_ref, b2_ref,
                      w3_ref, b3_ref,
                      out_ref, feat_acc):
    """Grid axis 0 tiles the image contraction dim (K).

    Each step accumulates a partial backbone matmul into feat_acc (f32 VMEM
    scratch) while the next K chunk of img/Wimg is DMA'd; the fused
    fc1->ReLU->fc2->ReLU->output head runs once, on the final K step.
    """
    k = pl.program_id(0)

    @pl.when(k == 0)
    def _():
        feat_acc[...] = jnp.zeros_like(feat_acc)

    feat_acc[...] += jnp.dot(img_ref[...], wimg_ref[...],
                             preferred_element_type=jnp.float32)

    @pl.when(k == pl.num_programs(0) - 1)
    def _():
        # fc1 on the (virtual) concatenation [img_features | numeric | x_embed];
        # zero-padded aux rows/cols contribute exactly 0. Backbone bias is
        # pre-folded into b1 (no nonlinearity between backbone and fc1).
        h1 = (jnp.dot(feat_acc[...].astype(jnp.bfloat16), w1a_ref[...],
                      preferred_element_type=jnp.float32)
              + jnp.dot(aux_ref[...], w1bc_ref[...],
                        preferred_element_type=jnp.float32)
              + b1_ref[...])
        h1 = jnp.maximum(h1, 0.0)                                # ReLU

        h2 = (jnp.dot(h1.astype(jnp.bfloat16), w2_ref[...],
                      preferred_element_type=jnp.float32) + b2_ref[...])
        h2 = jnp.maximum(h2, 0.0)                                # ReLU

        # Output layer, zero-padded to 128 lanes -> unmasked dense store.
        out = (jnp.dot(h2.astype(jnp.bfloat16), w3_ref[...],
                       preferred_element_type=jnp.float32) + b3_ref[...])
        out_ref[...] = out.astype(out_ref.dtype)


def init_params(key, img_dim, num_ftrs, num_numeric, cat_embed, num_output=1):
    """Logical (float32) parameters mirroring the torch module layout."""
    embed_sizes = list(cat_embed.values())                       # [(num, size), ...]
    keys = jax.random.split(key, len(embed_sizes) + 4)
    kit = iter(keys)

    def lin(k, fan_in, fan_out):
        scale = 1.0 / jnp.sqrt(jnp.float32(fan_in))
        return jax.random.uniform(k, (fan_in, fan_out), jnp.float32, -scale, scale)

    emb_tables = [jax.random.normal(next(kit), (n, d), jnp.float32)
                  for (n, d) in embed_sizes]
    num_embed_features = sum(d for (_, d) in embed_sizes)
    d_in = num_ftrs + num_numeric + num_embed_features

    return {
        "emb_tables": emb_tables,
        # Stand-in backbone projection (flattened img -> num_ftrs).
        "Wimg": lin(next(kit), img_dim, num_ftrs),
        "bimg": jnp.zeros((1, num_ftrs), jnp.float32),
        "W1": lin(next(kit), d_in, 512),
        "b1": jnp.zeros((1, 512), jnp.float32),
        "W2": lin(next(kit), 512, 256),
        "b2": jnp.zeros((1, 256), jnp.float32),
        "W3": lin(next(kit), 256, num_output),
        "b3": jnp.zeros((1, num_output), jnp.float32),
    }


def prepare_kernel_params(params, lane=LANE, tk=TK):
    """Split / pad / fold / cast the logical params into kernel-ready tensors."""
    num_ftrs = params["Wimg"].shape[1]
    img_dim = params["Wimg"].shape[0]
    img_dim_pad = _round_up(img_dim, tk)

    W1 = params["W1"]
    aux_dim = W1.shape[0] - num_ftrs                             # numeric + embed feats
    aux_pad = _round_up(max(aux_dim, 1), lane)
    W1a = W1[:num_ftrs]
    W1bc = jnp.zeros((aux_pad, W1.shape[1]), jnp.float32).at[:aux_dim].set(W1[num_ftrs:])

    # Fold the backbone bias through fc1 (exact: no nonlinearity in between):
    #   (x@Wimg + bimg) @ W1a + b1  ==  (x@Wimg) @ W1a + (b1 + bimg @ W1a)
    b1_fold = params["b1"] + jnp.dot(params["bimg"], W1a)

    num_output = params["W3"].shape[1]
    out_pad = _round_up(max(num_output, 1), lane)
    W3p = jnp.zeros((params["W3"].shape[0], out_pad), jnp.float32)
    W3p = W3p.at[:, :num_output].set(params["W3"])
    b3p = jnp.zeros((1, out_pad), jnp.float32).at[:, :num_output].set(params["b3"])

    # Pad the image contraction dim so it tiles evenly by TK (zero rows).
    Wimg_p = jnp.zeros((img_dim_pad, num_ftrs), jnp.float32).at[:img_dim].set(params["Wimg"])

    # TODO(synk): optionally int8-quantize Wimg (per-column scales) on v5e/v6e
    # whose MXUs take int8 natively — halves the dominant weight DMA; keep bf16
    # on v7x (no int MXU path).
    return {
        "emb_tables": params["emb_tables"],
        "Wimg": Wimg_p.astype(jnp.bfloat16),
        "W1a": W1a.astype(jnp.bfloat16),
        "W1bc": W1bc.astype(jnp.bfloat16),
        "b1": b1_fold,                                           # biases stay f32
        "W2": params["W2"].astype(jnp.bfloat16),
        "b2": params["b2"],
        "W3p": W3p.astype(jnp.bfloat16),
        "b3p": b3p,
        "num_ftrs": num_ftrs,
        "img_dim": img_dim,
        "img_dim_pad": img_dim_pad,
        "aux_dim": aux_dim,
        "aux_pad": aux_pad,
        "num_output": num_output,
    }


def linear_fusion_forward(kparams, img, numeric_data, cat_data):
    """Glue: embedding lookups + flatten/pad; hot path runs in one Pallas kernel."""
    B = img.shape[0]
    img_flat = img.reshape(B, -1).astype(jnp.bfloat16)           # single cast

    # Embedding lookups (gather) in plain JAX; merge with numeric features.
    embeds = [jnp.take(tbl, cat_data[:, i], axis=0)
              for i, tbl in enumerate(kparams["emb_tables"])]
    aux = jnp.concatenate([numeric_data.astype(jnp.float32)] + embeds,
                          axis=1).astype(jnp.bfloat16)

    # Batch padded only to the bf16 sublane quantum; output lanes stay 128-wide.
    BP = _round_up(B, 16)
    img_dim_pad = kparams["img_dim_pad"]
    img_p = jnp.pad(img_flat, ((0, BP - B), (0, img_dim_pad - img_flat.shape[1])))
    aux_p = jnp.pad(aux, ((0, BP - B), (0, kparams["aux_pad"] - aux.shape[1])))

    num_ftrs = kparams["num_ftrs"]
    aux_pad = kparams["aux_pad"]
    h1_dim = kparams["W1a"].shape[1]
    h2_dim = kparams["W2"].shape[1]
    out_pad = kparams["b3p"].shape[1]
    n_k = img_dim_pad // TK

    kernel_inputs = (
        img_p, kparams["Wimg"], aux_p,
        kparams["W1a"], kparams["W1bc"], kparams["b1"],
        kparams["W2"], kparams["b2"],
        kparams["W3p"], kparams["b3p"],
    )

    nbytes_in = sum(int(x.size) * x.dtype.itemsize for x in kernel_inputs)
    nbytes_out = BP * out_pad * 4
    flops = 2 * BP * (img_dim_pad * num_ftrs + num_ftrs * h1_dim
                      + aux_pad * h1_dim + h1_dim * h2_dim + h2_dim * out_pad)

    # VMEM need: double-buffered K tiles + resident head weights/aux + scratch.
    tile_bytes = 2 * (BP * TK + TK * num_ftrs) * 2               # bf16, 2 buffers
    resident_bytes = (nbytes_in
                      - BP * img_dim_pad * 2                     # img streamed per tile
                      - img_dim_pad * num_ftrs * 2)              # Wimg streamed per tile
    scratch_bytes = BP * num_ftrs * 4 + 2 * nbytes_out
    vmem_need = tile_bytes + resident_bytes + scratch_bytes + (4 << 20)
    try:
        phys_vmem = pltpu.get_tpu_info().vmem_capacity_bytes     # 64 MiB v7x, 128 MiB v5e/v6e
    except Exception:
        phys_vmem = 64 << 20
    vmem_limit = int(max(min(vmem_need, phys_vmem - (16 << 20)), 16 << 20))

    grid_spec = pltpu.PrefetchScalarGridSpec(
        num_scalar_prefetch=0,
        grid=(n_k,),
        in_specs=[
            pl.BlockSpec((BP, TK), lambda k: (0, k)),            # img: K tile
            pl.BlockSpec((TK, num_ftrs), lambda k: (k, 0)),      # Wimg: K tile
            pl.BlockSpec((BP, aux_pad), lambda k: (0, 0)),
            pl.BlockSpec((num_ftrs, h1_dim), lambda k: (0, 0)),
            pl.BlockSpec((aux_pad, h1_dim), lambda k: (0, 0)),
            pl.BlockSpec((1, h1_dim), lambda k: (0, 0)),
            pl.BlockSpec((h1_dim, h2_dim), lambda k: (0, 0)),
            pl.BlockSpec((1, h2_dim), lambda k: (0, 0)),
            pl.BlockSpec((h2_dim, out_pad), lambda k: (0, 0)),
            pl.BlockSpec((1, out_pad), lambda k: (0, 0)),
        ],
        out_specs=pl.BlockSpec((BP, out_pad), lambda k: (0, 0)),
        scratch_shapes=[pltpu.VMEM((BP, num_ftrs), jnp.float32)],
    )

    # TODO(synk): on v7x, add an independent 'parallel' grid axis (batch, or a
    # split of num_ftrs) so both TensorCores share the weight DMA; single-core here.
    # TODO(synk): in a serving loop, keep the ~4 MB of bf16 weights VMEM-resident
    # across calls (cross-call prefetch / aliasing) instead of re-DMAing per call.
    out_p = pl.pallas_call(
        fusion_mlp_kernel,
        grid_spec=grid_spec,
        out_shape=jax.ShapeDtypeStruct((BP, out_pad), jnp.float32),
        compiler_params=pltpu.CompilerParams(
            dimension_semantics=("arbitrary",),
            vmem_limit_bytes=vmem_limit),
        cost_estimate=pl.CostEstimate(flops=int(flops), transcendentals=0,
                                      bytes_accessed=int(nbytes_in + nbytes_out)),
    )(*kernel_inputs)

    # Strip batch padding and output-lane padding.
    return out_p[:B, :kparams["num_output"]]


def _ref_forward(kparams, img, numeric_data, cat_data):
    """Pure-JAX reference mirroring the kernel's bf16-weight / f32-accumulate math."""
    f32 = jnp.float32
    B = img.shape[0]
    img_flat = img.reshape(B, -1).astype(jnp.bfloat16)
    img_feat = jnp.dot(img_flat, kparams["Wimg"][:img_flat.shape[1]],
                       preferred_element_type=f32)
    embeds = [jnp.take(t, cat_data[:, i], axis=0)
              for i, t in enumerate(kparams["emb_tables"])]
    aux = jnp.concatenate([numeric_data.astype(f32)] + embeds,
                          axis=1).astype(jnp.bfloat16)
    aux_p = jnp.pad(aux, ((0, 0), (0, kparams["aux_pad"] - aux.shape[1])))
    h1 = (jnp.dot(img_feat.astype(jnp.bfloat16), kparams["W1a"], preferred_element_type=f32)
          + jnp.dot(aux_p, kparams["W1bc"], preferred_element_type=f32)
          + kparams["b1"])
    h1 = jnp.maximum(h1, 0.0)
    h2 = jnp.maximum(jnp.dot(h1.astype(jnp.bfloat16), kparams["W2"],
                             preferred_element_type=f32) + kparams["b2"], 0.0)
    out = (jnp.dot(h2.astype(jnp.bfloat16), kparams["W3p"],
                   preferred_element_type=f32) + kparams["b3p"])
    return out[:, :kparams["num_output"]]


if __name__ == "__main__":
    key = jax.random.PRNGKey(0)
    k_img, k_num, k_cat, k_par = jax.random.split(key, 4)

    # Small shapes consistent with the module's forward.
    B, C, H, W = 2, 3, 16, 16
    num_numeric = 5
    cat_embed = {"cat_a": (10, 4), "cat_b": (7, 3)}              # (num_embeddings, dim)
    num_ftrs = 1280                                              # efficientnet_b0 feature dim
    num_output = 1

    img = jax.random.normal(k_img, (B, C, H, W), jnp.float32)
    numeric_data = jax.random.normal(k_num, (B, num_numeric), jnp.float32)
    cat_data = jnp.stack(
        [jax.random.randint(jax.random.fold_in(k_cat, i), (B,), 0, n)
         for i, (n, _) in enumerate(cat_embed.values())], axis=1).astype(jnp.int32)

    params = init_params(k_par, C * H * W, num_ftrs, num_numeric, cat_embed, num_output)
    kparams = prepare_kernel_params(params)

    out = linear_fusion_forward(kparams, img, numeric_data, cat_data)
    out = jax.block_until_ready(out)

    ref = _ref_forward(kparams, img, numeric_data, cat_data)
    assert out.shape == (B, num_output)
    assert jnp.allclose(out, ref, atol=1e-2, rtol=1e-2)

    print("KERNEL_OK")
</pallas_src>

<mosaic_0001>
module attributes {stable_mosaic.version = 11 : i64} {
  func.func @fusion_mlp_kernel(%arg0: i32, %arg1: memref<16x256xbf16, #tpu.memory_space<vmem>>, %arg2: memref<256x1280xbf16, #tpu.memory_space<vmem>>, %arg3: memref<16x128xbf16, #tpu.memory_space<vmem>>, %arg4: memref<1280x512xbf16, #tpu.memory_space<vmem>>, %arg5: memref<128x512xbf16, #tpu.memory_space<vmem>>, %arg6: memref<1x512xf32, #tpu.memory_space<vmem>>, %arg7: memref<512x256xbf16, #tpu.memory_space<vmem>>, %arg8: memref<1x256xf32, #tpu.memory_space<vmem>>, %arg9: memref<256x128xbf16, #tpu.memory_space<vmem>>, %arg10: memref<1x128xf32, #tpu.memory_space<vmem>>, %arg11: memref<16x128xf32, #tpu.memory_space<vmem>>, %arg12: memref<16x1280xf32, #tpu.memory_space<vmem>>) attributes {dimension_semantics = [#tpu.dimension_semantics<arbitrary>], iteration_bounds = array<i64: 3>, scalar_prefetch = 0 : i64, scratch_operands = 1 : i64, tpu.core_type = #tpu.core_type<tc>, window_params = [{transform_indices = @transform_0, window_bounds = array<i64: 16, 256>}, {transform_indices = @transform_1, window_bounds = array<i64: 256, 1280>}, {pipeline_mode = #tpu.pipeline_mode<synchronous>, transform_indices = @transform_2, window_bounds = array<i64: 16, 128>}, {pipeline_mode = #tpu.pipeline_mode<synchronous>, transform_indices = @transform_3, window_bounds = array<i64: 1280, 512>}, {pipeline_mode = #tpu.pipeline_mode<synchronous>, transform_indices = @transform_4, window_bounds = array<i64: 128, 512>}, {pipeline_mode = #tpu.pipeline_mode<synchronous>, transform_indices = @transform_5, window_bounds = array<i64: 1, 512>}, {pipeline_mode = #tpu.pipeline_mode<synchronous>, transform_indices = @transform_6, window_bounds = array<i64: 512, 256>}, {pipeline_mode = #tpu.pipeline_mode<synchronous>, transform_indices = @transform_7, window_bounds = array<i64: 1, 256>}, {pipeline_mode = #tpu.pipeline_mode<synchronous>, transform_indices = @transform_8, window_bounds = array<i64: 256, 128>}, {pipeline_mode = #tpu.pipeline_mode<synchronous>, transform_indices = @transform_9, window_bounds = array<i64: 1, 128>}, {pipeline_mode = #tpu.pipeline_mode<synchronous>, transform_indices = @transform_10, window_bounds = array<i64: 16, 128>}]} {
    %c0_i32 = arith.constant 0 : i32
    %0 = arith.cmpi eq, %arg0, %c0_i32 : i32
    %1 = arith.extui %0 : i1 to i32
    %c0_i32_0 = arith.constant 0 : i32
    %2 = arith.cmpi ne, %1, %c0_i32_0 : i32
    scf.if %2 {
      %cst_9 = arith.constant 0.000000e+00 : f32
      %12 = vector.broadcast %cst_9 : f32 to vector<16x1280xf32>
      %c0_10 = arith.constant 0 : index
      %c0_11 = arith.constant 0 : index
      %13 = vector.load %arg12[%c0_10, %c0_11] : memref<16x1280xf32, #tpu.memory_space<vmem>>, vector<16x1280xf32>
      tpu.vector_store %arg12[%c0_10, %c0_11], %12 {strides = array<i32>} : memref<16x1280xf32, #tpu.memory_space<vmem>>, vector<16x1280xf32>,
    } else {
    }
    %c0 = arith.constant 0 : index
    %c0_1 = arith.constant 0 : index
    %3 = vector.load %arg12[%c0, %c0_1] : memref<16x1280xf32, #tpu.memory_space<vmem>>, vector<16x1280xf32>
    %c0_2 = arith.constant 0 : index
    %c0_3 = arith.constant 0 : index
    %4 = vector.load %arg1[%c0_2, %c0_3] : memref<16x256xbf16, #tpu.memory_space<vmem>>, vector<16x256xbf16>
    %c0_4 = arith.constant 0 : index
    %c0_5 = arith.constant 0 : index
    %5 = vector.load %arg2[%c0_4, %c0_5] : memref<256x1280xbf16, #tpu.memory_space<vmem>>, vector<256x1280xbf16>
    %cst = arith.constant dense<0.000000e+00> : vector<16x1280xf32>
    %6 = tpu.matmul %4, %5, %cst {dimension_numbers = #tpu.dot_dimension_numbers<[1], [0], [0], [1], [0, 0, 1, 1], [], []>} : vector<16x256xbf16>, vector<256x1280xbf16>, vector<16x1280xf32> -> vector<16x1280xf32>
    %7 = arith.addf %3, %6 : vector<16x1280xf32>
    %c0_6 = arith.constant 0 : index
    %c0_7 = arith.constant 0 : index
    %8 = vector.load %arg12[%c0_6, %c0_7] : memref<16x1280xf32, #tpu.memory_space<vmem>>, vector<16x1280xf32>
    tpu.vector_store %arg12[%c0_6, %c0_7], %7 {strides = array<i32>} : memref<16x1280xf32, #tpu.memory_space<vmem>>, vector<16x1280xf32>,
    %c2_i32 = arith.constant 2 : i32
    %9 = arith.cmpi eq, %arg0, %c2_i32 : i32
    %10 = arith.extui %9 : i1 to i32
    %c0_i32_8 = arith.constant 0 : i32
    %11 = arith.cmpi ne, %10, %c0_i32_8 : i32
    scf.if %11 {
      %c0_9 = arith.constant 0 : index
      %c0_10 = arith.constant 0 : index
      %12 = vector.load %arg12[%c0_9, %c0_10] : memref<16x1280xf32, #tpu.memory_space<vmem>>, vector<16x1280xf32>
      %13 = arith.truncf %12 : vector<16x1280xf32> to vector<16x1280xbf16>
      %c0_11 = arith.constant 0 : index
      %c0_12 = arith.constant 0 : index
      %14 = vector.load %arg4[%c0_11, %c0_12] : memref<1280x512xbf16, #tpu.memory_space<vmem>>, vector<1280x512xbf16>
      %cst_13 = arith.constant dense<0.000000e+00> : vector<16x512xf32>
      %15 = tpu.matmul %13, %14, %cst_13 {dimension_numbers = #tpu.dot_dimension_numbers<[1], [0], [0], [1], [0, 0, 1, 1], [], []>} : vector<16x1280xbf16>, vector<1280x512xbf16>, vector<16x512xf32> -> vector<16x512xf32>
      %c0_14 = arith.constant 0 : index
      %c0_15 = arith.constant 0 : index
      %16 = vector.load %arg3[%c0_14, %c0_15] : memref<16x128xbf16, #tpu.memory_space<vmem>>, vector<16x128xbf16>
      %c0_16 = arith.constant 0 : index
      %c0_17 = arith.constant 0 : index
      %17 = vector.load %arg5[%c0_16, %c0_17] : memref<128x512xbf16, #tpu.memory_space<vmem>>, vector<128x512xbf16>
      %cst_18 = arith.constant dense<0.000000e+00> : vector<16x512xf32>
      %18 = tpu.matmul %16, %17, %cst_18 {dimension_numbers = #tpu.dot_dimension_numbers<[1], [0], [0], [1], [0, 0, 1, 1], [], []>} : vector<16x128xbf16>, vector<128x512xbf16>, vector<16x512xf32> -> vector<16x512xf32>
      %19 = arith.addf %15, %18 : vector<16x512xf32>
      %c0_19 = arith.constant 0 : index
      %c0_20 = arith.constant 0 : index
      %20 = vector.load %arg6[%c0_19, %c0_20] : memref<1x512xf32, #tpu.memory_space<vmem>>, vector<1x512xf32>
      %21 = vector.broadcast %20 : vector<1x512xf32> to vector<16x512xf32>
      %22 = arith.addf %19, %21 : vector<16x512xf32>
      %cst_21 = arith.constant 0.000000e+00 : f32
      %23 = vector.broadcast %cst_21 : f32 to vector<16x512xf32>
      %24 = arith.maximumf %22, %23 : vector<16x512xf32>
      %25 = arith.truncf %24 : vector<16x512xf32> to vector<16x512xbf16>
      %c0_22 = arith.constant 0 : index
      %c0_23 = arith.constant 0 : index
      %26 = vector.load %arg7[%c0_22, %c0_23] : memref<512x256xbf16, #tpu.memory_space<vmem>>, vector<512x256xbf16>
      %cst_24 = arith.constant dense<0.000000e+00> : vector<16x256xf32>
      %27 = tpu.matmul %25, %26, %cst_24 {dimension_numbers = #tpu.dot_dimension_numbers<[1], [0], [0], [1], [0, 0, 1, 1], [], []>} : vector<16x512xbf16>, vector<512x256xbf16>, vector<16x256xf32> -> vector<16x256xf32>
      %c0_25 = arith.constant 0 : index
      %c0_26 = arith.constant 0 : index
      %28 = vector.load %arg8[%c0_25, %c0_26] : memref<1x256xf32, #tpu.memory_space<vmem>>, vector<1x256xf32>
      %29 = vector.broadcast %28 : vector<1x256xf32> to vector<16x256xf32>
      %30 = arith.addf %27, %29 : vector<16x256xf32>
      %cst_27 = arith.constant 0.000000e+00 : f32
      %31 = vector.broadcast %cst_27 : f32 to vector<16x256xf32>
      %32 = arith.maximumf %30, %31 : vector<16x256xf32>
      %33 = arith.truncf %32 : vector<16x256xf32> to vector<16x256xbf16>
      %c0_28 = arith.constant 0 : index
      %c0_29 = arith.constant 0 : index
      %34 = vector.load %arg9[%c0_28, %c0_29] : memref<256x128xbf16, #tpu.memory_space<vmem>>, vector<256x128xbf16>
      %cst_30 = arith.constant dense<0.000000e+00> : vector<16x128xf32>
      %35 = tpu.matmul %33, %34, %cst_30 {dimension_numbers = #tpu.dot_dimension_numbers<[1], [0], [0], [1], [0, 0, 1, 1], [], []>} : vector<16x256xbf16>, vector<256x128xbf16>, vector<16x128xf32> -> vector<16x128xf32>
      %c0_31 = arith.constant 0 : index
      %c0_32 = arith.constant 0 : index
      %36 = vector.load %arg10[%c0_31, %c0_32] : memref<1x128xf32, #tpu.memory_space<vmem>>, vector<1x128xf32>
      %37 = vector.broadcast %36 : vector<1x128xf32> to vector<16x128xf32>
      %38 = arith.addf %35, %37 : vector<16x128xf32>
      %c0_33 = arith.constant 0 : index
      %c0_34 = arith.constant 0 : index
      %39 = vector.load %arg11[%c0_33, %c0_34] : memref<16x128xf32, #tpu.memory_space<vmem>>, vector<16x128xf32>
      tpu.vector_store %arg11[%c0_33, %c0_34], %38 {strides = array<i32>} : memref<16x128xf32, #tpu.memory_space<vmem>>, vector<16x128xf32>,
    } else {
    }
    return
  }
  func.func @transform_0(%arg0: i32) -> (i32, i32) {
    %c0_i32 = arith.constant 0 : i32
    %c0_i32_0 = arith.constant 0 : i32
    return %c0_i32, %arg0 : i32, i32
  }
  func.func @transform_1(%arg0: i32) -> (i32, i32) {
    %c0_i32 = arith.constant 0 : i32
    %c0_i32_0 = arith.constant 0 : i32
    return %arg0, %c0_i32 : i32, i32
  }
  func.func @transform_2(%arg0: i32) -> (i32, i32) {
    %c0_i32 = arith.constant 0 : i32
    %c0_i32_0 = arith.constant 0 : i32
    %c0_i32_1 = arith.constant 0 : i32
    return %c0_i32, %c0_i32_0 : i32, i32
  }
  func.func @transform_3(%arg0: i32) -> (i32, i32) {
    %c0_i32 = arith.constant 0 : i32
    %c0_i32_0 = arith.constant 0 : i32
    %c0_i32_1 = arith.constant 0 : i32
    return %c0_i32, %c0_i32_0 : i32, i32
  }
  func.func @transform_4(%arg0: i32) -> (i32, i32) {
    %c0_i32 = arith.constant 0 : i32
    %c0_i32_0 = arith.constant 0 : i32
    %c0_i32_1 = arith.constant 0 : i32
    return %c0_i32, %c0_i32_0 : i32, i32
  }
  func.func @transform_5(%arg0: i32) -> (i32, i32) {
    %c0_i32 = arith.constant 0 : i32
    %c0_i32_0 = arith.constant 0 : i32
    %c0_i32_1 = arith.constant 0 : i32
    return %c0_i32, %c0_i32_0 : i32, i32
  }
  func.func @transform_6(%arg0: i32) -> (i32, i32) {
    %c0_i32 = arith.constant 0 : i32
    %c0_i32_0 = arith.constant 0 : i32
    %c0_i32_1 = arith.constant 0 : i32
    return %c0_i32, %c0_i32_0 : i32, i32
  }
  func.func @transform_7(%arg0: i32) -> (i32, i32) {
    %c0_i32 = arith.constant 0 : i32
    %c0_i32_0 = arith.constant 0 : i32
    %c0_i32_1 = arith.constant 0 : i32
    return %c0_i32, %c0_i32_0 : i32, i32
  }
  func.func @transform_8(%arg0: i32) -> (i32, i32) {
    %c0_i32 = arith.constant 0 : i32
    %c0_i32_0 = arith.constant 0 : i32
    %c0_i32_1 = arith.constant 0 : i32
    return %c0_i32, %c0_i32_0 : i32, i32
  }
  func.func @transform_9(%arg0: i32) -> (i32, i32) {
    %c0_i32 = arith.constant 0 : i32
    %c0_i32_0 = arith.constant 0 : i32
    %c0_i32_1 = arith.constant 0 : i32
    return %c0_i32, %c0_i32_0 : i32, i32
  }
  func.func @transform_10(%arg0: i32) -> (i32, i32) {
    %c0_i32 = arith.constant 0 : i32
    %c0_i32_0 = arith.constant 0 : i32
    %c0_i32_1 = arith.constant 0 : i32
    return %c0_i32, %c0_i32_0 : i32, i32
  }
}

</mosaic_0001>

<bundles_post_ra>
// kernel: tpu_custom_call.1
= control target key start
LH: loop header
LB: loop body
LE: loop exit
PB: predicated region body
PF: predicated region fallthrough
CT: control target
= control target key end

     0   :  { %s7995_s0 = inlined_call_operand.hbm [shape: bf16[16,768], index: 0, kind: input, shape index: {}]   ;;  %s7996_s1 = inlined_call_operand.hbm [shape: bf16[768,1280], index: 1, kind: input, shape index: {}]   ;;  %s7997_s2 = inlined_call_operand.hbm [shape: bf16[16,128], index: 2, kind: input, shape index: {}]   ;;  %s7998_s3 = inlined_call_operand.hbm [shape: bf16[1280,512], index: 3, kind: input, shape index: {}]   ;;  %s7999_s4 = inlined_call_operand.hbm [shape: bf16[128,512], index: 4, kind: input, shape index: {}]   ;;  %s8000_s5 = inlined_call_operand.hbm [shape: f32[1,512], index: 5, kind: input, shape index: {}]   ;;  %s8001_s6 = inlined_call_operand.hbm [shape: bf16[512,256], index: 6, kind: input, shape index: {}]   ;;  %s8002_s7 = inlined_call_operand.hbm [shape: f32[1,256], index: 7, kind: input, shape index: {}]   ;;  %s8003_s8 = inlined_call_operand.hbm [shape: bf16[256,128], index: 8, kind: input, shape index: {}]   ;;  %s8004_s9 = inlined_call_operand.hbm [shape: f32[1,128], index: 9, kind: input, shape index: {}]   ;;  %s8005_s10 = inlined_call_operand.hbm [shape: f32[16,128], index: 10, kind: output, shape index: {}]  }
   0x1   :  { %8011 = sst [smem:[#allocation29_spill]] %s7995_s0 }
   0x2   :  { %8012 = sst [smem:[#allocation30_spill]] %s7997_s2 }
   0x3   :  { %8013 = sst [smem:[#allocation31_spill]] %s7998_s3 }
   0x4   :  { %8014 = sst [smem:[#allocation32_spill]] %s7999_s4 }
   0x5   :  { %8015 = sst [smem:[#allocation33_spill]] %s8000_s5 }
   0x6   :  { %8016 = sst [smem:[#allocation34_spill]] %s8001_s6 }
   0x7   :  { %15 = vsyncpa [#allocation4], 0 }
   0x8   :  { %17 = vsyncpa [#allocation4 + $0x1], 0 }
   0x9   :  { %18 = vsyncpa [#allocation7], 0 }
   0xa   :  { %20 = vsyncpa [#allocation7 + $0x1], 0 }
   0xb   :  { %21 = vsyncpa [#allocation10], 0 }
   0xc   :  { %22 = vsyncpa [#allocation13], 0 }
   0xd   :  { %23 = vsyncpa [#allocation16], 0 }
   0xe   :  { %24 = vsyncpa [#allocation19], 0 }
   0xf   :  { %25 = vsyncpa [#allocation5], 0  ;;  %s7442_s13 = smov 0   ;;  %s7444_s14 = smov 0  }
  0x10   :  { %s7446_s15 = smov 0   ;;  %s7448_s16 = smov 0  }
  0x11 LB: > { %s7363_s17 = smov [#allocation8]   ;;  %s7463_s19 = sadd.s32 4294967295, %s7361_s16   ;;  %s7361_s16 = sphi %s7448_s16, %s8049_s16   ;;  %s7357_s15 = sphi %s7446_s15, %s8048_s15   ;;  %s7353_s14 = sphi %s7444_s14, %s8047_s14   ;;  %s7349_s13 = sphi %s7442_s13, %s8046_s13  }
  0x12   : > { %s289_s18 = sshll.u32 %s7363_s17, 4  ;;  %p5328_p0 = scmp.ge.s32.totalorder %s7361_s16, 1  ;;  %s290_s18 = int_to_ptr.vmem [resolvable:$true] %s289_s18 }
  0x13   : > { %p8007_p1 = scmp.eq.s32.totalorder %s7463_s19, 0  ;;  %p277_p2 = scmp.lt.s32.totalorder %s7361_s16, 4 }
  0x14   : > { %s7364_s21 = smov [#allocation9]   ;;  %s7365_s24 = smov [#allocation12]  }
  0x15   : > { %p7469_p4 = pnand %p5328_p0, %p277_p2  ;;  %s302_s22 = sshll.u32 %s7364_s21, 4  ;;  %s7481_s22 = int_to_ptr.vmem [resolvable:$true] %s302_s22 }
  0x16   : > { %s7483_s25 = sshll.u32 %s7365_s24, 4  ;;  %s7022_s27 = scalar_lea.vmem %s290_s18, 128  ;;  %s330_s25 = int_to_ptr.vmem [resolvable:$true] %s7483_s25 }
  0x17   : > { %s8017_s20 = scalar_select %p7469_p4, 1, 0 }
  0x18   : > { %p6022_p5 = pneg %p7469_p4  ;;  %p7023_p8 = scmp.ne.s32.totalorder %s290_s18, %s7022_s27 }
  0x19   : > { %p7030_p11 = scmp.lt.s32.totalorder %s290_s18, %s290_s18  ;;  %p7031_p12 = scmp.lt.s32.totalorder %s7022_s27, %s7022_s27 }
  0x1a   : > { %p7477_p6 = pnand %p6022_p5, %p8007_p1 }
  0x1b   : > { %p7032_p13 = por %p7031_p12, %p7030_p11 }
  0x1c   : > { %p7487_p7 = pneg %p7477_p6 }
  0x1e   : > { %p7025_p9 = pnand %p7023_p8, %p7487_p7 }
  0x20   : > { %p7026_p10 = pneg %p7025_p9 }
  0x22   : > { %p7033_p0 = pnand %p7032_p13, %p7026_p10 }
  0x24   : > { %7036 = shalt.err (!%p7033_p0)
}
  0x25   : > { %s8006_s28 = smov 64   ;;  %s7367_s29 = smov 4  }
  0x26   : > { %s8020_s2 = sld [smem:[#allocation30_spill]]  ;;  %s7048_s12 = scalar_lea.vmem %s7481_s22, 40960 }
  0x27   : > { %p7049_p2 = scmp.ne.s32.totalorder %s7481_s22, %s7048_s12  ;;  %p7056_p9 = scmp.lt.s32.totalorder %s7481_s22, %s7481_s22 }
  0x28   : > { %p7057_p10 = scmp.lt.s32.totalorder %s7048_s12, %s7048_s12 }
  0x29   : > { %p7051_p5 = pnand %p7049_p2, %p7487_p7 }
  0x2a   : > { %p7058_p11 = por %p7057_p10, %p7056_p9 }
  0x2b   : > { %p7052_p8 = pneg %p7051_p5 }
  0x2c   : > { %6025 = dma.hbm_to_vmem [thread:$0]  (!%p7477_p6), %s8020_s2, 128, %s290_s18, [#allocation7], %s8006_s28, %s8006_s28, %s7367_s29  }
  0x2d   : > { %p7059_p12 = pnand %p7058_p11, %p7052_p8 }
  0x2f   : > { %7062 = shalt.err (!%p7059_p12)
}
  0x30   : > { %s7368_s17 = smov 256   ;;  %s7369_s21 = smov 16  }
  0x31   : > { %s8021_s3 = sld [smem:[#allocation31_spill]]  ;;  %s7074_s27 = scalar_lea.vmem %s330_s25, 64 }
  0x32   : > { %p7075_p13 = scmp.ne.s32.totalorder %s330_s25, %s7074_s27  ;;  %p7082_p5 = scmp.lt.s32.totalorder %s330_s25, %s330_s25 }
  0x33   : > { %p7083_p8 = scmp.lt.s32.totalorder %s7074_s27, %s7074_s27 }
  0x34   : > { %p7077_p0 = pnand %p7075_p13, %p7487_p7 }
  0x35   : > { %p7084_p9 = por %p7083_p8, %p7082_p5 }
  0x36   : > { %p7078_p2 = pneg %p7077_p0 }
  0x37   : > { %6028 = dma.hbm_to_vmem [thread:$0]  (!%p7477_p6), %s8021_s3, 40960, %s7481_s22, [#allocation10], %s7368_s17, %s7368_s17, %s7369_s21  }
  0x38   : > { %p7085_p10 = pnand %p7084_p9, %p7078_p2 }
  0x3a   : > { %7088 = shalt.err (!%p7085_p10)
}
  0x3b   : > { %s8022_s5 = sld [smem:[#allocation33_spill]]  ;;  %s7370_s12 = smov [#allocation15]  }
  0x3c   : > { %s353_s22 = sshll.u32 %s7370_s12, 4  ;;  %s7371_s18 = smov [#allocation11]   ;;  %s354_s22 = int_to_ptr.vmem [resolvable:$true] %s353_s22 }
  0x3d   : > { %s315_s24 = sshll.u32 %s7371_s18, 4  ;;  %s7100_s28 = scalar_lea.vmem %s354_s22, 32  ;;  %s316_s24 = int_to_ptr.vmem [resolvable:$true] %s315_s24 }
  0x3e   : > { %p7101_p11 = scmp.ne.s32.totalorder %s354_s22, %s7100_s28  ;;  %p7108_p0 = scmp.lt.s32.totalorder %s354_s22, %s354_s22 }
  0x3f   : > { %p7109_p2 = scmp.lt.s32.totalorder %s7100_s28, %s7100_s28 }
  0x40   : > { %p7103_p12 = pnand %p7101_p11, %p7487_p7 }
  0x41   : > { %6034 = dma.hbm_to_vmem [thread:$0]  (!%p7477_p6), %s8022_s5, 64, %s330_s25, [#allocation13]  }
  0x42   : > { %p7104_p13 = pneg %p7103_p12  ;;  %p7110_p5 = por %p7109_p2, %p7108_p0 }
  0x44   : > { %p7111_p8 = pnand %p7110_p5, %p7104_p13 }
  0x46   : > { %7114 = shalt.err (!%p7111_p8)
}
  0x47   : > { %6040 = dma.hbm_to_vmem [thread:$0]  (!%p7477_p6), %s8002_s7, 32, %s354_s22, [#allocation16]  }
  0x48   : > { %s7126_s25 = scalar_lea.vmem %s316_s24, 4096  ;;  %p7134_p11 = scmp.lt.s32.totalorder %s316_s24, %s316_s24 }
  0x49   : > { %p7127_p9 = scmp.ne.s32.totalorder %s316_s24, %s7126_s25  ;;  %p7135_p12 = scmp.lt.s32.totalorder %s7126_s25, %s7126_s25 }
  0x4b   : > { %p7129_p10 = pnand %p7127_p9, %p7487_p7  ;;  %p7136_p1 = por %p7135_p12, %p7134_p11 }
  0x4d   : > { %p7130_p3 = pneg %p7129_p10 }
  0x4f   : > { %p7137_p4 = pnand %p7136_p1, %p7130_p3 }
  0x51   : > { %7140 = shalt.err (!%p7137_p4)
}
  0x52   : > { %s8023_s4 = sld [smem:[#allocation32_spill]]  ;;  %s7372_s12 = smov [#allocation14]  }
  0x53   : > { %s339_s22 = sshll.u32 %s7372_s12, 4  ;;  %s340_s22 = int_to_ptr.vmem [resolvable:$true] %s339_s22 }
  0x54   : > { %s7152_s18 = scalar_lea.vmem %s340_s22, 8192  ;;  %p7160_p1 = scmp.lt.s32.totalorder %s340_s22, %s340_s22 }
  0x55   : > { %p7153_p13 = scmp.ne.s32.totalorder %s340_s22, %s7152_s18  ;;  %p7161_p3 = scmp.lt.s32.totalorder %s7152_s18, %s7152_s18 }
  0x57   : > { %p7155_p0 = pnand %p7153_p13, %p7487_p7  ;;  %p7162_p4 = por %p7161_p3, %p7160_p1 }
  0x58   : > { %6031 = dma.hbm_to_vmem [thread:$0]  (!%p7477_p6), %s8023_s4, 4096, %s316_s24, [#allocation10], %s7368_s17, %s7368_s17, %s7369_s21  }
  0x59   : > { %p7156_p2 = pneg %p7155_p0 }
  0x5b   : > { %p7163_p5 = pnand %p7162_p4, %p7156_p2 }
  0x5d   : > { %7166 = shalt.err (!%p7163_p5)
}
  0x5e   : > { %s8009_s27 = smov 128   ;;  %s8010_s30 = smov 8  }
  0x5f   : > { %s8024_s6 = sld [smem:[#allocation34_spill]]  ;;  %s7375_s24 = smov [#allocation17]  }
  0x60   : > { %s363_s25 = sshll.u32 %s7375_s24, 4  ;;  %s7376_s28 = smov [#allocation18]   ;;  %s364_s25 = int_to_ptr.vmem [resolvable:$true] %s363_s25 }
  0x61   : > { %s377_s11 = sshll.u32 %s7376_s28, 4  ;;  %s7178_s12 = scalar_lea.vmem %s364_s25, 2048  ;;  %s378_s11 = int_to_ptr.vmem [resolvable:$true] %s377_s11 }
  0x62   : > { %p7179_p8 = scmp.ne.s32.totalorder %s364_s25, %s7178_s12  ;;  %p7186_p11 = scmp.lt.s32.totalorder %s364_s25, %s364_s25 }
  0x63   : > { %p7187_p12 = scmp.lt.s32.totalorder %s7178_s12, %s7178_s12 }
  0x64   : > { %p7181_p9 = pnand %p7179_p8, %p7487_p7 }
  0x65   : > { %6037 = dma.hbm_to_vmem [thread:$0]  (!%p7477_p6), %s8024_s6, 8192, %s340_s22, [#allocation13], %s8009_s27, %s8009_s27, %s8010_s30  }
  0x66   : > { %p7182_p10 = pneg %p7181_p9  ;;  %p7188_p13 = por %p7187_p12, %p7186_p11 }
  0x68   : > { %p7189_p0 = pnand %p7188_p13, %p7182_p10 }
  0x6a   : > { %7192 = shalt.err (!%p7189_p0)
}
  0x6b   : > { %s8025_s22 = smov 64   ;;  %s7204_s21 = scalar_lea.vmem %s378_s11, 16 }
  0x6c   : > { %6043 = dma.hbm_to_vmem [thread:$0]  (!%p7477_p6), %s8003_s8, 2048, %s364_s25, [#allocation16], %s8025_s22, %s8025_s22, %s7367_s29  }
  0x6d   : > { %p7205_p2 = scmp.ne.s32.totalorder %s378_s11, %s7204_s21  ;;  %s7211_s24 = scalar_lea.vmem %s378_s11, 32 }
  0x6e   : > { %p7212_p4 = scmp.lt.s32.totalorder %s378_s11, %s378_s11  ;;  %p7213_p5 = scmp.lt.s32.totalorder %s7211_s24, %s7204_s21 }
  0x6f   : > { %p7207_p1 = pnand %p7205_p2, %p7487_p7 }
  0x70   : > { %p7214_p8 = por %p7213_p5, %p7212_p4 }
  0x71   : > { %p7208_p3 = pneg %p7207_p1 }
  0x73   : > { %p7215_p9 = pnand %p7214_p8, %p7208_p3 }
  0x75   : > { %7218 = shalt.err (!%p7215_p9)
}
  0x76   : > { %6046 = dma.hbm_to_vmem [thread:$0]  (!%p7477_p6), %s8004_s9, 16, %s378_s11, [#allocation19]  }
  0x77   : > { %s7569_s26 = sadd.s32 1, %s7361_s16   ;;  %s38_s23 = sadd.s32 1, %s7357_s15 }
  0x78   : > { %s35_s29 = ssub.s32 %s7361_s16, %s7569_s26  ;;  %p45_p7 = scmp.ne.s32.totalorder %s7357_s15, %s7353_s14 }
  0x79   : > { %p36_p10 = scmp.eq.s32.totalorder %s35_s29, 0  ;;  %p46_p11 = scmp.eq.s32.totalorder %s7361_s16, 0 }
  0x7a   : > { %p51_p12 = scmp.ne.s32.totalorder %s7353_s14, %s7349_s13  ;;  %p6062_p13 = scmp.lt.s32.totalorder %s7361_s16, 3 }
  0x7b   : > { %s7581_s25 = scalar_select %p36_p10, %s7357_s15, %s38_s23  }
  0x7c   : > { %p47_p0 = por %p46_p11, %p45_p7  ;;  %p8026_p2 = scmp.eq.s32.totalorder %s7463_s19, 0 }
  0x7d   : > { %s7590_s11 = sand.u32 1, %s7357_s15   ;;  %s5956_s18 = sshll.u32 %s7361_s16, 7 }
  0x7e   : > { %p7585_p1 = por %p8026_p2, %p51_p12  ;;  %s5338_s17 = sshll.u32 %s7590_s11, 4 }
  0x7f   : > { %s8028_s0 = sld [smem:[#allocation29_spill]]  ;;  %s392_s13 = scalar_lea.vmem [#allocation3], %s5338_s17 }
  0x80   : > { %s399_s12 = sshll.u32 %s392_s13, 4  ;;  %p7599_p6 = pnand %p6062_p13, %p47_p0  ;;  %s7603_s12 = int_to_ptr.vmem [resolvable:$true] %s399_s12 }
  0x82   : > { %p7221_p4 = pneg %p7599_p6 }
  0x85   : > { %s7597_s28 = scalar_lea.hbm %s8028_s0, %s5956_s18  ;;  %s7224_s21 = scalar_lea.hbm %s8028_s0, 768 }
  0x86   : > { %s7219_s30 = scalar_lea.hbm %s7597_s28, 256  ;;  %p7225_p9 = scmp.lt.s32.totalorder %s7597_s28, %s8028_s0 }
  0x87   : > { %p7220_p3 = scmp.ne.s32.totalorder %s7597_s28, %s7219_s30  ;;  %p7226_p7 = scmp.lt.s32.totalorder %s7224_s21, %s7219_s30 }
  0x89   : > { %p7222_p5 = pnand %p7221_p4, %p7220_p3  ;;  %p7227_p10 = por %p7226_p7, %p7225_p9 }
  0x8b   : > { %p7223_p8 = pneg %p7222_p5 }
  0x8d   : > { %p7228_p11 = pnand %p7227_p10, %p7223_p8 }
  0x8f   : > { %7231 = shalt.err (!%p7228_p11)
}
  0x90   : > { %s7232_s29 = scalar_lea.vmem %s7603_s12, 256  ;;  %s7377_s18 = smov [#allocation3]  }
  0x91   : > { %p7233_p12 = scmp.ne.s32.totalorder %s7603_s12, %s7232_s29  ;;  %s7237_s17 = sshll.u32 %s7377_s18, 4  ;;  %s7238_s17 = int_to_ptr.vmem [resolvable:$false] %s7237_s17 }
  0x92   : > { %s7239_s27 = scalar_lea.vmem %s7238_s17, 512  ;;  %p7240_p2 = scmp.lt.s32.totalorder %s7603_s12, %s7238_s17 }
  0x93   : > { %p7235_p13 = pnand %p7233_p12, %p7221_p4  ;;  %p7241_p3 = scmp.lt.s32.totalorder %s7239_s27, %s7232_s29 }
  0x95   : > { %p7236_p0 = pneg %p7235_p13  ;;  %p7242_p5 = por %p7241_p3, %p7240_p2 }
  0x97   : > { %p7243_p9 = pnand %p7242_p5, %p7236_p0 }
  0x99   : > { %7246 = shalt.err (!%p7243_p9)
}
  0x9a   : > { %s7378_s30 = smov 384   ;;  %s8030_s21 = smov 8  }
  0x9b   : > { %s8031_s24 = smov 128   ;;  %s8032_s13 = scalar_lea.sflag [#allocation4], %s7590_s11 }
  0x9c   : > { %6050 = dma.hbm_to_vmem [thread:$0]  (!%p7599_p6), %s7597_s28, 256, %s7603_s12, %s8032_s13, %s7378_s30, %s8031_s24, %s8030_s21  }
  0x9d   : > { %s5979_s18 = smul.u32 1280, %s7590_s11  ;;  %s8033_s4 = sand.u32 1, %s7361_s16  }
  0x9e   : > { %s5980_s17 = smul.u32 20480, %s7361_s16  ;;  %s7646_s5 = scalar_lea.sflag [#allocation7], %s8033_s4 }
  0x9f   : > { %s413_s2 = scalar_lea.vmem [#allocation6], %s5979_s18  ;;  %s7252_s12 = scalar_lea.hbm %s7996_s1, 61440 }
  0xa0   : > { %s7640_s0 = scalar_lea.hbm %s7996_s1, %s5980_s17  ;;  %s421_s3 = sshll.u32 %s413_s2, 4  ;;  %s7642_s3 = int_to_ptr.vmem [resolvable:$true] %s421_s3 }
  0xa1   : > { %s7247_s6 = scalar_lea.hbm %s7640_s0, 20480  ;;  %p7253_p11 = scmp.lt.s32.totalorder %s7640_s0, %s7996_s1 }
  0xa2   : > { %p7248_p8 = scmp.ne.s32.totalorder %s7640_s0, %s7247_s6  ;;  %p7254_p12 = scmp.lt.s32.totalorder %s7252_s12, %s7247_s6 }
  0xa4   : > { %p7250_p7 = pnand %p7248_p8, %p7221_p4  ;;  %p7255_p13 = por %p7254_p12, %p7253_p11 }
  0xa6   : > { %p7251_p10 = pneg %p7250_p7 }
  0xa8   : > { %p7256_p0 = pnand %p7255_p13, %p7251_p10 }
  0xaa   : > { %7259 = shalt.err (!%p7256_p0)
}
  0xab   : > { %s7260_s2 = scalar_lea.vmem %s7642_s3, 20480  ;;  %s7379_s4 = smov [#allocation6]  }
  0xac   : > { %p7261_p2 = scmp.ne.s32.totalorder %s7642_s3, %s7260_s2  ;;  %s7265_s16 = sshll.u32 %s7379_s4, 4  ;;  %s7266_s16 = int_to_ptr.vmem [resolvable:$false] %s7265_s16 }
  0xad   : > { %s7267_s24 = scalar_lea.vmem %s7266_s16, 40960  ;;  %p7268_p9 = scmp.lt.s32.totalorder %s7642_s3, %s7266_s16 }
  0xae   : > { %p7263_p3 = pnand %p7261_p2, %p7221_p4  ;;  %p7269_p8 = scmp.lt.s32.totalorder %s7267_s24, %s7260_s2 }
  0xb0   : > { %p7264_p5 = pneg %p7263_p3  ;;  %p7270_p7 = por %p7269_p8, %p7268_p9 }
  0xb2   : > { %p7271_p11 = pnand %p7270_p7, %p7264_p5 }
  0xb4   : > { %7274 = shalt.err (!%p7271_p11)
}
  0xb5   : > { %s7380_s6 = smov 640   ;;  %s7381_s13 = smov 40  }
  0xb6   : > { %6053 = dma.hbm_to_vmem [thread:$0]  (!%p7599_p6), %s7640_s0, 20480, %s7642_s3, %s7646_s5, %s7380_s6, %s7380_s6, %s7381_s13  }
  0xb7   : > { %p8034_p4 = scmp.ne.s32.totalorder %s8017_s20, 0 }
  0xb8   : > { %s435_s18 = sand.u32 (!%p8034_p4), 1, %s7353_s14  }
  0xb9   : > { %433 = sbr.rel (%p8034_p4) target bundleno = 1613 (0x64d), region = 60  ;;  %s5345_s17 = sshll.u32 (!%p8034_p4), %s435_s18, 4 }
  0xba   : > { %s436_s27 = scalar_lea.sflag (!%p8034_p4), [#allocation4], %s435_s18  ;;  %s7674_s29 = scalar_lea.vmem (!%p8034_p4), [#allocation3], %s5345_s17 }
  0xbe   : > { %7316 = dma.done.wait (%p7585_p1), %s436_s27, 256  }
  0xbf   : > { %7318 = vsyncadd (%p7585_p1), %s436_s27, 4294967040  ;;  %s444_s11 = sand.u32 1, %s7463_s19   ;;  %s5981_s23 = smul.u32 1280, %s435_s18 }
  0xc0   : > { %s445_s0 = scalar_lea.sflag [#allocation7], %s444_s11 }
  0xc1   : > { %s7681_s3 = scalar_lea.vmem [#allocation6], %s5981_s23 }
  0xc2   : > { %7320 = dma.done.wait (%p7585_p1), %s445_s0, 20480  }
  0xc3   : > { %7322 = vsyncadd (%p7585_p1), %s445_s0, 4294946816  ;;  %p8035_p6 = scmp.eq.s32.totalorder %s7463_s19, 0 }
  0xc5   : > { %7324 = dma.done.wait (%p8035_p6), [#allocation7], 128   ;;  %p8036_p10 = pmov %p8035_p6 }
  0xc6   : > { %p8037_p12 = pmov %p8035_p6 }
  0xc7   : > { %7326 = vsyncadd (%p8036_p10), [#allocation7], 4294967168 }
  0xc8   : > { %7328 = dma.done.wait (%p8037_p12), [#allocation10], 45056   ;;  %p8038_p13 = pmov %p8035_p6 }
  0xc9   : > { %p8039_p0 = pmov %p8035_p6 }
  0xca   : > { %7330 = vsyncadd (%p8038_p13), [#allocation10], 4294922240 }
  0xcb   : > { %7332 = dma.done.wait (%p8039_p0), [#allocation13], 8256   ;;  %p8040_p2 = pmov %p8039_p0 }
  0xcc   : > { %p8041_p1 = pmov %p8039_p0 }
  0xcd   : > { %7334 = vsyncadd (%p8040_p2), [#allocation13], 4294959040 }
  0xce   : > { %7336 = dma.done.wait (%p8041_p1), [#allocation16], 2080   ;;  %p8042_p3 = pmov %p8039_p0 }
  0xcf   : > { %p8043_p5 = pmov %p8039_p0 }
  0xd0   : > { %7338 = vsyncadd (%p8042_p3), [#allocation16], 4294965216 }
  0xd1   : > { %7340 = dma.done.wait (%p8043_p5), [#allocation19], 16   ;;  %p8044_p9 = pmov %p8039_p0 }
  0xd2   : > { %p8045_p8 = scmp.ne.s32.totalorder %s7463_s19, 0 }
  0xd3   : > { %7342 = vsyncadd (%p8044_p9), [#allocation19], 4294967280 }
  0xd4   : > { %523 = sbr.rel (%p8045_p8) target bundleno = 228 (0xe4), region = 104 }
  0xd9   : > { %v7382_v0 = vmov 0.0  }
  0xda   : > { %524 = vst [vmem:[#allocation2] sm:$0xff] %v7382_v0  ;;  %525 = vst [vmem:[#allocation2 + $0x38] sm:$0xff] %v7382_v0 }
  0xdb   : > { %526 = vst [vmem:[#allocation2 + $0x50] sm:$0xff] %v7382_v0  ;;  %527 = vst [vmem:[#allocation2 + $0x18] sm:$0xff] %v7382_v0 }
  0xdc   : > { %528 = vst [vmem:[#allocation2 + $0x30] sm:$0xff] %v7382_v0  ;;  %529 = vst [vmem:[#allocation2 + $0x68] sm:$0xff] %v7382_v0 }
  0xdd   : > { %530 = vst [vmem:[#allocation2 + $0x78] sm:$0xff] %v7382_v0  ;;  %531 = vst [vmem:[#allocation2 + $0x80] sm:$0xff] %v7382_v0 }
  0xde   : > { %532 = vst [vmem:[#allocation2 + $0x8] sm:$0xff] %v7382_v0  ;;  %533 = vst [vmem:[#allocation2 + $0x88] sm:$0xff] %v7382_v0 }
  0xdf   : > { %534 = vst [vmem:[#allocation2 + $0x28] sm:$0xff] %v7382_v0  ;;  %535 = vst [vmem:[#allocation2 + $0x40] sm:$0xff] %v7382_v0 }
  0xe0   : > { %536 = vst [vmem:[#allocation2 + $0x58] sm:$0xff] %v7382_v0  ;;  %537 = vst [vmem:[#allocation2 + $0x10] sm:$0xff] %v7382_v0 }
  0xe1   : > { %538 = vst [vmem:[#allocation2 + $0x98] sm:$0xff] %v7382_v0  ;;  %539 = vst [vmem:[#allocation2 + $0x60] sm:$0xff] %v7382_v0 }
  0xe2   : > { %540 = vst [vmem:[#allocation2 + $0x20] sm:$0xff] %v7382_v0  ;;  %541 = vst [vmem:[#allocation2 + $0x48] sm:$0xff] %v7382_v0 }
  0xe3   : > { %542 = vst [vmem:[#allocation2 + $0x70] sm:$0xff] %v7382_v0  ;;  %543 = vst [vmem:[#allocation2 + $0x90] sm:$0xff] %v7382_v0 }
  0xe4 PF: > { %v6127_v1 = vld [vmem:[%s7681_s3 + $0x234] ss:$40 sps:$4 sm:$0xff]   ;;  %v6129_v2 = vld [vmem:[%s7681_s3 + $0x230] ss:$40 sps:$4 sm:$0xff]   ;;  %v6130_v3 = vld [vmem:[%s7681_s3 + $0x1e4] ss:$40 sps:$4 sm:$0xff]  }
  0xe5   : > { %1536 = vmatprep.subr.bf16.mxu0 %v6127_v1  ;;  %v6132_v4 = vld [vmem:[%s7681_s3 + $0x1e0] ss:$40 sps:$4 sm:$0xff]   ;;  %v6133_v5 = vld [vmem:[%s7681_s3 + $0x194] ss:$40 sps:$4 sm:$0xff]   ;;  %v6135_v6 = vld [vmem:[%s7681_s3 + $0x190] ss:$40 sps:$4 sm:$0xff]  }
  0xe6   : > { %1537 = vmatpush1.bf16.msra.mxu0 %v6129_v2  ;;  %v6136_v7 = vld [vmem:[%s7681_s3 + $0x144] ss:$40 sps:$4 sm:$0xff]   ;;  %v6138_v8 = vld [vmem:[%s7681_s3 + $0x140] ss:$40 sps:$4 sm:$0xff]   ;;  %v6139_v9 = vld [vmem:[%s7681_s3 + $0xf4] ss:$40 sps:$4 sm:$0xff]  }
  0xe7   : > { %1538 = vmatprep.subr.bf16.mxu0 %v6130_v3  ;;  %v6141_v10 = vld [vmem:[%s7681_s3 + $0xf0] ss:$40 sps:$4 sm:$0xff]   ;;  %v6142_v11 = vld [vmem:[%s7681_s3 + $0xa4] ss:$40 sps:$4 sm:$0xff]   ;;  %v6144_v12 = vld [vmem:[%s7681_s3 + $0xa0] ss:$40 sps:$4 sm:$0xff]  }
  0xe8   : > { %v6145_v13 = vld [vmem:[%s7681_s3 + $0x54] ss:$40 sps:$4 sm:$0xff]   ;;  %v6174_v15 = vld [vmem:[%s7681_s3 + $0x238] ss:$40 sps:$4 sm:$0xff]   ;;  %v6148_v17 = vld [vmem:[%s7681_s3 + $0x4] ss:$40 sps:$4 sm:$0xff]  }
  0xe9   : > { %v6172_v14 = vld [vmem:[%s7681_s3 + $0x23c] ss:$40 sps:$4 sm:$0xff]   ;;  %v6147_v16 = vld [vmem:[%s7681_s3 + $0x50] ss:$40 sps:$4 sm:$0xff]   ;;  %v6178_v18 = vld [vmem:[%s7681_s3 + $0x1ec] ss:$40 sps:$4 sm:$0xff]  }
  0xea   : > { %1539 = vmatpush1.bf16.msra.mxu0 %v6132_v4  ;;  %1579 = vmatprep.subr.bf16.mxu1 %v6172_v14  ;;  %v7728_v19 = vld [vmem:[%s7674_s29 + $0x4] ss:$8 sps:$4 sm:$0xff]   ;;  %v6182_v20 = vld [vmem:[%s7681_s3 + $0x1e8] ss:$40 sps:$4 sm:$0xff]   ;;  %v6189_v23 = vld [vmem:[%s7681_s3 + $0x198] ss:$40 sps:$4 sm:$0xff]  }
  0xeb   : > { %1540 = vmatprep.subr.bf16.mxu0 %v6133_v5  ;;  %1580 = vmatpush1.bf16.msra.mxu1 %v6174_v15  ;;  %v6150_v21 = vld [vmem:[%s7681_s3] ss:$40 sps:$4 sm:$0xff]   ;;  %v6187_v22 = vld [vmem:[%s7681_s3 + $0x19c] ss:$40 sps:$4 sm:$0xff]   ;;  %v6153_v25 = vld [vmem:[%s7681_s3 + $0x4b0] ss:$40 sps:$4 sm:$0xff]  }
  0xec   : > { %1581 = vmatprep.subr.bf16.mxu1 %v6178_v18  ;;  %1568 = vmatprep.mubr.bf16.mxu0 %v7728_v19  ;;  %v6151_v24 = vld [vmem:[%s7681_s3 + $0x4b4] ss:$40 sps:$4 sm:$0xff]   ;;  %v6154_v27 = vld [vmem:[%s7681_s3 + $0x464] ss:$40 sps:$4 sm:$0xff]   ;;  %v6195_v28 = vld [vmem:[%s7681_s3 + $0x148] ss:$40 sps:$4 sm:$0xff]  }
  0xed   : > { %1611 = vmatprep.mubr.bf16.mxu1 %v7728_v19  ;;  %v6193_v26 = vld [vmem:[%s7681_s3 + $0x14c] ss:$40 sps:$4 sm:$0xff]   ;;  %v6199_v29 = vld [vmem:[%s7681_s3 + $0xfc] ss:$40 sps:$4 sm:$0xff]   ;;  %v6156_v30 = vld [vmem:[%s7681_s3 + $0x460] ss:$40 sps:$4 sm:$0xff]  }
  0xee   : > { %1541 = vmatpush1.bf16.msra.mxu0 %v6135_v6  ;;  %v6157_v31 = vld [vmem:[%s7681_s3 + $0x414] ss:$40 sps:$4 sm:$0xff]   ;;  %v6201_v32 = vld [vmem:[%s7681_s3 + $0xf8] ss:$40 sps:$4 sm:$0xff]   ;;  %v6160_v35 = vld [vmem:[%s7681_s3 + $0x3c4] ss:$40 sps:$4 sm:$0xff]  }
  0xef   : > { %1542 = vmatprep.subr.bf16.mxu0 %v6136_v7  ;;  %1582 = vmatpush1.bf16.msra.mxu1 %v6182_v20  ;;  %v6205_v33 = vld [vmem:[%s7681_s3 + $0xac] ss:$40 sps:$4 sm:$0xff]   ;;  %v6159_v34 = vld [vmem:[%s7681_s3 + $0x410] ss:$40 sps:$4 sm:$0xff]   ;;  %v6211_v37 = vld [vmem:[%s7681_s3 + $0x5c] ss:$40 sps:$4 sm:$0xff]  }
  0xf0   : > { %1583 = vmatprep.subr.bf16.mxu1 %v6187_v22  ;;  %v6207_v36 = vld [vmem:[%s7681_s3 + $0xa8] ss:$40 sps:$4 sm:$0xff]   ;;  %v6163_v39 = vld [vmem:[%s7681_s3 + $0x374] ss:$40 sps:$4 sm:$0xff]   ;;  %v6213_v40 = vld [vmem:[%s7681_s3 + $0x58] ss:$40 sps:$4 sm:$0xff]  }
  0xf1   : > { %v6162_v38 = vld [vmem:[%s7681_s3 + $0x3c0] ss:$40 sps:$4 sm:$0xff]   ;;  %v6217_v41 = vld [vmem:[%s7681_s3 + $0xc] ss:$40 sps:$4 sm:$0xff]   ;;  %v6165_v42 = vld [vmem:[%s7681_s3 + $0x370] ss:$40 sps:$4 sm:$0xff]  }
  0xf2   : > { %1543 = vmatpush1.bf16.msra.mxu0 %v6138_v8  ;;  %v6166_v43 = vld [vmem:[%s7681_s3 + $0x324] ss:$40 sps:$4 sm:$0xff]   ;;  %v6219_v44 = vld [vmem:[%s7681_s3 + $0x8] ss:$40 sps:$4 sm:$0xff]   ;;  %v6169_v47 = vld [vmem:[%s7681_s3 + $0x2d4] ss:$40 sps:$4 sm:$0xff]  }
  0xf3   : > { %1544 = vmatprep.subr.bf16.mxu0 %v6139_v9  ;;  %1584 = vmatpush1.bf16.msra.mxu1 %v6189_v23  ;;  %v6223_v45 = vld [vmem:[%s7681_s3 + $0x4bc] ss:$40 sps:$4 sm:$0xff]   ;;  %v6168_v46 = vld [vmem:[%s7681_s3 + $0x320] ss:$40 sps:$4 sm:$0xff]   ;;  %v6229_v49 = vld [vmem:[%s7681_s3 + $0x46c] ss:$40 sps:$4 sm:$0xff]  }
  0xf4   : > { %1585 = vmatprep.subr.bf16.mxu1 %v6193_v26  ;;  %v6225_v48 = vld [vmem:[%s7681_s3 + $0x4b8] ss:$40 sps:$4 sm:$0xff]   ;;  %v6175_v51 = vld [vmem:[%s7681_s3 + $0x284] ss:$40 sps:$4 sm:$0xff]   ;;  %v6231_v52 = vld [vmem:[%s7681_s3 + $0x468] ss:$40 sps:$4 sm:$0xff]  }
  0xf5   : > { %v6171_v50 = vld [vmem:[%s7681_s3 + $0x2d0] ss:$40 sps:$4 sm:$0xff]   ;;  %v6235_v53 = vld [vmem:[%s7681_s3 + $0x41c] ss:$40 sps:$4 sm:$0xff]   ;;  %v6177_v54 = vld [vmem:[%s7681_s3 + $0x280] ss:$40 sps:$4 sm:$0xff]  }
  0xf6   : > { %1545 = vmatpush1.bf16.msra.mxu0 %v6141_v10  ;;  %v6186_v55 = vld [vmem:[%s7681_s3 + $0x244] ss:$40 sps:$4 sm:$0xff]   ;;  %v6237_v56 = vld [vmem:[%s7681_s3 + $0x418] ss:$40 sps:$4 sm:$0xff]   ;;  %v6192_v60 = vld [vmem:[%s7681_s3 + $0x1f4] ss:$40 sps:$4 sm:$0xff]  }
  0xf7   : > { %1546 = vmatprep.subr.bf16.mxu0 %v6142_v11  ;;  %1586 = vmatpush1.bf16.msra.mxu1 %v6195_v28  ;;  %v6241_v57 = vld [vmem:[%s7681_s3 + $0x3cc] ss:$40 sps:$4 sm:$0xff]   ;;  %v7771_v58 = vld [vmem:[%s7674_s29] ss:$8 sps:$4 sm:$0xff]   ;;  %v6247_v62 = vld [vmem:[%s7681_s3 + $0x37c] ss:$40 sps:$4 sm:$0xff]  }
  0xf8   : > { %1587 = vmatprep.subr.bf16.mxu1 %v6199_v29  ;;  %v6184_v59 = vld [vmem:[%s7681_s3 + $0x240] ss:$40 sps:$4 sm:$0xff]   ;;  %v6190_v63 = vld [vmem:[%s7681_s3 + $0x1f0] ss:$40 sps:$4 sm:$0xff]   ;;  %v6198_v0 = vld [vmem:[%s7681_s3 + $0x1a4] ss:$40 sps:$4 sm:$0xff]  }
  0xf9   : > { %v6243_v61 = vld [vmem:[%s7681_s3 + $0x3c8] ss:$40 sps:$4 sm:$0xff]   ;;  %v6249_v1 = vld [vmem:[%s7681_s3 + $0x378] ss:$40 sps:$4 sm:$0xff]   ;;  %v6253_v2 = vld [vmem:[%s7681_s3 + $0x32c] ss:$40 sps:$4 sm:$0xff]  }
  0xfa   : > { %1547 = vmatpush1.bf16.msra.mxu0 %v6144_v12  ;;  %v6196_v3 = vld [vmem:[%s7681_s3 + $0x1a0] ss:$40 sps:$4 sm:$0xff]   ;;  %v6204_v4 = vld [vmem:[%s7681_s3 + $0x154] ss:$40 sps:$4 sm:$0xff]   ;;  %v6202_v7 = vld [vmem:[%s7681_s3 + $0x150] ss:$40 sps:$4 sm:$0xff]  }
  0xfb   : > { %1548 = vmatprep.subr.bf16.mxu0 %v6145_v13  ;;  %1588 = vmatpush1.bf16.msra.mxu1 %v6201_v32  ;;  %v6255_v5 = vld [vmem:[%s7681_s3 + $0x328] ss:$40 sps:$4 sm:$0xff]   ;;  %v6259_v6 = vld [vmem:[%s7681_s3 + $0x2dc] ss:$40 sps:$4 sm:$0xff]   ;;  %v6261_v9 = vld [vmem:[%s7681_s3 + $0x2d8] ss:$40 sps:$4 sm:$0xff]  }
  0xfc   : > { %1589 = vmatprep.subr.bf16.mxu1 %v6205_v33  ;;  %v6210_v8 = vld [vmem:[%s7681_s3 + $0x104] ss:$40 sps:$4 sm:$0xff]   ;;  %v6208_v11 = vld [vmem:[%s7681_s3 + $0x100] ss:$40 sps:$4 sm:$0xff]   ;;  %v6216_v12 = vld [vmem:[%s7681_s3 + $0xb4] ss:$40 sps:$4 sm:$0xff]  }
  0xfd   : > { %v6265_v10 = vld [vmem:[%s7681_s3 + $0x28c] ss:$40 sps:$4 sm:$0xff]   ;;  %v6267_v13 = vld [vmem:[%s7681_s3 + $0x288] ss:$40 sps:$4 sm:$0xff]   ;;  %v6279_v18 = vld [vmem:[%s7681_s3 + $0x1fc] ss:$40 sps:$4 sm:$0xff]  }
  0xfe   : > { %1549 = vmatpush1.bf16.msra.mxu0 %v6147_v16  ;;  %v6273_v14 = vld [vmem:[%s7681_s3 + $0x24c] ss:$40 sps:$4 sm:$0xff]   ;;  %v6214_v15 = vld [vmem:[%s7681_s3 + $0xb0] ss:$40 sps:$4 sm:$0xff]   ;;  %v6220_v20 = vld [vmem:[%s7681_s3 + $0x60] ss:$40 sps:$4 sm:$0xff]  }
  0xff   : > { %1550 = vmatprep.subr.bf16.mxu0 %v6148_v17  ;;  %1590 = vmatpush1.bf16.msra.mxu1 %v6207_v36  ;;  %v6222_v16 = vld [vmem:[%s7681_s3 + $0x64] ss:$40 sps:$4 sm:$0xff]   ;;  %v6271_v17 = vld [vmem:[%s7681_s3 + $0x248] ss:$40 sps:$4 sm:$0xff]   ;;  %v6277_v22 = vld [vmem:[%s7681_s3 + $0x1f8] ss:$40 sps:$4 sm:$0xff]  }
 0x100   : > { %1591 = vmatprep.subr.bf16.mxu1 %v6211_v37  ;;  %v6285_v23 = vld [vmem:[%s7681_s3 + $0x1ac] ss:$40 sps:$4 sm:$0xff]   ;;  %v6283_v26 = vld [vmem:[%s7681_s3 + $0x1a8] ss:$40 sps:$4 sm:$0xff]   ;;  %p5517_p7 = scmp.ne.s32.totalorder %s7463_s19, 2 }
 0x101   : > { %v6232_v28 = vld [vmem:[%s7681_s3 + $0x4c0] ss:$40 sps:$4 sm:$0xff]   ;;  %v6240_v29 = vld [vmem:[%s7681_s3 + $0x474] ss:$40 sps:$4 sm:$0xff]   ;;  %v6238_v32 = vld [vmem:[%s7681_s3 + $0x470] ss:$40 sps:$4 sm:$0xff]  }
 0x102   : > { %1551 = vmatpush1.bf16.msra.mxu0 %v6150_v21  ;;  %v6228_v21 = vld [vmem:[%s7681_s3 + $0x14] ss:$40 sps:$4 sm:$0xff]   ;;  %v6246_v33 = vld [vmem:[%s7681_s3 + $0x424] ss:$40 sps:$4 sm:$0xff]   ;;  %v6244_v36 = vld [vmem:[%s7681_s3 + $0x420] ss:$40 sps:$4 sm:$0xff]  }
 0x103   : > { %1552 = vmatprep.subr.bf16.mxu0 %v6151_v24  ;;  %1592 = vmatpush1.bf16.msra.mxu1 %v6213_v40  ;;  %v6226_v24 = vld [vmem:[%s7681_s3 + $0x10] ss:$40 sps:$4 sm:$0xff]   ;;  %v6252_v37 = vld [vmem:[%s7681_s3 + $0x3d4] ss:$40 sps:$4 sm:$0xff]  }
 0x104   : > { %1593 = vmatprep.subr.bf16.mxu1 %v6217_v41  ;;  %v6250_v40 = vld [vmem:[%s7681_s3 + $0x3d0] ss:$40 sps:$4 sm:$0xff]  }
 0x105   : > { %v6307_v41 = vld [vmem:[%s7681_s3 + $0x68] ss:$40 sps:$4 sm:$0xff]  }
 0x106   : > { %1553 = vmatpush2.bf16.msra.mxu0 %v6153_v25  ;;  %v6234_v25 = vld [vmem:[%s7681_s3 + $0x4c4] ss:$40 sps:$4 sm:$0xff]  }
 0x107   : > { %1554 = vmatprep.subr.bf16.mxu0 %v6154_v27  ;;  %1594 = vmatpush1.bf16.msra.mxu1 %v6219_v44  ;;  %v6291_v27 = vld [vmem:[%s7681_s3 + $0x15c] ss:$40 sps:$4 sm:$0xff]   ;;  %v6256_v44 = vld [vmem:[%s7681_s3 + $0x380] ss:$40 sps:$4 sm:$0xff]  }
 0x108   : > { %1595 = vmatprep.subr.bf16.mxu1 %v6223_v45  ;;  %v6313_v45 = vld [vmem:[%s7681_s3 + $0x18] ss:$40 sps:$4 sm:$0xff]  }
 0x10a   : > { %1555 = vmatpush2.bf16.msra.mxu0 %v6156_v30  ;;  %v6289_v30 = vld [vmem:[%s7681_s3 + $0x158] ss:$40 sps:$4 sm:$0xff]  }
 0x10b   : > { %1556 = vmatprep.subr.bf16.mxu0 %v6157_v31  ;;  %1596 = vmatpush2.bf16.msra.mxu1 %v6225_v48  ;;  %v6297_v31 = vld [vmem:[%s7681_s3 + $0x10c] ss:$40 sps:$4 sm:$0xff]   ;;  %v6262_v48 = vld [vmem:[%s7681_s3 + $0x330] ss:$40 sps:$4 sm:$0xff]  }
 0x10c   : > { %1597 = vmatprep.subr.bf16.mxu1 %v6229_v49  ;;  %v6319_v49 = vld [vmem:[%s7681_s3 + $0x4c8] ss:$40 sps:$4 sm:$0xff]  }
 0x10e   : > { %1557 = vmatpush2.bf16.msra.mxu0 %v6159_v34  ;;  %v6295_v34 = vld [vmem:[%s7681_s3 + $0x108] ss:$40 sps:$4 sm:$0xff]  }
 0x10f   : > { %1558 = vmatprep.subr.bf16.mxu0 %v6160_v35  ;;  %1598 = vmatpush2.bf16.msra.mxu1 %v6231_v52  ;;  %v6303_v35 = vld [vmem:[%s7681_s3 + $0xbc] ss:$40 sps:$4 sm:$0xff]   ;;  %v6268_v52 = vld [vmem:[%s7681_s3 + $0x2e0] ss:$40 sps:$4 sm:$0xff]  }
 0x110   : > { %1599 = vmatprep.subr.bf16.mxu1 %v6235_v53  ;;  %v6325_v53 = vld [vmem:[%s7681_s3 + $0x478] ss:$40 sps:$4 sm:$0xff]  }
 0x112   : > { %1559 = vmatpush2.bf16.msra.mxu0 %v6162_v38  ;;  %v6301_v38 = vld [vmem:[%s7681_s3 + $0xb8] ss:$40 sps:$4 sm:$0xff]  }
 0x113   : > { %1560 = vmatprep.subr.bf16.mxu0 %v6163_v39  ;;  %1600 = vmatpush2.bf16.msra.mxu1 %v6237_v56  ;;  %v6309_v39 = vld [vmem:[%s7681_s3 + $0x6c] ss:$40 sps:$4 sm:$0xff]   ;;  %v6274_v56 = vld [vmem:[%s7681_s3 + $0x290] ss:$40 sps:$4 sm:$0xff]  }
 0x114   : > { %1601 = vmatprep.subr.bf16.mxu1 %v6241_v57  ;;  %v6331_v57 = vld [vmem:[%s7681_s3 + $0x428] ss:$40 sps:$4 sm:$0xff]  }
 0x116   : > { %1561 = vmatpush2.bf16.msra.mxu0 %v6165_v42  ;;  %v6258_v42 = vld [vmem:[%s7681_s3 + $0x384] ss:$40 sps:$4 sm:$0xff]  }
 0x117   : > { %1562 = vmatprep.subr.bf16.mxu0 %v6166_v43  ;;  %1602 = vmatpush2.bf16.msra.mxu1 %v6243_v61  ;;  %v6315_v43 = vld [vmem:[%s7681_s3 + $0x1c] ss:$40 sps:$4 sm:$0xff]   ;;  %v6280_v61 = vld [vmem:[%s7681_s3 + $0x250] ss:$40 sps:$4 sm:$0xff]  }
 0x118   : > { %1603 = vmatprep.subr.bf16.mxu1 %v6247_v62  ;;  %v6337_v62 = vld [vmem:[%s7681_s3 + $0x3d8] ss:$40 sps:$4 sm:$0xff]  }
 0x11a   : > { %1563 = vmatpush2.bf16.msra.mxu0 %v6168_v46  ;;  %v6264_v46 = vld [vmem:[%s7681_s3 + $0x334] ss:$40 sps:$4 sm:$0xff]  }
 0x11b   : > { %1564 = vmatprep.subr.bf16.mxu0 %v6169_v47  ;;  %1604 = vmatpush2.bf16.msra.mxu1 %v6249_v1  ;;  %v6321_v47 = vld [vmem:[%s7681_s3 + $0x4cc] ss:$40 sps:$4 sm:$0xff]   ;;  %v6286_v1 = vld [vmem:[%s7681_s3 + $0x200] ss:$40 sps:$4 sm:$0xff]  }
 0x11c   : > { %1605 = vmatprep.subr.bf16.mxu1 %v6253_v2  ;;  %v6343_v2 = vld [vmem:[%s7681_s3 + $0x388] ss:$40 sps:$4 sm:$0xff]  }
 0x11e   : > { %1565 = vmatpush2.bf16.msra.mxu0 %v6171_v50  ;;  %v6270_v50 = vld [vmem:[%s7681_s3 + $0x2e4] ss:$40 sps:$4 sm:$0xff]  }
 0x11f   : > { %1566 = vmatprep.subr.bf16.mxu0 %v6175_v51  ;;  %1606 = vmatpush2.bf16.msra.mxu1 %v6255_v5  ;;  %v6327_v51 = vld [vmem:[%s7681_s3 + $0x47c] ss:$40 sps:$4 sm:$0xff]   ;;  %v6292_v5 = vld [vmem:[%s7681_s3 + $0x1b0] ss:$40 sps:$4 sm:$0xff]  }
 0x120   : > { %1607 = vmatprep.subr.bf16.mxu1 %v6259_v6  ;;  %v6349_v6 = vld [vmem:[%s7681_s3 + $0x338] ss:$40 sps:$4 sm:$0xff]  }
 0x122   : > { %1567 = vmatpush2.bf16.msra.mxu0 %v6177_v54  ;;  %v6276_v54 = vld [vmem:[%s7681_s3 + $0x294] ss:$40 sps:$4 sm:$0xff]  }
 0x123   : > { %1622 = vmatprep.subr.bf16.mxu0 %v6186_v55  ;;  %1608 = vmatpush2.bf16.msra.mxu1 %v6261_v9  ;;  %v6333_v55 = vld [vmem:[%s7681_s3 + $0x42c] ss:$40 sps:$4 sm:$0xff]   ;;  %v6298_v9 = vld [vmem:[%s7681_s3 + $0x160] ss:$40 sps:$4 sm:$0xff]  }
 0x124   : > { %1609 = vmatprep.subr.bf16.mxu1 %v6265_v10  ;;  %v6355_v10 = vld [vmem:[%s7681_s3 + $0x2e8] ss:$40 sps:$4 sm:$0xff]  }
 0x125   : > { %1569 = vmatmul.mubr.bf16.vlgmr.msra.gmra.mxu0 %v7771_v58 }
 0x126   : > { %1623 = vmatpush1.bf16.msra.mxu0 %v6184_v59  ;;  %1654 = vmatprep.mubr.bf16.mxu0 %v7728_v19  ;;  %v6282_v59 = vld [vmem:[%s7681_s3 + $0x254] ss:$40 sps:$4 sm:$0xff]  }
 0x127   : > { %1624 = vmatprep.subr.bf16.mxu0 %v6192_v60  ;;  %1610 = vmatpush2.bf16.msra.mxu1 %v6267_v13  ;;  %v6339_v60 = vld [vmem:[%s7681_s3 + $0x3dc] ss:$40 sps:$4 sm:$0xff]   ;;  %v6361_v13 = vld [vmem:[%s7681_s3 + $0x298] ss:$40 sps:$4 sm:$0xff]  }
 0x128   : > { %1665 = vmatprep.subr.bf16.mxu1 %v6273_v14  ;;  %v6312_v14 = vld [vmem:[%s7681_s3 + $0xc4] ss:$40 sps:$4 sm:$0xff]  }
 0x12a   : > { %1625 = vmatpush1.bf16.msra.mxu0 %v6190_v63  ;;  %1612 = vmatmul.mubr.bf16.vlgmr.msra.gmra.mxu1 %v7771_v58  ;;  %v6288_v63 = vld [vmem:[%s7681_s3 + $0x204] ss:$40 sps:$4 sm:$0xff]  }
 0x12b   : > { %1626 = vmatprep.subr.bf16.mxu0 %v6198_v0  ;;  %1666 = vmatpush1.bf16.msra.mxu1 %v6271_v17  ;;  %v6345_v0 = vld [vmem:[%s7681_s3 + $0x38c] ss:$40 sps:$4 sm:$0xff]   ;;  %v6316_v17 = vld [vmem:[%s7681_s3 + $0x70] ss:$40 sps:$4 sm:$0xff]  }
 0x12c   : > { %1667 = vmatprep.subr.bf16.mxu1 %v6279_v18  ;;  %1697 = vmatprep.mubr.bf16.mxu1 %v7728_v19  ;;  %v6324_v18 = vld [vmem:[%s7681_s3 + $0x24] ss:$40 sps:$4 sm:$0xff]  }
 0x12e   : > { %1627 = vmatpush1.bf16.msra.mxu0 %v6196_v3  ;;  %v6294_v3 = vld [vmem:[%s7681_s3 + $0x1b4] ss:$40 sps:$4 sm:$0xff]  }
 0x12f   : > { %1628 = vmatprep.subr.bf16.mxu0 %v6204_v4  ;;  %1668 = vmatpush1.bf16.msra.mxu1 %v6277_v22  ;;  %v6351_v4 = vld [vmem:[%s7681_s3 + $0x33c] ss:$40 sps:$4 sm:$0xff]   ;;  %v6328_v22 = vld [vmem:[%s7681_s3 + $0x4d0] ss:$40 sps:$4 sm:$0xff]  }
 0x130   : > { %1669 = vmatprep.subr.bf16.mxu1 %v6285_v23  ;;  %v6336_v23 = vld [vmem:[%s7681_s3 + $0x484] ss:$40 sps:$4 sm:$0xff]  }
 0x132   : > { %1629 = vmatpush1.bf16.msra.mxu0 %v6202_v7  ;;  %v6300_v7 = vld [vmem:[%s7681_s3 + $0x164] ss:$40 sps:$4 sm:$0xff]  }
 0x133   : > { %1630 = vmatprep.subr.bf16.mxu0 %v6210_v8  ;;  %1670 = vmatpush1.bf16.msra.mxu1 %v6283_v26  ;;  %v6357_v8 = vld [vmem:[%s7681_s3 + $0x2ec] ss:$40 sps:$4 sm:$0xff]   ;;  %v6340_v26 = vld [vmem:[%s7681_s3 + $0x430] ss:$40 sps:$4 sm:$0xff]  }
 0x134   : > { %1671 = vmatprep.subr.bf16.mxu1 %v6291_v27  ;;  %v6348_v27 = vld [vmem:[%s7681_s3 + $0x3e4] ss:$40 sps:$4 sm:$0xff]  }
 0x136   : > { %1631 = vmatpush1.bf16.msra.mxu0 %v6208_v11  ;;  %v6363_v11 = vld [vmem:[%s7681_s3 + $0x29c] ss:$40 sps:$4 sm:$0xff]  }
 0x137   : > { %1632 = vmatprep.subr.bf16.mxu0 %v6216_v12  ;;  %1672 = vmatpush1.bf16.msra.mxu1 %v6289_v30  ;;  %v6304_v12 = vld [vmem:[%s7681_s3 + $0x110] ss:$40 sps:$4 sm:$0xff]  }
 0x138   : > { %1673 = vmatprep.subr.bf16.mxu1 %v6297_v31  ;;  %v6352_v30 = vld [vmem:[%s7681_s3 + $0x390] ss:$40 sps:$4 sm:$0xff]   ;;  %v6360_v31 = vld [vmem:[%s7681_s3 + $0x344] ss:$40 sps:$4 sm:$0xff]  }
 0x13a   : > { %1633 = vmatpush1.bf16.msra.mxu0 %v6214_v15  ;;  %v6310_v15 = vld [vmem:[%s7681_s3 + $0xc0] ss:$40 sps:$4 sm:$0xff]  }
 0x13b   : > { %1634 = vmatprep.subr.bf16.mxu0 %v6222_v16  ;;  %1674 = vmatpush1.bf16.msra.mxu1 %v6295_v34  ;;  %v6318_v16 = vld [vmem:[%s7681_s3 + $0x74] ss:$40 sps:$4 sm:$0xff]   ;;  %v6364_v34 = vld [vmem:[%s7681_s3 + $0x2f0] ss:$40 sps:$4 sm:$0xff]  }
 0x13c   : > { %1675 = vmatprep.subr.bf16.mxu1 %v6303_v35  ;;  %v6369_v35 = vld [vmem:[%s7681_s3 + $0x2a4] ss:$40 sps:$4 sm:$0xff]  }
 0x13e   : > { %1635 = vmatpush1.bf16.msra.mxu0 %v6220_v20  ;;  %v6322_v20 = vld [vmem:[%s7681_s3 + $0x20] ss:$40 sps:$4 sm:$0xff]  }
 0x13f   : > { %1636 = vmatprep.subr.bf16.mxu0 %v6228_v21  ;;  %1676 = vmatpush1.bf16.msra.mxu1 %v6301_v38  ;;  %v6330_v21 = vld [vmem:[%s7681_s3 + $0x4d4] ss:$40 sps:$4 sm:$0xff]  }
 0x140   : > { %1677 = vmatprep.subr.bf16.mxu1 %v6309_v39  ;;  %v545_v39 = vld [vmem:[#allocation2 + $0x38] sm:$0xff] }
 0x142   : > { %1637 = vmatpush1.bf16.msra.mxu0 %v6226_v24  ;;  %v6334_v24 = vld [vmem:[%s7681_s3 + $0x480] ss:$40 sps:$4 sm:$0xff]  }
 0x143   : > { %1638 = vmatprep.subr.bf16.mxu0 %v6234_v25  ;;  %1678 = vmatpush1.bf16.msra.mxu1 %v6307_v41  ;;  %v6342_v25 = vld [vmem:[%s7681_s3 + $0x434] ss:$40 sps:$4 sm:$0xff]  }
 0x144   : > { %1679 = vmatprep.subr.bf16.mxu1 %v6315_v43 }
 0x146   : > { %1639 = vmatpush2.bf16.msra.mxu0 %v6232_v28  ;;  %v6346_v28 = vld [vmem:[%s7681_s3 + $0x3e0] ss:$40 sps:$4 sm:$0xff]  }
 0x147   : > { %1640 = vmatprep.subr.bf16.mxu0 %v6240_v29  ;;  %1680 = vmatpush1.bf16.msra.mxu1 %v6313_v45  ;;  %v6354_v29 = vld [vmem:[%s7681_s3 + $0x394] ss:$40 sps:$4 sm:$0xff]   ;;  %v555_v45 = vld [vmem:[#allocation2 + $0x40] sm:$0xff] }
 0x148   : > { %1681 = vmatprep.subr.bf16.mxu1 %v6321_v47 }
 0x14a   : > { %1641 = vmatpush2.bf16.msra.mxu0 %v6238_v32  ;;  %v6358_v32 = vld [vmem:[%s7681_s3 + $0x340] ss:$40 sps:$4 sm:$0xff]  }
 0x14b   : > { %1642 = vmatprep.subr.bf16.mxu0 %v6246_v33  ;;  %1682 = vmatpush2.bf16.msra.mxu1 %v6319_v49  ;;  %v6366_v33 = vld [vmem:[%s7681_s3 + $0x2f4] ss:$40 sps:$4 sm:$0xff]  }
 0x14c   : > { %1683 = vmatprep.subr.bf16.mxu1 %v6327_v51  ;;  %v546_v49 = vld [vmem:[#allocation2 + $0x50] sm:$0xff]  ;;  %v547_v51 = vld [vmem:[#allocation2 + $0x18] sm:$0xff] }
 0x14e   : > { %1643 = vmatpush2.bf16.msra.mxu0 %v6244_v36  ;;  %v6367_v36 = vld [vmem:[%s7681_s3 + $0x2a0] ss:$40 sps:$4 sm:$0xff]  }
 0x14f   : > { %1644 = vmatprep.subr.bf16.mxu0 %v6252_v37  ;;  %1684 = vmatpush2.bf16.msra.mxu1 %v6325_v53  ;;  %v544_v37 = vld [vmem:[#allocation2] sm:$0xff]  ;;  %v556_v53 = vld [vmem:[#allocation2 + $0x58] sm:$0xff] }
 0x150   : > { %1685 = vmatprep.subr.bf16.mxu1 %v6333_v55 }
 0x152   : > { %1645 = vmatpush2.bf16.msra.mxu0 %v6250_v40 }
 0x153   : > { %1646 = vmatprep.subr.bf16.mxu0 %v6258_v42  ;;  %1686 = vmatpush2.bf16.msra.mxu1 %v6331_v57  ;;  %v554_v42 = vld [vmem:[#allocation2 + $0x28] sm:$0xff] }
 0x154   : > { %1687 = vmatprep.subr.bf16.mxu1 %v6339_v60 }
 0x156   : > { %1647 = vmatpush2.bf16.msra.mxu0 %v6256_v44 }
 0x157   : > { %1648 = vmatprep.subr.bf16.mxu0 %v6264_v46  ;;  %1688 = vmatpush2.bf16.msra.mxu1 %v6337_v62 }
 0x158   : > { %1689 = vmatprep.subr.bf16.mxu1 %v6345_v0 }
 0x15a   : > { %1649 = vmatpush2.bf16.msra.mxu0 %v6262_v48 }
 0x15b   : > { %1650 = vmatprep.subr.bf16.mxu0 %v6270_v50  ;;  %1690 = vmatpush2.bf16.msra.mxu1 %v6343_v2  ;;  %v558_v2 = vld [vmem:[#allocation2 + $0x98] sm:$0xff] }
 0x15c   : > { %1691 = vmatprep.subr.bf16.mxu1 %v6351_v4 }
 0x15e   : > { %1651 = vmatpush2.bf16.msra.mxu0 %v6268_v52 }
 0x15f   : > { %1652 = vmatprep.subr.bf16.mxu0 %v6276_v54  ;;  %1692 = vmatpush2.bf16.msra.mxu1 %v6349_v6 }
 0x160   : > { %1693 = vmatprep.subr.bf16.mxu1 %v6357_v8 }
 0x162   : > { %1653 = vmatpush2.bf16.msra.mxu0 %v6274_v56  ;;  %v557_v56 = vld [vmem:[#allocation2 + $0x10] sm:$0xff] }
 0x163   : > { %1708 = vmatprep.subr.bf16.mxu0 %v6282_v59  ;;  %1694 = vmatpush2.bf16.msra.mxu1 %v6355_v10 }
 0x164   : > { %1695 = vmatprep.subr.bf16.mxu1 %v6363_v11 }
 0x165   : > { %1655 = vmatmul.mubr.bf16.vlgmr.msra.gmra.mxu0 %v7771_v58 }
 0x166   : > { %1709 = vmatpush1.bf16.msra.mxu0 %v6280_v61  ;;  %1740 = vmatprep.mubr.bf16.mxu0 %v7728_v19  ;;  %v6306_v19 = vld [vmem:[%s7681_s3 + $0x114] ss:$40 sps:$4 sm:$0xff]  }
 0x167   : > { %1710 = vmatprep.subr.bf16.mxu0 %v6288_v63  ;;  %1696 = vmatpush2.bf16.msra.mxu1 %v6361_v13  ;;  %v548_v61 = vld [vmem:[#allocation2 + $0x30] sm:$0xff]  ;;  %v549_v63 = vld [vmem:[#allocation2 + $0x68] sm:$0xff]  ;;  %v560_v13 = vld [vmem:[#allocation2 + $0x20] sm:$0xff] }
 0x16a   : > { %1711 = vmatpush1.bf16.msra.mxu0 %v6286_v1  ;;  %1698 = vmatmul.mubr.bf16.vlgmr.msra.gmra.mxu1 %v7771_v58 }
 0x16b   : > { %1712 = vmatprep.subr.bf16.mxu0 %v6294_v3 }
 0x16e   : > { %1713 = vmatpush1.bf16.msra.mxu0 %v6292_v5  ;;  %v559_v5 = vld [vmem:[#allocation2 + $0x60] sm:$0xff] }
 0x16f   : > { %1714 = vmatprep.subr.bf16.mxu0 %v6300_v7 }
 0x172   : > { %1715 = vmatpush1.bf16.msra.mxu0 %v6298_v9  ;;  %v550_v9 = vld [vmem:[#allocation2 + $0x78] sm:$0xff] }
 0x173   : > { %1716 = vmatprep.subr.bf16.mxu0 %v6306_v19  ;;  %v551_v19 = vld [vmem:[#allocation2 + $0x80] sm:$0xff] }
 0x176   : > { %1717 = vmatpush1.bf16.msra.mxu0 %v6304_v12 }
 0x177   : > { %1718 = vmatprep.subr.bf16.mxu0 %v6312_v14 }
 0x17a   : > { %1719 = vmatpush1.bf16.msra.mxu0 %v6310_v15 }
 0x17b   : > { %1720 = vmatprep.subr.bf16.mxu0 %v6318_v16  ;;  %v561_v16 = vld [vmem:[#allocation2 + $0x48] sm:$0xff] }
 0x17e   : > { %1721 = vmatpush1.bf16.msra.mxu0 %v6316_v17 }
 0x17f   : > { %1722 = vmatprep.subr.bf16.mxu0 %v6324_v18 }
 0x182   : > { %1723 = vmatpush1.bf16.msra.mxu0 %v6322_v20 }
 0x183   : > { %1724 = vmatprep.subr.bf16.mxu0 %v6330_v21  ;;  %v552_v21 = vld [vmem:[#allocation2 + $0x8] sm:$0xff] }
 0x186   : > { %1725 = vmatpush2.bf16.msra.mxu0 %v6328_v22 }
 0x187   : > { %1726 = vmatprep.subr.bf16.mxu0 %v6336_v23  ;;  %v553_v23 = vld [vmem:[#allocation2 + $0x88] sm:$0xff] }
 0x18a   : > { %1727 = vmatpush2.bf16.msra.mxu0 %v6334_v24 }
 0x18b   : > { %1728 = vmatprep.subr.bf16.mxu0 %v6342_v25 }
 0x18e   : > { %1729 = vmatpush2.bf16.msra.mxu0 %v6340_v26  ;;  %v562_v26 = vld [vmem:[#allocation2 + $0x70] sm:$0xff] }
 0x18f   : > { %1730 = vmatprep.subr.bf16.mxu0 %v6348_v27 }
 0x192   : > { %1731 = vmatpush2.bf16.msra.mxu0 %v6346_v28 }
 0x193   : > { %1732 = vmatprep.subr.bf16.mxu0 %v6354_v29  ;;  %v563_v29 = vld [vmem:[#allocation2 + $0x90] sm:$0xff] }
 0x196   : > { %1733 = vmatpush2.bf16.msra.mxu0 %v6352_v30 }
 0x197   : > { %1734 = vmatprep.subr.bf16.mxu0 %v6360_v31 }
 0x19a   : > { %1735 = vmatpush2.bf16.msra.mxu0 %v6358_v32 }
 0x19b   : > { %1736 = vmatprep.subr.bf16.mxu0 %v6366_v33 }
 0x19e   : > { %1737 = vmatpush2.bf16.msra.mxu0 %v6364_v34 }
 0x19f   : > { %1738 = vmatprep.subr.bf16.mxu0 %v6369_v35 }
 0x1a2   : > { %1739 = vmatpush2.bf16.msra.mxu0 %v6367_v36 }
 0x1a5   : > { %1741 = vmatmul.mubr.bf16.vlgmr.msra.gmra.mxu0 %v7771_v58 }
 0x1e5   : > { %v1570_v38 = vpop.f32.mrf.mxu0 }
 0x1e6   : > { %v1751_v40 = vadd.f32 %v1570_v38, %v544_v37 }
 0x1e7   : > { %v1572_v41 = vpop.f32.mrf.mxu0 }
 0x1e8   : > { %1771 = vst [vmem:[#allocation2] sm:$0xff] %v1751_v40  ;;  %v1752_v43 = vadd.f32 %v1572_v41, %v545_v39 }
 0x1e9   : > { %v1574_v44 = vpop.f32.mrf.mxu0 }
 0x1ea   : > { %1772 = vst [vmem:[#allocation2 + $0x38] sm:$0xff] %v1752_v43  ;;  %v1761_v46 = vadd.f32 %v1574_v44, %v554_v42  ;;  %v1613_v50 = vpop.f32.mrf.mxu1 }
 0x1eb   : > { %v1576_v47 = vpop.f32.mrf.mxu0  ;;  %v1753_v58 = vadd.f32 %v1613_v50, %v546_v49 }
 0x1ec   : > { %1781 = vst [vmem:[#allocation2 + $0x28] sm:$0xff] %v1761_v46  ;;  %v1762_v48 = vadd.f32 %v1576_v47, %v555_v45  ;;  %v1615_v52 = vpop.f32.mrf.mxu1 }
 0x1ed   : > { %1773 = vst [vmem:[#allocation2 + $0x50] sm:$0xff] %v1753_v58  ;;  %v1754_v54 = vadd.f32 %v1615_v52, %v547_v51 }
 0x1ee   : > { %1782 = vst [vmem:[#allocation2 + $0x40] sm:$0xff] %v1762_v48  ;;  %v1617_v55 = vpop.f32.mrf.mxu1 }
 0x1ef   : > { %1774 = vst [vmem:[#allocation2 + $0x18] sm:$0xff] %v1754_v54  ;;  %v1763_v57 = vadd.f32 %v1617_v55, %v556_v53 }
 0x1f0   : > { %v1619_v59 = vpop.f32.mrf.mxu1 }
 0x1f1   : > { %1783 = vst [vmem:[#allocation2 + $0x58] sm:$0xff] %v1763_v57  ;;  %v1764_v60 = vadd.f32 %v1619_v59, %v557_v56 }
 0x1f3   : > { %1784 = vst [vmem:[#allocation2 + $0x10] sm:$0xff] %v1764_v60 }
 0x225   : > { %v1656_v62 = vpop.f32.mrf.mxu0 }
 0x226   : > { %v1755_v0 = vadd.f32 %v1656_v62, %v548_v61 }
 0x227   : > { %v1658_v1 = vpop.f32.mrf.mxu0 }
 0x228   : > { %1775 = vst [vmem:[#allocation2 + $0x30] sm:$0xff] %v1755_v0  ;;  %v1756_v3 = vadd.f32 %v1658_v1, %v549_v63 }
 0x229   : > { %v1660_v4 = vpop.f32.mrf.mxu0 }
 0x22a   : > { %1776 = vst [vmem:[#allocation2 + $0x68] sm:$0xff] %v1756_v3  ;;  %v1765_v6 = vadd.f32 %v1660_v4, %v558_v2  ;;  %v1699_v10 = vpop.f32.mrf.mxu1 }
 0x22b   : > { %v1662_v7 = vpop.f32.mrf.mxu0  ;;  %v1757_v11 = vadd.f32 %v1699_v10, %v550_v9 }
 0x22c   : > { %1785 = vst [vmem:[#allocation2 + $0x98] sm:$0xff] %v1765_v6  ;;  %v1766_v8 = vadd.f32 %v1662_v7, %v559_v5  ;;  %v1701_v12 = vpop.f32.mrf.mxu1 }
 0x22d   : > { %1777 = vst [vmem:[#allocation2 + $0x78] sm:$0xff] %v1757_v11  ;;  %v1758_v14 = vadd.f32 %v1701_v12, %v551_v19 }
 0x22e   : > { %1786 = vst [vmem:[#allocation2 + $0x60] sm:$0xff] %v1766_v8  ;;  %v1703_v15 = vpop.f32.mrf.mxu1 }
 0x22f   : > { %1778 = vst [vmem:[#allocation2 + $0x80] sm:$0xff] %v1758_v14  ;;  %v1767_v17 = vadd.f32 %v1703_v15, %v560_v13 }
 0x230   : > { %v1705_v18 = vpop.f32.mrf.mxu1 }
 0x231   : > { %1787 = vst [vmem:[#allocation2 + $0x20] sm:$0xff] %v1767_v17  ;;  %v1768_v20 = vadd.f32 %v1705_v18, %v561_v16 }
 0x233   : > { %1788 = vst [vmem:[#allocation2 + $0x48] sm:$0xff] %v1768_v20 }
 0x265   : > { %v1742_v22 = vpop.f32.mrf.mxu0 }
 0x266   : > { %v1759_v24 = vadd.f32 %v1742_v22, %v552_v21 }
 0x267   : > { %v1744_v25 = vpop.f32.mrf.mxu0 }
 0x268   : > { %1779 = vst [vmem:[#allocation2 + $0x8] sm:$0xff] %v1759_v24  ;;  %v1760_v27 = vadd.f32 %v1744_v25, %v553_v23 }
 0x269   : > { %v1746_v28 = vpop.f32.mrf.mxu0 }
 0x26a   : > { %1780 = vst [vmem:[#allocation2 + $0x88] sm:$0xff] %v1760_v27  ;;  %v1769_v30 = vadd.f32 %v1746_v28, %v562_v26  ;;  %1794 = sbr.rel (%p5517_p7) target bundleno = 1597 (0x63d), region = 108 }
 0x26b   : > { %v1748_v31 = vpop.f32.mrf.mxu0 }
 0x26c   : > { %1789 = vst [vmem:[#allocation2 + $0x70] sm:$0xff] %v1769_v30  ;;  %v1770_v32 = vadd.f32 %v1748_v31, %v563_v29 }
 0x26e   : > { %1790 = vst [vmem:[#allocation2 + $0x90] sm:$0xff] %v1770_v32 }
 0x26f   : > { %v6370_v33 = vld [vmem:[#allocation11 + $0xe4] ss:$16 sps:$4 sm:$0xff]   ;;  %v6372_v34 = vld [vmem:[#allocation11 + $0xec] ss:$16 sps:$4 sm:$0xff]   ;;  %v7383_v35 = vmov 0  }
 0x270   : > { %2377 = vmatprep.mubr.bf16.mxu0 %v7383_v35  ;;  %2420 = vmatprep.mubr.bf16.mxu1 %v7383_v35  ;;  %v6374_v36 = vld [vmem:[#allocation11 + $0xe0] ss:$16 sps:$4 sm:$0xff]   ;;  %v6375_v37 = vld [vmem:[#allocation11 + $0xe8] ss:$16 sps:$4 sm:$0xff]   ;;  %v6376_v38 = vld [vmem:[#allocation11 + $0xc4] ss:$16 sps:$4 sm:$0xff]  }
 0x271   : > { %2345 = vmatprep.subr.bf16.mxu0 %v6370_v33  ;;  %2388 = vmatprep.subr.bf16.mxu1 %v6372_v34  ;;  %v6378_v39 = vld [vmem:[#allocation11 + $0xcc] ss:$16 sps:$4 sm:$0xff]   ;;  %v6380_v40 = vld [vmem:[#allocation11 + $0xc0] ss:$16 sps:$4 sm:$0xff]   ;;  %v6381_v41 = vld [vmem:[#allocation11 + $0xc8] ss:$16 sps:$4 sm:$0xff]  }
 0x272   : > { %2346 = vmatpush1.bf16.msra.mxu0 %v6374_v36  ;;  %2389 = vmatpush1.bf16.msra.mxu1 %v6375_v37  ;;  %v6382_v42 = vld [vmem:[#allocation11 + $0xa4] ss:$16 sps:$4 sm:$0xff]   ;;  %v6384_v43 = vld [vmem:[#allocation11 + $0xac] ss:$16 sps:$4 sm:$0xff]   ;;  %v6386_v44 = vld [vmem:[#allocation11 + $0xa0] ss:$16 sps:$4 sm:$0xff]  }
 0x273   : > { %2347 = vmatprep.subr.bf16.mxu0 %v6376_v38  ;;  %2390 = vmatprep.subr.bf16.mxu1 %v6378_v39  ;;  %v6387_v45 = vld [vmem:[#allocation11 + $0xa8] ss:$16 sps:$4 sm:$0xff]   ;;  %v6388_v46 = vld [vmem:[#allocation11 + $0x84] ss:$16 sps:$4 sm:$0xff]   ;;  %v6390_v47 = vld [vmem:[#allocation11 + $0x8c] ss:$16 sps:$4 sm:$0xff]  }
 0x274   : > { %v6392_v48 = vld [vmem:[#allocation11 + $0x80] ss:$16 sps:$4 sm:$0xff]   ;;  %v6393_v49 = vld [vmem:[#allocation11 + $0x88] ss:$16 sps:$4 sm:$0xff]   ;;  %v6394_v50 = vld [vmem:[#allocation11 + $0x64] ss:$16 sps:$4 sm:$0xff]  }
 0x275   : > { %v6396_v51 = vld [vmem:[#allocation11 + $0x6c] ss:$16 sps:$4 sm:$0xff]   ;;  %v6398_v58 = vld [vmem:[#allocation11 + $0x60] ss:$16 sps:$4 sm:$0xff]   ;;  %v6399_v52 = vld [vmem:[#allocation11 + $0x68] ss:$16 sps:$4 sm:$0xff]  }
 0x276   : > { %2348 = vmatpush1.bf16.msra.mxu0 %v6380_v40  ;;  %2391 = vmatpush1.bf16.msra.mxu1 %v6381_v41  ;;  %v6400_v53 = vld [vmem:[#allocation11 + $0x44] ss:$16 sps:$4 sm:$0xff]   ;;  %v6402_v54 = vld [vmem:[#allocation11 + $0x4c] ss:$16 sps:$4 sm:$0xff]   ;;  %v6404_v55 = vld [vmem:[#allocation11 + $0x40] ss:$16 sps:$4 sm:$0xff]  }
 0x277   : > { %2349 = vmatprep.subr.bf16.mxu0 %v6382_v42  ;;  %2392 = vmatprep.subr.bf16.mxu1 %v6384_v43  ;;  %v6405_v56 = vld [vmem:[#allocation11 + $0x48] ss:$16 sps:$4 sm:$0xff]   ;;  %v6406_v57 = vld [vmem:[#allocation11 + $0x24] ss:$16 sps:$4 sm:$0xff]   ;;  %v6408_v59 = vld [vmem:[#allocation11 + $0x2c] ss:$16 sps:$4 sm:$0xff]  }
 0x278   : > { %v6410_v60 = vld [vmem:[#allocation11 + $0x20] ss:$16 sps:$4 sm:$0xff]   ;;  %v6411_v61 = vld [vmem:[#allocation11 + $0x28] ss:$16 sps:$4 sm:$0xff]   ;;  %v6412_v62 = vld [vmem:[#allocation11 + $0x4] ss:$16 sps:$4 sm:$0xff]  }
 0x279   : > { %v6414_v63 = vld [vmem:[#allocation11 + $0xc] ss:$16 sps:$4 sm:$0xff]   ;;  %v6416_v0 = vld [vmem:[#allocation11] ss:$16 sps:$4 sm:$0xff]   ;;  %v6417_v1 = vld [vmem:[#allocation11 + $0x8] ss:$16 sps:$4 sm:$0xff]  }
 0x27a   : > { %2350 = vmatpush1.bf16.msra.mxu0 %v6386_v44  ;;  %2393 = vmatpush1.bf16.msra.mxu1 %v6387_v45  ;;  %v6421_v2 = vld [vmem:[#allocation9 + $0xe4] ss:$16 sps:$4 sm:$0xff]   ;;  %v6418_v4 = vld [vmem:[#allocation8] sm:$0xff]   ;;  %v6419_v5 = vld [vmem:[#allocation9 + $0xe0] ss:$16 sps:$4 sm:$0xff]  }
 0x27b   : > { %2351 = vmatprep.subr.bf16.mxu0 %v6388_v46  ;;  %2394 = vmatprep.subr.bf16.mxu1 %v6390_v47  ;;  %v6424_v3 = vld [vmem:[#allocation9 + $0x2e4] ss:$16 sps:$4 sm:$0xff]   ;;  %v6422_v6 = vld [vmem:[#allocation9 + $0x2e0] ss:$16 sps:$4 sm:$0xff]   ;;  %v1806_v42 = vld [vmem:[#allocation2 + $0x40] sm:$0xff] }
 0x27c   : > { %v6427_v7 = vld [vmem:[#allocation9 + $0xc4] ss:$16 sps:$4 sm:$0xff]   ;;  %v6425_v9 = vld [vmem:[#allocation9 + $0xc0] ss:$16 sps:$4 sm:$0xff]   ;;  %v1808_v45 = vld [vmem:[#allocation2 + $0x10] sm:$0xff] }
 0x27d   : > { %v6430_v8 = vld [vmem:[#allocation9 + $0x2c4] ss:$16 sps:$4 sm:$0xff]   ;;  %v6428_v10 = vld [vmem:[#allocation9 + $0x2c0] ss:$16 sps:$4 sm:$0xff]  }
 0x27e   : > { %2352 = vmatpush1.bf16.msra.mxu0 %v6392_v48  ;;  %2395 = vmatpush1.bf16.msra.mxu1 %v6393_v49  ;;  %v6433_v19 = vld [vmem:[#allocation9 + $0xa4] ss:$16 sps:$4 sm:$0xff]   ;;  %v6431_v12 = vld [vmem:[#allocation9 + $0xa0] ss:$16 sps:$4 sm:$0xff]  }
 0x27f   : > { %2353 = vmatprep.subr.bf16.mxu0 %v6394_v50  ;;  %2396 = vmatprep.subr.bf16.mxu1 %v6396_v51  ;;  %v6436_v11 = vld [vmem:[#allocation9 + $0x2a4] ss:$16 sps:$4 sm:$0xff]   ;;  %v6434_v13 = vld [vmem:[#allocation9 + $0x2a0] ss:$16 sps:$4 sm:$0xff]  }
 0x280   : > { %v6439_v14 = vld [vmem:[#allocation9 + $0x84] ss:$16 sps:$4 sm:$0xff]   ;;  %v6437_v16 = vld [vmem:[#allocation9 + $0x80] ss:$16 sps:$4 sm:$0xff]  }
 0x281   : > { %v6442_v15 = vld [vmem:[#allocation9 + $0x284] ss:$16 sps:$4 sm:$0xff]   ;;  %v6440_v17 = vld [vmem:[#allocation9 + $0x280] ss:$16 sps:$4 sm:$0xff]  }
 0x282   : > { %2354 = vmatpush1.bf16.msra.mxu0 %v6398_v58  ;;  %2397 = vmatpush1.bf16.msra.mxu1 %v6399_v52  ;;  %v6445_v18 = vld [vmem:[#allocation9 + $0x64] ss:$16 sps:$4 sm:$0xff]   ;;  %v6443_v21 = vld [vmem:[#allocation9 + $0x60] ss:$16 sps:$4 sm:$0xff]  }
 0x283   : > { %2355 = vmatprep.subr.bf16.mxu0 %v6400_v53  ;;  %2398 = vmatprep.subr.bf16.mxu1 %v6402_v54  ;;  %v6448_v20 = vld [vmem:[#allocation9 + $0x264] ss:$16 sps:$4 sm:$0xff]   ;;  %v6446_v22 = vld [vmem:[#allocation9 + $0x260] ss:$16 sps:$4 sm:$0xff]  }
 0x284   : > { %v6451_v23 = vld [vmem:[#allocation9 + $0x44] ss:$16 sps:$4 sm:$0xff]   ;;  %v6449_v25 = vld [vmem:[#allocation9 + $0x40] ss:$16 sps:$4 sm:$0xff]  }
 0x285   : > { %v6454_v24 = vld [vmem:[#allocation9 + $0x244] ss:$16 sps:$4 sm:$0xff]   ;;  %v6452_v26 = vld [vmem:[#allocation9 + $0x240] ss:$16 sps:$4 sm:$0xff]  }
 0x286   : > { %2356 = vmatpush1.bf16.msra.mxu0 %v6404_v55  ;;  %2399 = vmatpush1.bf16.msra.mxu1 %v6405_v56  ;;  %v6457_v27 = vld [vmem:[#allocation9 + $0x24] ss:$16 sps:$4 sm:$0xff]   ;;  %v6455_v29 = vld [vmem:[#allocation9 + $0x20] ss:$16 sps:$4 sm:$0xff]  }
 0x287   : > { %2357 = vmatprep.subr.bf16.mxu0 %v6406_v57  ;;  %2400 = vmatprep.subr.bf16.mxu1 %v6408_v59  ;;  %v6460_v28 = vld [vmem:[#allocation9 + $0x224] ss:$16 sps:$4 sm:$0xff]   ;;  %v6458_v30 = vld [vmem:[#allocation9 + $0x220] ss:$16 sps:$4 sm:$0xff]  }
 0x288   : > { %v6463_v31 = vld [vmem:[#allocation9 + $0x4] ss:$16 sps:$4 sm:$0xff]   ;;  %v6461_v33 = vld [vmem:[#allocation9] ss:$16 sps:$4 sm:$0xff]  }
 0x289   : > { %v6466_v32 = vld [vmem:[#allocation9 + $0x204] ss:$16 sps:$4 sm:$0xff]   ;;  %v6464_v34 = vld [vmem:[#allocation9 + $0x200] ss:$16 sps:$4 sm:$0xff]  }
 0x28a   : > { %2358 = vmatpush1.bf16.msra.mxu0 %v6410_v60  ;;  %2401 = vmatpush1.bf16.msra.mxu1 %v6411_v61  ;;  %v6469_v35 = vld [vmem:[#allocation9 + $0x1e4] ss:$16 sps:$4 sm:$0xff]   ;;  %v6467_v37 = vld [vmem:[#allocation9 + $0x1e0] ss:$16 sps:$4 sm:$0xff]  }
 0x28b   : > { %2359 = vmatprep.subr.bf16.mxu0 %v6412_v62  ;;  %2402 = vmatprep.subr.bf16.mxu1 %v6414_v63  ;;  %v6472_v36 = vld [vmem:[#allocation9 + $0x3e4] ss:$16 sps:$4 sm:$0xff]   ;;  %v6470_v38 = vld [vmem:[#allocation9 + $0x3e0] ss:$16 sps:$4 sm:$0xff]  }
 0x28c   : > { %v6475_v39 = vld [vmem:[#allocation9 + $0x1c4] ss:$16 sps:$4 sm:$0xff]   ;;  %v6473_v46 = vld [vmem:[#allocation9 + $0x1c0] ss:$16 sps:$4 sm:$0xff]  }
 0x28d   : > { %v6478_v40 = vld [vmem:[#allocation9 + $0x3c4] ss:$16 sps:$4 sm:$0xff]   ;;  %v6476_v48 = vld [vmem:[#allocation9 + $0x3c0] ss:$16 sps:$4 sm:$0xff]  }
 0x28e   : > { %2360 = vmatpush1.bf16.msra.mxu0 %v6416_v0  ;;  %2403 = vmatpush1.bf16.msra.mxu1 %v6417_v1  ;;  %v1796_v41 = vld [vmem:[#allocation2 + $0x38] sm:$0xff] }
 0x28f   : > { %4031 = vmatprep.subr.bf16.mxu0 %v6421_v2  ;;  %4074 = vmatprep.subr.bf16.mxu1 %v6424_v3  ;;  %v1798_v43 = vld [vmem:[#allocation2 + $0x18] sm:$0xff]  ;;  %v7886_v44 = vpack.c.bf16 %v1806_v42, %v1796_v41 }
 0x290   : > { %v7888_v47 = vpack.c.bf16 %v1808_v45, %v1798_v43  ;;  %v6481_v49 = vld [vmem:[#allocation9 + $0x1a4] ss:$16 sps:$4 sm:$0xff]   ;;  %v6479_v51 = vld [vmem:[#allocation9 + $0x1a0] ss:$16 sps:$4 sm:$0xff]  }
 0x291   : > { %2378 = vmatmul.mubr.bf16.vlgmr.msra.gmra.mxu0 %v6418_v4  ;;  %2421 = vmatmul.mubr.bf16.vlgmr.msra.gmra.mxu1 %v6418_v4  ;;  %v6484_v50 = vld [vmem:[#allocation9 + $0x3a4] ss:$16 sps:$4 sm:$0xff]   ;;  %v6482_v58 = vld [vmem:[#allocation9 + $0x3a0] ss:$16 sps:$4 sm:$0xff]  }
 0x292   : > { %4032 = vmatpush1.bf16.msra.mxu0 %v6419_v5  ;;  %4075 = vmatpush1.bf16.msra.mxu1 %v6422_v6  ;;  %v6487_v52 = vld [vmem:[#allocation9 + $0x184] ss:$16 sps:$4 sm:$0xff]   ;;  %v6485_v54 = vld [vmem:[#allocation9 + $0x180] ss:$16 sps:$4 sm:$0xff]  }
 0x293   : > { %4033 = vmatprep.subr.bf16.mxu0 %v6427_v7  ;;  %4076 = vmatprep.subr.bf16.mxu1 %v6430_v8  ;;  %v6490_v53 = vld [vmem:[#allocation9 + $0x384] ss:$16 sps:$4 sm:$0xff]   ;;  %v6488_v55 = vld [vmem:[#allocation9 + $0x380] ss:$16 sps:$4 sm:$0xff]  }
 0x294   : > { %4063 = vmatprep.mubr.bf16.mxu0 %v7886_v44  ;;  %4106 = vmatprep.mubr.bf16.mxu1 %v7888_v47  ;;  %v6493_v56 = vld [vmem:[#allocation9 + $0x164] ss:$16 sps:$4 sm:$0xff]   ;;  %v6491_v59 = vld [vmem:[#allocation9 + $0x160] ss:$16 sps:$4 sm:$0xff]  }
 0x295   : > { %v6496_v57 = vld [vmem:[#allocation9 + $0x364] ss:$16 sps:$4 sm:$0xff]   ;;  %v6494_v60 = vld [vmem:[#allocation9 + $0x360] ss:$16 sps:$4 sm:$0xff]  }
 0x296   : > { %4034 = vmatpush1.bf16.msra.mxu0 %v6425_v9  ;;  %4077 = vmatpush1.bf16.msra.mxu1 %v6428_v10  ;;  %v6499_v61 = vld [vmem:[#allocation9 + $0x144] ss:$16 sps:$4 sm:$0xff]   ;;  %v6497_v63 = vld [vmem:[#allocation9 + $0x140] ss:$16 sps:$4 sm:$0xff]   ;;  %v1795_v9 = vld [vmem:[#allocation2] sm:$0xff] }
 0x297   : > { %4035 = vmatprep.subr.bf16.mxu0 %v6433_v19  ;;  %4078 = vmatprep.subr.bf16.mxu1 %v6436_v11  ;;  %v6502_v62 = vld [vmem:[#allocation9 + $0x344] ss:$16 sps:$4 sm:$0xff]   ;;  %v6500_v0 = vld [vmem:[#allocation9 + $0x340] ss:$16 sps:$4 sm:$0xff]   ;;  %v1797_v19 = vld [vmem:[#allocation2 + $0x50] sm:$0xff] }
 0x298   : > { %v6505_v1 = vld [vmem:[#allocation9 + $0x124] ss:$16 sps:$4 sm:$0xff]   ;;  %v6503_v3 = vld [vmem:[#allocation9 + $0x120] ss:$16 sps:$4 sm:$0xff]  }
 0x299   : > { %v6508_v2 = vld [vmem:[#allocation9 + $0x324] ss:$16 sps:$4 sm:$0xff]   ;;  %v6506_v4 = vld [vmem:[#allocation9 + $0x320] ss:$16 sps:$4 sm:$0xff]  }
 0x29a   : > { %4036 = vmatpush1.bf16.msra.mxu0 %v6431_v12  ;;  %4079 = vmatpush1.bf16.msra.mxu1 %v6434_v13  ;;  %v6511_v5 = vld [vmem:[#allocation9 + $0x104] ss:$16 sps:$4 sm:$0xff]   ;;  %v6509_v7 = vld [vmem:[#allocation9 + $0x100] ss:$16 sps:$4 sm:$0xff]  }
 0x29b   : > { %4037 = vmatprep.subr.bf16.mxu0 %v6439_v14  ;;  %4080 = vmatprep.subr.bf16.mxu1 %v6442_v15  ;;  %v6514_v6 = vld [vmem:[#allocation9 + $0x304] ss:$16 sps:$4 sm:$0xff]   ;;  %v6512_v8 = vld [vmem:[#allocation9 + $0x300] ss:$16 sps:$4 sm:$0xff]  }
 0x29c   : > { %v1805_v10 = vld [vmem:[#allocation2 + $0x28] sm:$0xff]  ;;  %v1807_v11 = vld [vmem:[#allocation2 + $0x58] sm:$0xff] }
 0x29d   : > { %v6517_v12 = vld [vmem:[#allocation9 + $0x4e4] ss:$16 sps:$4 sm:$0xff]   ;;  %v7892_v14 = vpack.c.bf16 %v1805_v10, %v1795_v9  ;;  %v7894_v15 = vpack.c.bf16 %v1807_v11, %v1797_v19  ;;  %v6545_v43 = vld [vmem:[#allocation9 + $0x440] ss:$16 sps:$4 sm:$0xff]  }
 0x29e   : > { %4038 = vmatpush1.bf16.msra.mxu0 %v6437_v16  ;;  %4081 = vmatpush1.bf16.msra.mxu1 %v6440_v17  ;;  %v6520_v13 = vld [vmem:[#allocation9 + $0x6e4] ss:$16 sps:$4 sm:$0xff]   ;;  %v6515_v16 = vld [vmem:[#allocation9 + $0x4e0] ss:$16 sps:$4 sm:$0xff]  }
 0x29f   : > { %4039 = vmatprep.subr.bf16.mxu0 %v6445_v18  ;;  %4082 = vmatprep.subr.bf16.mxu1 %v6448_v20  ;;  %v6518_v17 = vld [vmem:[#allocation9 + $0x6e0] ss:$16 sps:$4 sm:$0xff]   ;;  %v6523_v18 = vld [vmem:[#allocation9 + $0x4c4] ss:$16 sps:$4 sm:$0xff]  }
 0x2a0   : > { %v6526_v20 = vld [vmem:[#allocation9 + $0x6c4] ss:$16 sps:$4 sm:$0xff]   ;;  %v6548_v45 = vld [vmem:[#allocation9 + $0x640] ss:$16 sps:$4 sm:$0xff]  }
 0x2a1   : > { %v6550_v42 = vld [vmem:[#allocation9 + $0x644] ss:$16 sps:$4 sm:$0xff]   ;;  %v6587_v9 = vld [vmem:[#allocation9 + $0x560] ss:$16 sps:$4 sm:$0xff]  }
 0x2a2   : > { %4040 = vmatpush1.bf16.msra.mxu0 %v6443_v21  ;;  %4083 = vmatpush1.bf16.msra.mxu1 %v6446_v22  ;;  %v6521_v21 = vld [vmem:[#allocation9 + $0x4c0] ss:$16 sps:$4 sm:$0xff]   ;;  %v6595_v19 = vld [vmem:[#allocation9 + $0x544] ss:$16 sps:$4 sm:$0xff]  }
 0x2a3   : > { %4041 = vmatprep.subr.bf16.mxu0 %v6451_v23  ;;  %4084 = vmatprep.subr.bf16.mxu1 %v6454_v24  ;;  %v6524_v22 = vld [vmem:[#allocation9 + $0x6c0] ss:$16 sps:$4 sm:$0xff]   ;;  %v6529_v23 = vld [vmem:[#allocation9 + $0x4a4] ss:$16 sps:$4 sm:$0xff]  }
 0x2a4   : > { %v6532_v24 = vld [vmem:[#allocation9 + $0x6a4] ss:$16 sps:$4 sm:$0xff]   ;;  %v6590_v10 = vld [vmem:[#allocation9 + $0x760] ss:$16 sps:$4 sm:$0xff]  }
 0x2a5   : > { %v6598_v11 = vld [vmem:[#allocation9 + $0x744] ss:$16 sps:$4 sm:$0xff]  }
 0x2a6   : > { %4042 = vmatpush1.bf16.msra.mxu0 %v6449_v25  ;;  %4085 = vmatpush1.bf16.msra.mxu1 %v6452_v26  ;;  %v6527_v25 = vld [vmem:[#allocation9 + $0x4a0] ss:$16 sps:$4 sm:$0xff]  }
 0x2a7   : > { %4043 = vmatprep.subr.bf16.mxu0 %v6457_v27  ;;  %4086 = vmatprep.subr.bf16.mxu1 %v6460_v28  ;;  %v6530_v26 = vld [vmem:[#allocation9 + $0x6a0] ss:$16 sps:$4 sm:$0xff]   ;;  %v6535_v27 = vld [vmem:[#allocation9 + $0x484] ss:$16 sps:$4 sm:$0xff]  }
 0x2a8   : > { %v6538_v28 = vld [vmem:[#allocation9 + $0x684] ss:$16 sps:$4 sm:$0xff]  }
 0x2aa   : > { %4044 = vmatpush1.bf16.msra.mxu0 %v6455_v29  ;;  %4087 = vmatpush1.bf16.msra.mxu1 %v6458_v30  ;;  %v6533_v29 = vld [vmem:[#allocation9 + $0x480] ss:$16 sps:$4 sm:$0xff]  }
 0x2ab   : > { %4045 = vmatprep.subr.bf16.mxu0 %v6463_v31  ;;  %4088 = vmatprep.subr.bf16.mxu1 %v6466_v32  ;;  %v6536_v30 = vld [vmem:[#allocation9 + $0x680] ss:$16 sps:$4 sm:$0xff]   ;;  %v6541_v31 = vld [vmem:[#allocation9 + $0x464] ss:$16 sps:$4 sm:$0xff]  }
 0x2ac   : > { %v6544_v32 = vld [vmem:[#allocation9 + $0x664] ss:$16 sps:$4 sm:$0xff]  }
 0x2ae   : > { %4046 = vmatpush1.bf16.msra.mxu0 %v6461_v33  ;;  %4089 = vmatpush1.bf16.msra.mxu1 %v6464_v34  ;;  %v1800_v33 = vld [vmem:[#allocation2 + $0x68] sm:$0xff]  ;;  %v1810_v34 = vld [vmem:[#allocation2 + $0x60] sm:$0xff] }
 0x2af   : > { %4047 = vmatprep.subr.bf16.mxu0 %v6469_v35  ;;  %4090 = vmatprep.subr.bf16.mxu1 %v6472_v36  ;;  %v7898_v35 = vpack.c.bf16 %v1810_v34, %v1800_v33  ;;  %v1802_v36 = vld [vmem:[#allocation2 + $0x80] sm:$0xff]  ;;  %v1804_v34 = vld [vmem:[#allocation2 + $0x88] sm:$0xff] }
 0x2b2   : > { %4048 = vmatpush2.bf16.msra.mxu0 %v6467_v37  ;;  %4091 = vmatpush2.bf16.msra.mxu1 %v6470_v38  ;;  %v1812_v37 = vld [vmem:[#allocation2 + $0x48] sm:$0xff] }
 0x2b3   : > { %4049 = vmatprep.subr.bf16.mxu0 %v6475_v39  ;;  %4092 = vmatprep.subr.bf16.mxu1 %v6478_v40  ;;  %v6539_v38 = vld [vmem:[#allocation9 + $0x460] ss:$16 sps:$4 sm:$0xff]   ;;  %v6547_v40 = vld [vmem:[#allocation9 + $0x444] ss:$16 sps:$4 sm:$0xff]   ;;  %v7900_v41 = vpack.c.bf16 %v1812_v37, %v1802_v36  ;;  %v1814_v36 = vld [vmem:[#allocation2 + $0x90] sm:$0xff] }
 0x2b4   : > { %v6542_v39 = vld [vmem:[#allocation9 + $0x660] ss:$16 sps:$4 sm:$0xff]   ;;  %v6614_v37 = vld [vmem:[#allocation9 + $0xe8] ss:$16 sps:$4 sm:$0xff]  }
 0x2b6   : > { %4050 = vmatpush2.bf16.msra.mxu0 %v6473_v46  ;;  %4093 = vmatpush2.bf16.msra.mxu1 %v6476_v48  ;;  %v6553_v46 = vld [vmem:[#allocation9 + $0x424] ss:$16 sps:$4 sm:$0xff]  }
 0x2b7   : > { %4051 = vmatprep.subr.bf16.mxu0 %v6481_v49  ;;  %4094 = vmatprep.subr.bf16.mxu1 %v6484_v50  ;;  %v6556_v48 = vld [vmem:[#allocation9 + $0x624] ss:$16 sps:$4 sm:$0xff]   ;;  %v6551_v49 = vld [vmem:[#allocation9 + $0x420] ss:$16 sps:$4 sm:$0xff]  }
 0x2b8   : > { %v6554_v50 = vld [vmem:[#allocation9 + $0x620] ss:$16 sps:$4 sm:$0xff]  }
 0x2ba   : > { %4052 = vmatpush2.bf16.msra.mxu0 %v6479_v51  ;;  %4095 = vmatpush2.bf16.msra.mxu1 %v6482_v58  ;;  %v6559_v51 = vld [vmem:[#allocation9 + $0x404] ss:$16 sps:$4 sm:$0xff]  }
 0x2bb   : > { %4053 = vmatprep.subr.bf16.mxu0 %v6487_v52  ;;  %4096 = vmatprep.subr.bf16.mxu1 %v6490_v53  ;;  %v6562_v58 = vld [vmem:[#allocation9 + $0x604] ss:$16 sps:$4 sm:$0xff]   ;;  %v6557_v52 = vld [vmem:[#allocation9 + $0x400] ss:$16 sps:$4 sm:$0xff]  }
 0x2bc   : > { %v6560_v53 = vld [vmem:[#allocation9 + $0x600] ss:$16 sps:$4 sm:$0xff]  }
 0x2be   : > { %4054 = vmatpush2.bf16.msra.mxu0 %v6485_v54  ;;  %4097 = vmatpush2.bf16.msra.mxu1 %v6488_v55  ;;  %v6565_v54 = vld [vmem:[#allocation9 + $0x5e4] ss:$16 sps:$4 sm:$0xff]  }
 0x2bf   : > { %4055 = vmatprep.subr.bf16.mxu0 %v6493_v56  ;;  %4098 = vmatprep.subr.bf16.mxu1 %v6496_v57  ;;  %v6568_v55 = vld [vmem:[#allocation9 + $0x7e4] ss:$16 sps:$4 sm:$0xff]   ;;  %v6563_v56 = vld [vmem:[#allocation9 + $0x5e0] ss:$16 sps:$4 sm:$0xff]  }
 0x2c0   : > { %v6566_v57 = vld [vmem:[#allocation9 + $0x7e0] ss:$16 sps:$4 sm:$0xff]  }
 0x2c2   : > { %4056 = vmatpush2.bf16.msra.mxu0 %v6491_v59  ;;  %4099 = vmatpush2.bf16.msra.mxu1 %v6494_v60  ;;  %v6571_v59 = vld [vmem:[#allocation9 + $0x5c4] ss:$16 sps:$4 sm:$0xff]  }
 0x2c3   : > { %4057 = vmatprep.subr.bf16.mxu0 %v6499_v61  ;;  %4100 = vmatprep.subr.bf16.mxu1 %v6502_v62  ;;  %v6574_v60 = vld [vmem:[#allocation9 + $0x7c4] ss:$16 sps:$4 sm:$0xff]   ;;  %v6569_v61 = vld [vmem:[#allocation9 + $0x5c0] ss:$16 sps:$4 sm:$0xff]  }
 0x2c4   : > { %v6572_v62 = vld [vmem:[#allocation9 + $0x7c0] ss:$16 sps:$4 sm:$0xff]  }
 0x2c6   : > { %4058 = vmatpush2.bf16.msra.mxu0 %v6497_v63  ;;  %4101 = vmatpush2.bf16.msra.mxu1 %v6500_v0  ;;  %v6577_v63 = vld [vmem:[#allocation9 + $0x5a4] ss:$16 sps:$4 sm:$0xff]  }
 0x2c7   : > { %4059 = vmatprep.subr.bf16.mxu0 %v6505_v1  ;;  %4102 = vmatprep.subr.bf16.mxu1 %v6508_v2  ;;  %v6580_v0 = vld [vmem:[#allocation9 + $0x7a4] ss:$16 sps:$4 sm:$0xff]   ;;  %v6575_v1 = vld [vmem:[#allocation9 + $0x5a0] ss:$16 sps:$4 sm:$0xff]  }
 0x2c8   : > { %v6578_v2 = vld [vmem:[#allocation9 + $0x7a0] ss:$16 sps:$4 sm:$0xff]  }
 0x2ca   : > { %4060 = vmatpush2.bf16.msra.mxu0 %v6503_v3  ;;  %4103 = vmatpush2.bf16.msra.mxu1 %v6506_v4  ;;  %v6583_v3 = vld [vmem:[#allocation9 + $0x584] ss:$16 sps:$4 sm:$0xff]  }
 0x2cb   : > { %4061 = vmatprep.subr.bf16.mxu0 %v6511_v5  ;;  %4104 = vmatprep.subr.bf16.mxu1 %v6514_v6  ;;  %v6586_v4 = vld [vmem:[#allocation9 + $0x784] ss:$16 sps:$4 sm:$0xff]   ;;  %v6581_v5 = vld [vmem:[#allocation9 + $0x580] ss:$16 sps:$4 sm:$0xff]  }
 0x2cc   : > { %v6584_v6 = vld [vmem:[#allocation9 + $0x780] ss:$16 sps:$4 sm:$0xff]  }
 0x2ce   : > { %4062 = vmatpush2.bf16.msra.mxu0 %v6509_v7  ;;  %4105 = vmatpush2.bf16.msra.mxu1 %v6512_v8  ;;  %v6589_v7 = vld [vmem:[#allocation9 + $0x564] ss:$16 sps:$4 sm:$0xff]  }
 0x2cf   : > { %4117 = vmatprep.subr.bf16.mxu0 %v6517_v12  ;;  %4160 = vmatprep.subr.bf16.mxu1 %v6520_v13  ;;  %v6592_v8 = vld [vmem:[#allocation9 + $0x764] ss:$16 sps:$4 sm:$0xff]   ;;  %v6593_v12 = vld [vmem:[#allocation9 + $0x540] ss:$16 sps:$4 sm:$0xff]  }
 0x2d0   : > { %v6596_v13 = vld [vmem:[#allocation9 + $0x740] ss:$16 sps:$4 sm:$0xff]  }
 0x2d1   : > { %4064 = vmatmul.mubr.bf16.vlgmr.msra.gmra.mxu0 %v7892_v14  ;;  %4107 = vmatmul.mubr.bf16.vlgmr.msra.gmra.mxu1 %v7894_v15 }
 0x2d2   : > { %4118 = vmatpush1.bf16.msra.mxu0 %v6515_v16  ;;  %4161 = vmatpush1.bf16.msra.mxu1 %v6518_v17  ;;  %v6601_v16 = vld [vmem:[#allocation9 + $0x524] ss:$16 sps:$4 sm:$0xff]  }
 0x2d3   : > { %4119 = vmatprep.subr.bf16.mxu0 %v6523_v18  ;;  %4162 = vmatprep.subr.bf16.mxu1 %v6526_v20  ;;  %v6604_v17 = vld [vmem:[#allocation9 + $0x724] ss:$16 sps:$4 sm:$0xff]   ;;  %v6599_v18 = vld [vmem:[#allocation9 + $0x520] ss:$16 sps:$4 sm:$0xff]  }
 0x2d4   : > { %4149 = vmatprep.mubr.bf16.mxu0 %v7898_v35  ;;  %4192 = vmatprep.mubr.bf16.mxu1 %v7900_v41  ;;  %v6602_v20 = vld [vmem:[#allocation9 + $0x720] ss:$16 sps:$4 sm:$0xff]  }
 0x2d6   : > { %4120 = vmatpush1.bf16.msra.mxu0 %v6521_v21  ;;  %4163 = vmatpush1.bf16.msra.mxu1 %v6524_v22  ;;  %v6607_v21 = vld [vmem:[#allocation9 + $0x504] ss:$16 sps:$4 sm:$0xff]  }
 0x2d7   : > { %4121 = vmatprep.subr.bf16.mxu0 %v6529_v23  ;;  %4164 = vmatprep.subr.bf16.mxu1 %v6532_v24  ;;  %v6610_v22 = vld [vmem:[#allocation9 + $0x704] ss:$16 sps:$4 sm:$0xff]   ;;  %v6605_v23 = vld [vmem:[#allocation9 + $0x500] ss:$16 sps:$4 sm:$0xff]  }
 0x2d8   : > { %v6608_v24 = vld [vmem:[#allocation9 + $0x700] ss:$16 sps:$4 sm:$0xff]  }
 0x2da   : > { %4122 = vmatpush1.bf16.msra.mxu0 %v6527_v25  ;;  %4165 = vmatpush1.bf16.msra.mxu1 %v6530_v26  ;;  %v1799_v25 = vld [vmem:[#allocation2 + $0x30] sm:$0xff]  ;;  %v1809_v26 = vld [vmem:[#allocation2 + $0x98] sm:$0xff] }
 0x2db   : > { %4123 = vmatprep.subr.bf16.mxu0 %v6535_v27  ;;  %4166 = vmatprep.subr.bf16.mxu1 %v6538_v28  ;;  %v1801_v27 = vld [vmem:[#allocation2 + $0x78] sm:$0xff]  ;;  %v1811_v28 = vld [vmem:[#allocation2 + $0x20] sm:$0xff] }
 0x2dc   : > { %v7906_v33 = vpack.c.bf16 %v1811_v28, %v1801_v27  ;;  %v6691_v27 = vld [vmem:[#allocation9 + $0x944] ss:$16 sps:$4 sm:$0xff]   ;;  %v6694_v28 = vld [vmem:[#allocation9 + $0x14c] ss:$16 sps:$4 sm:$0xff]  }
 0x2de   : > { %4124 = vmatpush1.bf16.msra.mxu0 %v6533_v29  ;;  %4167 = vmatpush1.bf16.msra.mxu1 %v6536_v30  ;;  %v6613_v29 = vld [vmem:[#allocation9 + $0x8e4] ss:$16 sps:$4 sm:$0xff]   ;;  %v6616_v30 = vld [vmem:[#allocation9 + $0xec] ss:$16 sps:$4 sm:$0xff]  }
 0x2df   : > { %4125 = vmatprep.subr.bf16.mxu0 %v6541_v31  ;;  %4168 = vmatprep.subr.bf16.mxu1 %v6544_v32  ;;  %v6611_v31 = vld [vmem:[#allocation9 + $0x8e0] ss:$16 sps:$4 sm:$0xff]   ;;  %v7904_v32 = vpack.c.bf16 %v1809_v26, %v1799_v25  ;;  %v6686_v26 = vld [vmem:[#allocation9 + $0x168] ss:$16 sps:$4 sm:$0xff]  }
 0x2e0   : > { %v6683_v25 = vld [vmem:[#allocation9 + $0x960] ss:$16 sps:$4 sm:$0xff]  }
 0x2e2   : > { %4126 = vmatpush1.bf16.msra.mxu0 %v6539_v38  ;;  %4169 = vmatpush1.bf16.msra.mxu1 %v6542_v39  ;;  %v6619_v38 = vld [vmem:[#allocation9 + $0x8c4] ss:$16 sps:$4 sm:$0xff]   ;;  %v6622_v39 = vld [vmem:[#allocation9 + $0xcc] ss:$16 sps:$4 sm:$0xff]  }
 0x2e3   : > { %4127 = vmatprep.subr.bf16.mxu0 %v6547_v40  ;;  %4170 = vmatprep.subr.bf16.mxu1 %v6550_v42  ;;  %v7908_v40 = vpack.c.bf16 %v1814_v36, %v1804_v34  ;;  %v6617_v42 = vld [vmem:[#allocation9 + $0x8c0] ss:$16 sps:$4 sm:$0xff]   ;;  %v6700_v34 = vld [vmem:[#allocation9 + $0x12c] ss:$16 sps:$4 sm:$0xff]  }
 0x2e4   : > { %v6695_v36 = vld [vmem:[#allocation9 + $0x920] ss:$16 sps:$4 sm:$0xff]  }
 0x2e6   : > { %4128 = vmatpush1.bf16.msra.mxu0 %v6545_v43  ;;  %4171 = vmatpush1.bf16.msra.mxu1 %v6548_v45  ;;  %v6620_v43 = vld [vmem:[#allocation9 + $0xc8] ss:$16 sps:$4 sm:$0xff]   ;;  %v6625_v45 = vld [vmem:[#allocation9 + $0x8a4] ss:$16 sps:$4 sm:$0xff]  }
 0x2e7   : > { %4129 = vmatprep.subr.bf16.mxu0 %v6553_v46  ;;  %4172 = vmatprep.subr.bf16.mxu1 %v6556_v48  ;;  %v6628_v46 = vld [vmem:[#allocation9 + $0xac] ss:$16 sps:$4 sm:$0xff]   ;;  %v6623_v48 = vld [vmem:[#allocation9 + $0x8a0] ss:$16 sps:$4 sm:$0xff]  }
 0x2ea   : > { %4130 = vmatpush1.bf16.msra.mxu0 %v6551_v49  ;;  %4173 = vmatpush1.bf16.msra.mxu1 %v6554_v50  ;;  %v6626_v49 = vld [vmem:[#allocation9 + $0xa8] ss:$16 sps:$4 sm:$0xff]   ;;  %v6631_v50 = vld [vmem:[#allocation9 + $0x884] ss:$16 sps:$4 sm:$0xff]  }
 0x2eb   : > { %4131 = vmatprep.subr.bf16.mxu0 %v6559_v51  ;;  %4174 = vmatprep.subr.bf16.mxu1 %v6562_v58  ;;  %v6634_v51 = vld [vmem:[#allocation9 + $0x8c] ss:$16 sps:$4 sm:$0xff]   ;;  %v6629_v58 = vld [vmem:[#allocation9 + $0x880] ss:$16 sps:$4 sm:$0xff]  }
 0x2ee   : > { %4132 = vmatpush1.bf16.msra.mxu0 %v6557_v52  ;;  %4175 = vmatpush1.bf16.msra.mxu1 %v6560_v53  ;;  %v6632_v52 = vld [vmem:[#allocation9 + $0x88] ss:$16 sps:$4 sm:$0xff]   ;;  %v6637_v53 = vld [vmem:[#allocation9 + $0x864] ss:$16 sps:$4 sm:$0xff]  }
 0x2ef   : > { %4133 = vmatprep.subr.bf16.mxu0 %v6565_v54  ;;  %4176 = vmatprep.subr.bf16.mxu1 %v6568_v55  ;;  %v6640_v54 = vld [vmem:[#allocation9 + $0x6c] ss:$16 sps:$4 sm:$0xff]   ;;  %v6635_v55 = vld [vmem:[#allocation9 + $0x860] ss:$16 sps:$4 sm:$0xff]  }
 0x2f2   : > { %4134 = vmatpush2.bf16.msra.mxu0 %v6563_v56  ;;  %4177 = vmatpush2.bf16.msra.mxu1 %v6566_v57  ;;  %v6643_v56 = vld [vmem:[#allocation9 + $0x844] ss:$16 sps:$4 sm:$0xff]   ;;  %v6646_v57 = vld [vmem:[#allocation9 + $0x4c] ss:$16 sps:$4 sm:$0xff]  }
 0x2f3   : > { %4135 = vmatprep.subr.bf16.mxu0 %v6571_v59  ;;  %4178 = vmatprep.subr.bf16.mxu1 %v6574_v60  ;;  %v6641_v59 = vld [vmem:[#allocation9 + $0x840] ss:$16 sps:$4 sm:$0xff]   ;;  %v6644_v60 = vld [vmem:[#allocation9 + $0x48] ss:$16 sps:$4 sm:$0xff]  }
 0x2f6   : > { %4136 = vmatpush2.bf16.msra.mxu0 %v6569_v61  ;;  %4179 = vmatpush2.bf16.msra.mxu1 %v6572_v62  ;;  %v6649_v61 = vld [vmem:[#allocation9 + $0x824] ss:$16 sps:$4 sm:$0xff]   ;;  %v6652_v62 = vld [vmem:[#allocation9 + $0x2c] ss:$16 sps:$4 sm:$0xff]  }
 0x2f7   : > { %4137 = vmatprep.subr.bf16.mxu0 %v6577_v63  ;;  %4180 = vmatprep.subr.bf16.mxu1 %v6580_v0  ;;  %v6647_v63 = vld [vmem:[#allocation9 + $0x820] ss:$16 sps:$4 sm:$0xff]   ;;  %v6650_v0 = vld [vmem:[#allocation9 + $0x28] ss:$16 sps:$4 sm:$0xff]  }
 0x2fa   : > { %4138 = vmatpush2.bf16.msra.mxu0 %v6575_v1  ;;  %4181 = vmatpush2.bf16.msra.mxu1 %v6578_v2  ;;  %v6655_v1 = vld [vmem:[#allocation9 + $0x804] ss:$16 sps:$4 sm:$0xff]   ;;  %v6658_v2 = vld [vmem:[#allocation9 + $0xc] ss:$16 sps:$4 sm:$0xff]  }
 0x2fb   : > { %4139 = vmatprep.subr.bf16.mxu0 %v6583_v3  ;;  %4182 = vmatprep.subr.bf16.mxu1 %v6586_v4  ;;  %v6653_v3 = vld [vmem:[#allocation9 + $0x800] ss:$16 sps:$4 sm:$0xff]   ;;  %v6656_v4 = vld [vmem:[#allocation9 + $0x8] ss:$16 sps:$4 sm:$0xff]  }
 0x2fe   : > { %4140 = vmatpush2.bf16.msra.mxu0 %v6581_v5  ;;  %4183 = vmatpush2.bf16.msra.mxu1 %v6584_v6  ;;  %v6661_v5 = vld [vmem:[#allocation9 + $0x9e4] ss:$16 sps:$4 sm:$0xff]   ;;  %v6664_v6 = vld [vmem:[#allocation9 + $0x1ec] ss:$16 sps:$4 sm:$0xff]  }
 0x2ff   : > { %4141 = vmatprep.subr.bf16.mxu0 %v6589_v7  ;;  %4184 = vmatprep.subr.bf16.mxu1 %v6592_v8  ;;  %v6659_v7 = vld [vmem:[#allocation9 + $0x9e0] ss:$16 sps:$4 sm:$0xff]   ;;  %v6662_v8 = vld [vmem:[#allocation9 + $0x1e8] ss:$16 sps:$4 sm:$0xff]  }
 0x302   : > { %4142 = vmatpush2.bf16.msra.mxu0 %v6587_v9  ;;  %4185 = vmatpush2.bf16.msra.mxu1 %v6590_v10  ;;  %v6667_v9 = vld [vmem:[#allocation9 + $0x9c4] ss:$16 sps:$4 sm:$0xff]   ;;  %v6670_v10 = vld [vmem:[#allocation9 + $0x1cc] ss:$16 sps:$4 sm:$0xff]  }
 0x303   : > { %4143 = vmatprep.subr.bf16.mxu0 %v6595_v19  ;;  %4186 = vmatprep.subr.bf16.mxu1 %v6598_v11  ;;  %v6665_v19 = vld [vmem:[#allocation9 + $0x9c0] ss:$16 sps:$4 sm:$0xff]   ;;  %v6668_v11 = vld [vmem:[#allocation9 + $0x1c8] ss:$16 sps:$4 sm:$0xff]  }
 0x306   : > { %4144 = vmatpush2.bf16.msra.mxu0 %v6593_v12  ;;  %4187 = vmatpush2.bf16.msra.mxu1 %v6596_v13  ;;  %v6673_v12 = vld [vmem:[#allocation9 + $0x9a4] ss:$16 sps:$4 sm:$0xff]   ;;  %v6676_v13 = vld [vmem:[#allocation9 + $0x1ac] ss:$16 sps:$4 sm:$0xff]  }
 0x307   : > { %4145 = vmatprep.subr.bf16.mxu0 %v6601_v16  ;;  %4188 = vmatprep.subr.bf16.mxu1 %v6604_v17  ;;  %v6671_v16 = vld [vmem:[#allocation9 + $0x9a0] ss:$16 sps:$4 sm:$0xff]   ;;  %v6674_v17 = vld [vmem:[#allocation9 + $0x1a8] ss:$16 sps:$4 sm:$0xff]  }
 0x30a   : > { %4146 = vmatpush2.bf16.msra.mxu0 %v6599_v18  ;;  %4189 = vmatpush2.bf16.msra.mxu1 %v6602_v20  ;;  %v6679_v18 = vld [vmem:[#allocation9 + $0x984] ss:$16 sps:$4 sm:$0xff]   ;;  %v6682_v20 = vld [vmem:[#allocation9 + $0x18c] ss:$16 sps:$4 sm:$0xff]  }
 0x30b   : > { %4147 = vmatprep.subr.bf16.mxu0 %v6607_v21  ;;  %4190 = vmatprep.subr.bf16.mxu1 %v6610_v22  ;;  %v6677_v21 = vld [vmem:[#allocation9 + $0x980] ss:$16 sps:$4 sm:$0xff]   ;;  %v6680_v22 = vld [vmem:[#allocation9 + $0x188] ss:$16 sps:$4 sm:$0xff]  }
 0x30e   : > { %4148 = vmatpush2.bf16.msra.mxu0 %v6605_v23  ;;  %4191 = vmatpush2.bf16.msra.mxu1 %v6608_v24  ;;  %v6685_v23 = vld [vmem:[#allocation9 + $0x964] ss:$16 sps:$4 sm:$0xff]   ;;  %v6688_v24 = vld [vmem:[#allocation9 + $0x16c] ss:$16 sps:$4 sm:$0xff]  }
 0x30f   : > { %4203 = vmatprep.subr.bf16.mxu0 %v6613_v29  ;;  %4246 = vmatprep.subr.bf16.mxu1 %v6616_v30  ;;  %v6689_v29 = vld [vmem:[#allocation9 + $0x940] ss:$16 sps:$4 sm:$0xff]   ;;  %v6692_v30 = vld [vmem:[#allocation9 + $0x148] ss:$16 sps:$4 sm:$0xff]  }
 0x311   : > { %4150 = vmatmul.mubr.bf16.vlgmr.msra.gmra.mxu0 %v7904_v32  ;;  %4193 = vmatmul.mubr.bf16.vlgmr.msra.gmra.mxu1 %v7906_v33 }
 0x312   : > { %4204 = vmatpush1.bf16.msra.mxu0 %v6611_v31  ;;  %4247 = vmatpush1.bf16.msra.mxu1 %v6614_v37  ;;  %v6697_v31 = vld [vmem:[#allocation9 + $0x924] ss:$16 sps:$4 sm:$0xff]   ;;  %v6698_v37 = vld [vmem:[#allocation9 + $0x128] ss:$16 sps:$4 sm:$0xff]  }
 0x313   : > { %4205 = vmatprep.subr.bf16.mxu0 %v6619_v38  ;;  %4248 = vmatprep.subr.bf16.mxu1 %v6622_v39  ;;  %v6703_v38 = vld [vmem:[#allocation9 + $0x904] ss:$16 sps:$4 sm:$0xff]   ;;  %v6706_v39 = vld [vmem:[#allocation9 + $0x10c] ss:$16 sps:$4 sm:$0xff]  }
 0x314   : > { %4235 = vmatprep.mubr.bf16.mxu0 %v7908_v40  ;;  %4278 = vmatprep.mubr.bf16.mxu1 %v7886_v44  ;;  %v6638_v44 = vld [vmem:[#allocation9 + $0x68] ss:$16 sps:$4 sm:$0xff]  }
 0x316   : > { %4206 = vmatpush1.bf16.msra.mxu0 %v6617_v42  ;;  %4249 = vmatpush1.bf16.msra.mxu1 %v6620_v43  ;;  %v6701_v42 = vld [vmem:[#allocation9 + $0x900] ss:$16 sps:$4 sm:$0xff]   ;;  %v6704_v43 = vld [vmem:[#allocation9 + $0x108] ss:$16 sps:$4 sm:$0xff]  }
 0x317   : > { %4207 = vmatprep.subr.bf16.mxu0 %v6625_v45  ;;  %4250 = vmatprep.subr.bf16.mxu1 %v6628_v46  ;;  %v1803_v45 = vld [vmem:[#allocation2 + $0x8] sm:$0xff]  ;;  %v1813_v46 = vld [vmem:[#allocation2 + $0x70] sm:$0xff] }
 0x31a   : > { %4208 = vmatpush1.bf16.msra.mxu0 %v6623_v48  ;;  %4251 = vmatpush1.bf16.msra.mxu1 %v6626_v49  ;;  %v6709_v48 = vld [vmem:[#allocation9 + $0x2ec] ss:$16 sps:$4 sm:$0xff]  }
 0x31b   : > { %4209 = vmatprep.subr.bf16.mxu0 %v6631_v50  ;;  %4252 = vmatprep.subr.bf16.mxu1 %v6634_v51  ;;  %v6712_v49 = vld [vmem:[#allocation9 + $0x4ec] ss:$16 sps:$4 sm:$0xff]   ;;  %v7914_v50 = vpack.c.bf16 %v1813_v46, %v1803_v45  ;;  %v6707_v51 = vld [vmem:[#allocation9 + $0x2e8] ss:$16 sps:$4 sm:$0xff]  }
 0x31c   : > { %v6793_v45 = vld [vmem:[#allocation9 + $0x32c] ss:$16 sps:$4 sm:$0xff]  }
 0x31d   : > { %v6796_v46 = vld [vmem:[#allocation9 + $0x52c] ss:$16 sps:$4 sm:$0xff]  }
 0x31e   : > { %4210 = vmatpush1.bf16.msra.mxu0 %v6629_v58  ;;  %4253 = vmatpush1.bf16.msra.mxu1 %v6632_v52  ;;  %v6710_v58 = vld [vmem:[#allocation9 + $0x4e8] ss:$16 sps:$4 sm:$0xff]   ;;  %v6715_v52 = vld [vmem:[#allocation9 + $0x2cc] ss:$16 sps:$4 sm:$0xff]  }
 0x31f   : > { %4211 = vmatprep.subr.bf16.mxu0 %v6637_v53  ;;  %4254 = vmatprep.subr.bf16.mxu1 %v6640_v54  ;;  %v6718_v53 = vld [vmem:[#allocation9 + $0x4cc] ss:$16 sps:$4 sm:$0xff]   ;;  %v6713_v54 = vld [vmem:[#allocation9 + $0x2c8] ss:$16 sps:$4 sm:$0xff]  }
 0x322   : > { %4212 = vmatpush1.bf16.msra.mxu0 %v6635_v55  ;;  %4255 = vmatpush1.bf16.msra.mxu1 %v6638_v44  ;;  %v6716_v55 = vld [vmem:[#allocation9 + $0x4c8] ss:$16 sps:$4 sm:$0xff]   ;;  %v6721_v44 = vld [vmem:[#allocation9 + $0x2ac] ss:$16 sps:$4 sm:$0xff]  }
 0x323   : > { %4213 = vmatprep.subr.bf16.mxu0 %v6643_v56  ;;  %4256 = vmatprep.subr.bf16.mxu1 %v6646_v57  ;;  %v6724_v56 = vld [vmem:[#allocation9 + $0x4ac] ss:$16 sps:$4 sm:$0xff]   ;;  %v6719_v57 = vld [vmem:[#allocation9 + $0x2a8] ss:$16 sps:$4 sm:$0xff]  }
 0x326   : > { %4214 = vmatpush1.bf16.msra.mxu0 %v6641_v59  ;;  %4257 = vmatpush1.bf16.msra.mxu1 %v6644_v60  ;;  %v6722_v59 = vld [vmem:[#allocation9 + $0x4a8] ss:$16 sps:$4 sm:$0xff]   ;;  %v6727_v60 = vld [vmem:[#allocation9 + $0x28c] ss:$16 sps:$4 sm:$0xff]  }
 0x327   : > { %4215 = vmatprep.subr.bf16.mxu0 %v6649_v61  ;;  %4258 = vmatprep.subr.bf16.mxu1 %v6652_v62  ;;  %v6725_v61 = vld [vmem:[#allocation9 + $0x288] ss:$16 sps:$4 sm:$0xff]  }
 0x328   : > { %v6728_v62 = vld [vmem:[#allocation9 + $0x488] ss:$16 sps:$4 sm:$0xff]  }
 0x32a   : > { %4216 = vmatpush1.bf16.msra.mxu0 %v6647_v63  ;;  %4259 = vmatpush1.bf16.msra.mxu1 %v6650_v0  ;;  %v6733_v63 = vld [vmem:[#allocation9 + $0x26c] ss:$16 sps:$4 sm:$0xff]  }
 0x32b   : > { %4217 = vmatprep.subr.bf16.mxu0 %v6655_v1  ;;  %4260 = vmatprep.subr.bf16.mxu1 %v6658_v2  ;;  %v6736_v0 = vld [vmem:[#allocation9 + $0x46c] ss:$16 sps:$4 sm:$0xff]   ;;  %v6731_v1 = vld [vmem:[#allocation9 + $0x268] ss:$16 sps:$4 sm:$0xff]  }
 0x32c   : > { %v6742_v2 = vld [vmem:[#allocation9 + $0x44c] ss:$16 sps:$4 sm:$0xff]  }
 0x32e   : > { %4218 = vmatpush1.bf16.msra.mxu0 %v6653_v3  ;;  %4261 = vmatpush1.bf16.msra.mxu1 %v6656_v4  ;;  %v6737_v3 = vld [vmem:[#allocation9 + $0x248] ss:$16 sps:$4 sm:$0xff]  }
 0x32f   : > { %4219 = vmatprep.subr.bf16.mxu0 %v6661_v5  ;;  %4262 = vmatprep.subr.bf16.mxu1 %v6664_v6  ;;  %v6740_v4 = vld [vmem:[#allocation9 + $0x448] ss:$16 sps:$4 sm:$0xff]   ;;  %v6745_v5 = vld [vmem:[#allocation9 + $0x22c] ss:$16 sps:$4 sm:$0xff]  }
 0x330   : > { %v6748_v6 = vld [vmem:[#allocation9 + $0x42c] ss:$16 sps:$4 sm:$0xff]  }
 0x332   : > { %4220 = vmatpush2.bf16.msra.mxu0 %v6659_v7  ;;  %4263 = vmatpush2.bf16.msra.mxu1 %v6662_v8  ;;  %v6743_v7 = vld [vmem:[#allocation9 + $0x228] ss:$16 sps:$4 sm:$0xff]  }
 0x333   : > { %4221 = vmatprep.subr.bf16.mxu0 %v6667_v9  ;;  %4264 = vmatprep.subr.bf16.mxu1 %v6670_v10  ;;  %v6746_v8 = vld [vmem:[#allocation9 + $0x428] ss:$16 sps:$4 sm:$0xff]   ;;  %v6751_v9 = vld [vmem:[#allocation9 + $0x20c] ss:$16 sps:$4 sm:$0xff]  }
 0x334   : > { %v6754_v10 = vld [vmem:[#allocation9 + $0x40c] ss:$16 sps:$4 sm:$0xff]  }
 0x336   : > { %4222 = vmatpush2.bf16.msra.mxu0 %v6665_v19  ;;  %4265 = vmatpush2.bf16.msra.mxu1 %v6668_v11  ;;  %v6749_v19 = vld [vmem:[#allocation9 + $0x208] ss:$16 sps:$4 sm:$0xff]  }
 0x337   : > { %4223 = vmatprep.subr.bf16.mxu0 %v6673_v12  ;;  %4266 = vmatprep.subr.bf16.mxu1 %v6676_v13  ;;  %v6752_v11 = vld [vmem:[#allocation9 + $0x408] ss:$16 sps:$4 sm:$0xff]   ;;  %v6757_v12 = vld [vmem:[#allocation9 + $0x3ec] ss:$16 sps:$4 sm:$0xff]  }
 0x338   : > { %v6760_v13 = vld [vmem:[#allocation9 + $0x5ec] ss:$16 sps:$4 sm:$0xff]  }
 0x33a   : > { %4224 = vmatpush2.bf16.msra.mxu0 %v6671_v16  ;;  %4267 = vmatpush2.bf16.msra.mxu1 %v6674_v17  ;;  %v6755_v16 = vld [vmem:[#allocation9 + $0x3e8] ss:$16 sps:$4 sm:$0xff]  }
 0x33b   : > { %4225 = vmatprep.subr.bf16.mxu0 %v6679_v18  ;;  %4268 = vmatprep.subr.bf16.mxu1 %v6682_v20  ;;  %v6758_v17 = vld [vmem:[#allocation9 + $0x5e8] ss:$16 sps:$4 sm:$0xff]   ;;  %v6763_v18 = vld [vmem:[#allocation9 + $0x3cc] ss:$16 sps:$4 sm:$0xff]  }
 0x33c   : > { %v6766_v20 = vld [vmem:[#allocation9 + $0x5cc] ss:$16 sps:$4 sm:$0xff]  }
 0x33e   : > { %4226 = vmatpush2.bf16.msra.mxu0 %v6677_v21  ;;  %4269 = vmatpush2.bf16.msra.mxu1 %v6680_v22  ;;  %v6761_v21 = vld [vmem:[#allocation9 + $0x3c8] ss:$16 sps:$4 sm:$0xff]  }
 0x33f   : > { %4227 = vmatprep.subr.bf16.mxu0 %v6685_v23  ;;  %4270 = vmatprep.subr.bf16.mxu1 %v6688_v24  ;;  %v6764_v22 = vld [vmem:[#allocation9 + $0x5c8] ss:$16 sps:$4 sm:$0xff]   ;;  %v6769_v23 = vld [vmem:[#allocation9 + $0x3ac] ss:$16 sps:$4 sm:$0xff]  }
 0x340   : > { %v6772_v24 = vld [vmem:[#allocation9 + $0x5ac] ss:$16 sps:$4 sm:$0xff]  }
 0x342   : > { %4228 = vmatpush2.bf16.msra.mxu0 %v6683_v25  ;;  %4271 = vmatpush2.bf16.msra.mxu1 %v6686_v26  ;;  %v6767_v25 = vld [vmem:[#allocation9 + $0x3a8] ss:$16 sps:$4 sm:$0xff]  }
 0x343   : > { %4229 = vmatprep.subr.bf16.mxu0 %v6691_v27  ;;  %4272 = vmatprep.subr.bf16.mxu1 %v6694_v28  ;;  %v6770_v26 = vld [vmem:[#allocation9 + $0x5a8] ss:$16 sps:$4 sm:$0xff]   ;;  %v6775_v27 = vld [vmem:[#allocation9 + $0x38c] ss:$16 sps:$4 sm:$0xff]  }
 0x344   : > { %v6778_v28 = vld [vmem:[#allocation9 + $0x58c] ss:$16 sps:$4 sm:$0xff]  }
 0x346   : > { %4230 = vmatpush2.bf16.msra.mxu0 %v6689_v29  ;;  %4273 = vmatpush2.bf16.msra.mxu1 %v6692_v30  ;;  %v6773_v29 = vld [vmem:[#allocation9 + $0x388] ss:$16 sps:$4 sm:$0xff]  }
 0x347   : > { %4231 = vmatprep.subr.bf16.mxu0 %v6697_v31  ;;  %4274 = vmatprep.subr.bf16.mxu1 %v6700_v34  ;;  %v6776_v30 = vld [vmem:[#allocation9 + $0x588] ss:$16 sps:$4 sm:$0xff]   ;;  %v6781_v31 = vld [vmem:[#allocation9 + $0x36c] ss:$16 sps:$4 sm:$0xff]  }
 0x348   : > { %v6784_v34 = vld [vmem:[#allocation9 + $0x56c] ss:$16 sps:$4 sm:$0xff]  }
 0x34a   : > { %4232 = vmatpush2.bf16.msra.mxu0 %v6695_v36  ;;  %4275 = vmatpush2.bf16.msra.mxu1 %v6698_v37  ;;  %v6779_v36 = vld [vmem:[#allocation9 + $0x368] ss:$16 sps:$4 sm:$0xff]  }
 0x34b   : > { %4233 = vmatprep.subr.bf16.mxu0 %v6703_v38  ;;  %4276 = vmatprep.subr.bf16.mxu1 %v6706_v39  ;;  %v6782_v37 = vld [vmem:[#allocation9 + $0x568] ss:$16 sps:$4 sm:$0xff]   ;;  %v6787_v38 = vld [vmem:[#allocation9 + $0x34c] ss:$16 sps:$4 sm:$0xff]  }
 0x34c   : > { %v6790_v39 = vld [vmem:[#allocation9 + $0x54c] ss:$16 sps:$4 sm:$0xff]  }
 0x34e   : > { %4234 = vmatpush2.bf16.msra.mxu0 %v6701_v42  ;;  %4277 = vmatpush2.bf16.msra.mxu1 %v6704_v43  ;;  %v6785_v42 = vld [vmem:[#allocation9 + $0x348] ss:$16 sps:$4 sm:$0xff]  }
 0x34f   : > { %4289 = vmatprep.subr.bf16.mxu0 %v6709_v48  ;;  %4332 = vmatprep.subr.bf16.mxu1 %v6712_v49  ;;  %v6788_v43 = vld [vmem:[#allocation9 + $0x548] ss:$16 sps:$4 sm:$0xff]  }
 0x350   : > { %v6791_v48 = vld [vmem:[#allocation9 + $0x328] ss:$16 sps:$4 sm:$0xff]  }
 0x351   : > { %4236 = vmatmul.mubr.bf16.vlgmr.msra.gmra.mxu0 %v7914_v50  ;;  %4279 = vmatmul.mubr.bf16.vlgmr.msra.gmra.mxu1 %v7892_v14  ;;  %v6730_v14 = vld [vmem:[#allocation9 + $0x48c] ss:$16 sps:$4 sm:$0xff]   ;;  %v6794_v49 = vld [vmem:[#allocation9 + $0x528] ss:$16 sps:$4 sm:$0xff]  }
 0x352   : > { %4290 = vmatpush1.bf16.msra.mxu0 %v6707_v51  ;;  %4333 = vmatpush1.bf16.msra.mxu1 %v6710_v58  ;;  %v6799_v51 = vld [vmem:[#allocation9 + $0x30c] ss:$16 sps:$4 sm:$0xff]  }
 0x353   : > { %4291 = vmatprep.subr.bf16.mxu0 %v6715_v52  ;;  %4334 = vmatprep.subr.bf16.mxu1 %v6718_v53  ;;  %v6802_v58 = vld [vmem:[#allocation9 + $0x50c] ss:$16 sps:$4 sm:$0xff]   ;;  %v6797_v52 = vld [vmem:[#allocation9 + $0x308] ss:$16 sps:$4 sm:$0xff]  }
 0x354   : > { %4321 = vmatprep.mubr.bf16.mxu0 %v7888_v47  ;;  %4364 = vmatprep.mubr.bf16.mxu1 %v7898_v35  ;;  %v6734_v47 = vld [vmem:[#allocation9 + $0x468] ss:$16 sps:$4 sm:$0xff]   ;;  %v6739_v35 = vld [vmem:[#allocation9 + $0x24c] ss:$16 sps:$4 sm:$0xff]  }
 0x355   : > { %v6800_v53 = vld [vmem:[#allocation9 + $0x508] ss:$16 sps:$4 sm:$0xff]  }
 0x356   : > { %4292 = vmatpush1.bf16.msra.mxu0 %v6713_v54  ;;  %4335 = vmatpush1.bf16.msra.mxu1 %v6716_v55  ;;  %v6805_v54 = vld [vmem:[#allocation9 + $0x6ec] ss:$16 sps:$4 sm:$0xff]  }
 0x357   : > { %4293 = vmatprep.subr.bf16.mxu0 %v6721_v44  ;;  %4336 = vmatprep.subr.bf16.mxu1 %v6724_v56  ;;  %v6808_v55 = vld [vmem:[#allocation9 + $0x8ec] ss:$16 sps:$4 sm:$0xff]   ;;  %v6803_v44 = vld [vmem:[#allocation9 + $0x6e8] ss:$16 sps:$4 sm:$0xff]  }
 0x358   : > { %v6806_v56 = vld [vmem:[#allocation9 + $0x8e8] ss:$16 sps:$4 sm:$0xff]  }
 0x35a   : > { %4294 = vmatpush1.bf16.msra.mxu0 %v6719_v57  ;;  %4337 = vmatpush1.bf16.msra.mxu1 %v6722_v59  ;;  %v6811_v57 = vld [vmem:[#allocation9 + $0x6cc] ss:$16 sps:$4 sm:$0xff]  }
 0x35b   : > { %4295 = vmatprep.subr.bf16.mxu0 %v6727_v60  ;;  %4338 = vmatprep.subr.bf16.mxu1 %v6730_v14  ;;  %v6814_v59 = vld [vmem:[#allocation9 + $0x8cc] ss:$16 sps:$4 sm:$0xff]   ;;  %v6809_v60 = vld [vmem:[#allocation9 + $0x6c8] ss:$16 sps:$4 sm:$0xff]  }
 0x35c   : > { %v6812_v14 = vld [vmem:[#allocation9 + $0x8c8] ss:$16 sps:$4 sm:$0xff]  }
 0x35e   : > { %4296 = vmatpush1.bf16.msra.mxu0 %v6725_v61  ;;  %4339 = vmatpush1.bf16.msra.mxu1 %v6728_v62  ;;  %v6817_v61 = vld [vmem:[#allocation9 + $0x6ac] ss:$16 sps:$4 sm:$0xff]  }
 0x35f   : > { %4297 = vmatprep.subr.bf16.mxu0 %v6733_v63  ;;  %4340 = vmatprep.subr.bf16.mxu1 %v6736_v0  ;;  %v6820_v62 = vld [vmem:[#allocation9 + $0x8ac] ss:$16 sps:$4 sm:$0xff]   ;;  %v6815_v63 = vld [vmem:[#allocation9 + $0x6a8] ss:$16 sps:$4 sm:$0xff]  }
 0x360   : > { %v6818_v0 = vld [vmem:[#allocation9 + $0x8a8] ss:$16 sps:$4 sm:$0xff]  }
 0x362   : > { %4298 = vmatpush1.bf16.msra.mxu0 %v6731_v1  ;;  %4341 = vmatpush1.bf16.msra.mxu1 %v6734_v47  ;;  %v6821_v1 = vld [vmem:[#allocation9 + $0x688] ss:$16 sps:$4 sm:$0xff]  }
 0x363   : > { %4299 = vmatprep.subr.bf16.mxu0 %v6739_v35  ;;  %4342 = vmatprep.subr.bf16.mxu1 %v6742_v2  ;;  %v6824_v47 = vld [vmem:[#allocation9 + $0x888] ss:$16 sps:$4 sm:$0xff]   ;;  %v6829_v35 = vld [vmem:[#allocation9 + $0x66c] ss:$16 sps:$4 sm:$0xff]  }
 0x364   : > { %v6832_v2 = vld [vmem:[#allocation9 + $0x86c] ss:$16 sps:$4 sm:$0xff]  }
 0x366   : > { %4300 = vmatpush1.bf16.msra.mxu0 %v6737_v3  ;;  %4343 = vmatpush1.bf16.msra.mxu1 %v6740_v4  ;;  %v6835_v3 = vld [vmem:[#allocation9 + $0x64c] ss:$16 sps:$4 sm:$0xff]  }
 0x367   : > { %4301 = vmatprep.subr.bf16.mxu0 %v6745_v5  ;;  %4344 = vmatprep.subr.bf16.mxu1 %v6748_v6  ;;  %v6838_v4 = vld [vmem:[#allocation9 + $0x84c] ss:$16 sps:$4 sm:$0xff]   ;;  %v6833_v5 = vld [vmem:[#allocation9 + $0x648] ss:$16 sps:$4 sm:$0xff]  }
 0x368   : > { %v6836_v6 = vld [vmem:[#allocation9 + $0x848] ss:$16 sps:$4 sm:$0xff]  }
 0x36a   : > { %4302 = vmatpush1.bf16.msra.mxu0 %v6743_v7  ;;  %4345 = vmatpush1.bf16.msra.mxu1 %v6746_v8  ;;  %v6841_v7 = vld [vmem:[#allocation9 + $0x62c] ss:$16 sps:$4 sm:$0xff]  }
 0x36b   : > { %4303 = vmatprep.subr.bf16.mxu0 %v6751_v9  ;;  %4346 = vmatprep.subr.bf16.mxu1 %v6754_v10  ;;  %v6844_v8 = vld [vmem:[#allocation9 + $0x82c] ss:$16 sps:$4 sm:$0xff]   ;;  %v6839_v9 = vld [vmem:[#allocation9 + $0x628] ss:$16 sps:$4 sm:$0xff]  }
 0x36c   : > { %v6842_v10 = vld [vmem:[#allocation9 + $0x828] ss:$16 sps:$4 sm:$0xff]  }
 0x36e   : > { %4304 = vmatpush1.bf16.msra.mxu0 %v6749_v19  ;;  %4347 = vmatpush1.bf16.msra.mxu1 %v6752_v11  ;;  %v6847_v19 = vld [vmem:[#allocation9 + $0x60c] ss:$16 sps:$4 sm:$0xff]  }
 0x36f   : > { %4305 = vmatprep.subr.bf16.mxu0 %v6757_v12  ;;  %4348 = vmatprep.subr.bf16.mxu1 %v6760_v13  ;;  %v6850_v11 = vld [vmem:[#allocation9 + $0x80c] ss:$16 sps:$4 sm:$0xff]   ;;  %v6845_v12 = vld [vmem:[#allocation9 + $0x608] ss:$16 sps:$4 sm:$0xff]  }
 0x370   : > { %v6848_v13 = vld [vmem:[#allocation9 + $0x808] ss:$16 sps:$4 sm:$0xff]  }
 0x372   : > { %4306 = vmatpush2.bf16.msra.mxu0 %v6755_v16  ;;  %4349 = vmatpush2.bf16.msra.mxu1 %v6758_v17  ;;  %v6853_v16 = vld [vmem:[#allocation9 + $0x7ec] ss:$16 sps:$4 sm:$0xff]  }
 0x373   : > { %4307 = vmatprep.subr.bf16.mxu0 %v6763_v18  ;;  %4350 = vmatprep.subr.bf16.mxu1 %v6766_v20  ;;  %v6856_v17 = vld [vmem:[#allocation9 + $0x9ec] ss:$16 sps:$4 sm:$0xff]   ;;  %v6851_v18 = vld [vmem:[#allocation9 + $0x7e8] ss:$16 sps:$4 sm:$0xff]  }
 0x374   : > { %v6854_v20 = vld [vmem:[#allocation9 + $0x9e8] ss:$16 sps:$4 sm:$0xff]  }
 0x376   : > { %4308 = vmatpush2.bf16.msra.mxu0 %v6761_v21  ;;  %4351 = vmatpush2.bf16.msra.mxu1 %v6764_v22  ;;  %v6859_v21 = vld [vmem:[#allocation9 + $0x7cc] ss:$16 sps:$4 sm:$0xff]  }
 0x377   : > { %4309 = vmatprep.subr.bf16.mxu0 %v6769_v23  ;;  %4352 = vmatprep.subr.bf16.mxu1 %v6772_v24  ;;  %v6862_v22 = vld [vmem:[#allocation9 + $0x9cc] ss:$16 sps:$4 sm:$0xff]   ;;  %v6857_v23 = vld [vmem:[#allocation9 + $0x7c8] ss:$16 sps:$4 sm:$0xff]  }
 0x378   : > { %v6860_v24 = vld [vmem:[#allocation9 + $0x9c8] ss:$16 sps:$4 sm:$0xff]  }
 0x37a   : > { %4310 = vmatpush2.bf16.msra.mxu0 %v6767_v25  ;;  %4353 = vmatpush2.bf16.msra.mxu1 %v6770_v26  ;;  %v6865_v25 = vld [vmem:[#allocation9 + $0x7ac] ss:$16 sps:$4 sm:$0xff]  }
 0x37b   : > { %4311 = vmatprep.subr.bf16.mxu0 %v6775_v27  ;;  %4354 = vmatprep.subr.bf16.mxu1 %v6778_v28  ;;  %v6868_v26 = vld [vmem:[#allocation9 + $0x9ac] ss:$16 sps:$4 sm:$0xff]   ;;  %v6863_v27 = vld [vmem:[#allocation9 + $0x7a8] ss:$16 sps:$4 sm:$0xff]  }
 0x37c   : > { %v6866_v28 = vld [vmem:[#allocation9 + $0x9a8] ss:$16 sps:$4 sm:$0xff]  }
 0x37e   : > { %4312 = vmatpush2.bf16.msra.mxu0 %v6773_v29  ;;  %4355 = vmatpush2.bf16.msra.mxu1 %v6776_v30  ;;  %v6871_v29 = vld [vmem:[#allocation9 + $0x78c] ss:$16 sps:$4 sm:$0xff]  }
 0x37f   : > { %4313 = vmatprep.subr.bf16.mxu0 %v6781_v31  ;;  %4356 = vmatprep.subr.bf16.mxu1 %v6784_v34  ;;  %v6874_v30 = vld [vmem:[#allocation9 + $0x98c] ss:$16 sps:$4 sm:$0xff]   ;;  %v6869_v31 = vld [vmem:[#allocation9 + $0x788] ss:$16 sps:$4 sm:$0xff]  }
 0x380   : > { %v6872_v34 = vld [vmem:[#allocation9 + $0x988] ss:$16 sps:$4 sm:$0xff]  }
 0x382   : > { %4314 = vmatpush2.bf16.msra.mxu0 %v6779_v36  ;;  %4357 = vmatpush2.bf16.msra.mxu1 %v6782_v37  ;;  %v6877_v36 = vld [vmem:[#allocation9 + $0x76c] ss:$16 sps:$4 sm:$0xff]  }
 0x383   : > { %4315 = vmatprep.subr.bf16.mxu0 %v6787_v38  ;;  %4358 = vmatprep.subr.bf16.mxu1 %v6790_v39  ;;  %v6880_v37 = vld [vmem:[#allocation9 + $0x96c] ss:$16 sps:$4 sm:$0xff]   ;;  %v6875_v38 = vld [vmem:[#allocation9 + $0x768] ss:$16 sps:$4 sm:$0xff]  }
 0x384   : > { %v6878_v39 = vld [vmem:[#allocation9 + $0x968] ss:$16 sps:$4 sm:$0xff]  }
 0x386   : > { %4316 = vmatpush2.bf16.msra.mxu0 %v6785_v42  ;;  %4359 = vmatpush2.bf16.msra.mxu1 %v6788_v43  ;;  %v6883_v42 = vld [vmem:[#allocation9 + $0x74c] ss:$16 sps:$4 sm:$0xff]  }
 0x387   : > { %4317 = vmatprep.subr.bf16.mxu0 %v6793_v45  ;;  %4360 = vmatprep.subr.bf16.mxu1 %v6796_v46  ;;  %v6886_v43 = vld [vmem:[#allocation9 + $0x94c] ss:$16 sps:$4 sm:$0xff]   ;;  %v6881_v45 = vld [vmem:[#allocation9 + $0x748] ss:$16 sps:$4 sm:$0xff]  }
 0x388   : > { %v6884_v46 = vld [vmem:[#allocation9 + $0x948] ss:$16 sps:$4 sm:$0xff]  }
 0x38a   : > { %4318 = vmatpush2.bf16.msra.mxu0 %v6791_v48  ;;  %4361 = vmatpush2.bf16.msra.mxu1 %v6794_v49  ;;  %v6889_v48 = vld [vmem:[#allocation9 + $0x72c] ss:$16 sps:$4 sm:$0xff]  }
 0x38b   : > { %4319 = vmatprep.subr.bf16.mxu0 %v6799_v51  ;;  %4362 = vmatprep.subr.bf16.mxu1 %v6802_v58  ;;  %v6892_v49 = vld [vmem:[#allocation9 + $0x92c] ss:$16 sps:$4 sm:$0xff]   ;;  %v6887_v51 = vld [vmem:[#allocation9 + $0x728] ss:$16 sps:$4 sm:$0xff]  }
 0x38c   : > { %v6890_v58 = vld [vmem:[#allocation9 + $0x928] ss:$16 sps:$4 sm:$0xff]  }
 0x38e   : > { %4320 = vmatpush2.bf16.msra.mxu0 %v6797_v52  ;;  %4363 = vmatpush2.bf16.msra.mxu1 %v6800_v53  ;;  %v6895_v52 = vld [vmem:[#allocation9 + $0x70c] ss:$16 sps:$4 sm:$0xff]  }
 0x38f   : > { %4375 = vmatprep.subr.bf16.mxu0 %v6805_v54  ;;  %4418 = vmatprep.subr.bf16.mxu1 %v6808_v55  ;;  %v6898_v53 = vld [vmem:[#allocation9 + $0x90c] ss:$16 sps:$4 sm:$0xff]   ;;  %v6893_v54 = vld [vmem:[#allocation9 + $0x708] ss:$16 sps:$4 sm:$0xff]  }
 0x390   : > { %v6896_v55 = vld [vmem:[#allocation9 + $0x908] ss:$16 sps:$4 sm:$0xff]  }
 0x391   : > { %4322 = vmatmul.mubr.bf16.vlgmr.msra.gmra.mxu0 %v7894_v15  ;;  %4365 = vmatmul.mubr.bf16.vlgmr.msra.gmra.mxu1 %v7904_v32  ;;  %v6823_v15 = vld [vmem:[#allocation9 + $0x68c] ss:$16 sps:$4 sm:$0xff]  }
 0x392   : > { %4376 = vmatpush1.bf16.msra.mxu0 %v6803_v44  ;;  %4419 = vmatpush1.bf16.msra.mxu1 %v6806_v56  ;;  %v6826_v32 = vld [vmem:[#allocation9 + $0x88c] ss:$16 sps:$4 sm:$0xff]   ;;  %v6901_v44 = vld [vmem:[#allocation14 + $0x74] ss:$8 sps:$4 sm:$0xff]  }
 0x393   : > { %4377 = vmatprep.subr.bf16.mxu0 %v6811_v57  ;;  %4420 = vmatprep.subr.bf16.mxu1 %v6814_v59  ;;  %v6899_v56 = vld [vmem:[#allocation14 + $0x70] ss:$8 sps:$4 sm:$0xff]   ;;  %v6904_v57 = vld [vmem:[#allocation14 + $0x64] ss:$8 sps:$4 sm:$0xff]   ;;  %v6902_v59 = vld [vmem:[#allocation14 + $0x60] ss:$8 sps:$4 sm:$0xff]  }
 0x394   : > { %4407 = vmatprep.mubr.bf16.mxu0 %v7900_v41  ;;  %4450 = vmatprep.mubr.bf16.mxu1 %v7908_v40  ;;  %v6827_v41 = vld [vmem:[#allocation9 + $0x668] ss:$16 sps:$4 sm:$0xff]  }
 0x395   : > { %v6830_v40 = vld [vmem:[#allocation9 + $0x868] ss:$16 sps:$4 sm:$0xff]  }
 0x396   : > { %4378 = vmatpush1.bf16.msra.mxu0 %v6809_v60  ;;  %4421 = vmatpush1.bf16.msra.mxu1 %v6812_v14  ;;  %v6907_v60 = vld [vmem:[#allocation14 + $0x54] ss:$8 sps:$4 sm:$0xff]   ;;  %v6905_v14 = vld [vmem:[#allocation14 + $0x50] ss:$8 sps:$4 sm:$0xff]  }
 0x397   : > { %4379 = vmatprep.subr.bf16.mxu0 %v6817_v61  ;;  %4422 = vmatprep.subr.bf16.mxu1 %v6820_v62  ;;  %v6910_v61 = vld [vmem:[#allocation14 + $0x44] ss:$8 sps:$4 sm:$0xff]   ;;  %v6908_v62 = vld [vmem:[#allocation14 + $0x40] ss:$8 sps:$4 sm:$0xff]  }
 0x39a   : > { %4380 = vmatpush1.bf16.msra.mxu0 %v6815_v63  ;;  %4423 = vmatpush1.bf16.msra.mxu1 %v6818_v0  ;;  %v6947_v63 = vld [vmem:[#allocation14 + $0x170] ss:$8 sps:$4 sm:$0xff]   ;;  %v6949_v0 = vld [vmem:[#allocation14 + $0x174] ss:$8 sps:$4 sm:$0xff]  }
 0x39b   : > { %4381 = vmatprep.subr.bf16.mxu0 %v6823_v15  ;;  %4424 = vmatprep.subr.bf16.mxu1 %v6826_v32  ;;  %v6913_v15 = vld [vmem:[#allocation14 + $0x34] ss:$8 sps:$4 sm:$0xff]   ;;  %v6952_v32 = vld [vmem:[#allocation14 + $0x164] ss:$8 sps:$4 sm:$0xff]  }
 0x39e   : > { %4382 = vmatpush1.bf16.msra.mxu0 %v6821_v1  ;;  %4425 = vmatpush1.bf16.msra.mxu1 %v6824_v47  ;;  %v6955_v1 = vld [vmem:[#allocation14 + $0x154] ss:$8 sps:$4 sm:$0xff]   ;;  %v6916_v47 = vld [vmem:[#allocation14 + $0x24] ss:$8 sps:$4 sm:$0xff]  }
 0x39f   : > { %4383 = vmatprep.subr.bf16.mxu0 %v6829_v35  ;;  %4426 = vmatprep.subr.bf16.mxu1 %v6832_v2  ;;  %v6953_v35 = vld [vmem:[#allocation14 + $0x150] ss:$8 sps:$4 sm:$0xff]   ;;  %v6914_v2 = vld [vmem:[#allocation14 + $0x20] ss:$8 sps:$4 sm:$0xff]  }
 0x3a2   : > { %4384 = vmatpush1.bf16.msra.mxu0 %v6827_v41  ;;  %4427 = vmatpush1.bf16.msra.mxu1 %v6830_v40  ;;  %v6958_v41 = vld [vmem:[#allocation14 + $0x144] ss:$8 sps:$4 sm:$0xff]   ;;  %v6919_v40 = vld [vmem:[#allocation14 + $0x14] ss:$8 sps:$4 sm:$0xff]  }
 0x3a3   : > { %4385 = vmatprep.subr.bf16.mxu0 %v6835_v3  ;;  %4428 = vmatprep.subr.bf16.mxu1 %v6838_v4  ;;  %v6956_v3 = vld [vmem:[#allocation14 + $0x140] ss:$8 sps:$4 sm:$0xff]   ;;  %v6917_v4 = vld [vmem:[#allocation14 + $0x10] ss:$8 sps:$4 sm:$0xff]  }
 0x3a6   : > { %4386 = vmatpush1.bf16.msra.mxu0 %v6833_v5  ;;  %4429 = vmatpush1.bf16.msra.mxu1 %v6836_v6  ;;  %v6961_v5 = vld [vmem:[#allocation14 + $0x134] ss:$8 sps:$4 sm:$0xff]   ;;  %v7926_v6 = vpop.f32.mrf.mxu0 }
 0x3a7   : > { %4387 = vmatprep.subr.bf16.mxu0 %v6841_v7  ;;  %4430 = vmatprep.subr.bf16.mxu1 %v6844_v8  ;;  %v6922_v7 = vld [vmem:[#allocation14 + $0x4] ss:$8 sps:$4 sm:$0xff]   ;;  %v6959_v8 = vld [vmem:[#allocation14 + $0x130] ss:$8 sps:$4 sm:$0xff]  }
 0x3aa   : > { %4388 = vmatpush1.bf16.msra.mxu0 %v6839_v9  ;;  %4431 = vmatpush1.bf16.msra.mxu1 %v6842_v10  ;;  %v6920_v9 = vld [vmem:[#allocation14] ss:$8 sps:$4 sm:$0xff]   ;;  %v6964_v10 = vld [vmem:[#allocation14 + $0x124] ss:$8 sps:$4 sm:$0xff]  }
 0x3ab   : > { %4389 = vmatprep.subr.bf16.mxu0 %v6847_v19  ;;  %4432 = vmatprep.subr.bf16.mxu1 %v6850_v11  ;;  %v7928_v19 = vpop.f32.mrf.mxu0  ;;  %v6925_v11 = vld [vmem:[#allocation14 + $0xf4] ss:$8 sps:$4 sm:$0xff]  }
 0x3ae   : > { %4390 = vmatpush1.bf16.msra.mxu0 %v6845_v12  ;;  %4433 = vmatpush1.bf16.msra.mxu1 %v6848_v13  ;;  %v7930_v12 = vpop.f32.mrf.mxu1  ;;  %v6962_v13 = vld [vmem:[#allocation14 + $0x120] ss:$8 sps:$4 sm:$0xff]  }
 0x3af   : > { %4391 = vmatprep.subr.bf16.mxu0 %v6853_v16  ;;  %4434 = vmatprep.subr.bf16.mxu1 %v6856_v17  ;;  %v6923_v16 = vld [vmem:[#allocation14 + $0xf0] ss:$8 sps:$4 sm:$0xff]   ;;  %v6967_v17 = vld [vmem:[#allocation14 + $0x114] ss:$8 sps:$4 sm:$0xff]  }
 0x3b2   : > { %4392 = vmatpush2.bf16.msra.mxu0 %v6851_v18  ;;  %4435 = vmatpush2.bf16.msra.mxu1 %v6854_v20  ;;  %v7932_v18 = vpop.f32.mrf.mxu0  ;;  %v6928_v20 = vld [vmem:[#allocation14 + $0xe4] ss:$8 sps:$4 sm:$0xff]  }
 0x3b3   : > { %4393 = vmatprep.subr.bf16.mxu0 %v6859_v21  ;;  %4436 = vmatprep.subr.bf16.mxu1 %v6862_v22  ;;  %v7934_v21 = vpop.f32.mrf.mxu1  ;;  %v6965_v22 = vld [vmem:[#allocation14 + $0x110] ss:$8 sps:$4 sm:$0xff]  }
 0x3b6   : > { %4394 = vmatpush2.bf16.msra.mxu0 %v6857_v23  ;;  %4437 = vmatpush2.bf16.msra.mxu1 %v6860_v24  ;;  %v6926_v23 = vld [vmem:[#allocation14 + $0xe0] ss:$8 sps:$4 sm:$0xff]   ;;  %v6970_v24 = vld [vmem:[#allocation14 + $0x104] ss:$8 sps:$4 sm:$0xff]  }
 0x3b7   : > { %4395 = vmatprep.subr.bf16.mxu0 %v6865_v25  ;;  %4438 = vmatprep.subr.bf16.mxu1 %v6868_v26  ;;  %v7936_v25 = vpop.f32.mrf.mxu0  ;;  %v6931_v26 = vld [vmem:[#allocation14 + $0xd4] ss:$8 sps:$4 sm:$0xff]  }
 0x3ba   : > { %4396 = vmatpush2.bf16.msra.mxu0 %v6863_v27  ;;  %4439 = vmatpush2.bf16.msra.mxu1 %v6866_v28  ;;  %v7938_v27 = vpop.f32.mrf.mxu1  ;;  %v4065_v28 = vpop.f32.mrf.mxu0 }
 0x3bb   : > { %4397 = vmatprep.subr.bf16.mxu0 %v6871_v29  ;;  %4440 = vmatprep.subr.bf16.mxu1 %v6874_v30  ;;  %v6968_v29 = vld [vmem:[#allocation14 + $0x100] ss:$8 sps:$4 sm:$0xff]   ;;  %v6929_v30 = vld [vmem:[#allocation14 + $0xd0] ss:$8 sps:$4 sm:$0xff]  }
 0x3be   : > { %4398 = vmatpush2.bf16.msra.mxu0 %v6869_v31  ;;  %4441 = vmatpush2.bf16.msra.mxu1 %v6872_v34  ;;  %v6973_v31 = vld [vmem:[#allocation14 + $0x1f4] ss:$8 sps:$4 sm:$0xff]   ;;  %v6934_v34 = vld [vmem:[#allocation14 + $0xc4] ss:$8 sps:$4 sm:$0xff]  }
 0x3bf   : > { %4399 = vmatprep.subr.bf16.mxu0 %v6877_v36  ;;  %4442 = vmatprep.subr.bf16.mxu1 %v6880_v37  ;;  %v7940_v36 = vpop.f32.mrf.mxu1  ;;  %v4067_v37 = vpop.f32.mrf.mxu0 }
 0x3c2   : > { %4400 = vmatpush2.bf16.msra.mxu0 %v6875_v38  ;;  %4443 = vmatpush2.bf16.msra.mxu1 %v6878_v39  ;;  %v6971_v38 = vld [vmem:[#allocation14 + $0x1f0] ss:$8 sps:$4 sm:$0xff]   ;;  %v6932_v39 = vld [vmem:[#allocation14 + $0xc0] ss:$8 sps:$4 sm:$0xff]  }
 0x3c3   : > { %4401 = vmatprep.subr.bf16.mxu0 %v6883_v42  ;;  %4444 = vmatprep.subr.bf16.mxu1 %v6886_v43  ;;  %v6976_v42 = vld [vmem:[#allocation14 + $0x1e4] ss:$8 sps:$4 sm:$0xff]   ;;  %v4108_v43 = vpop.f32.mrf.mxu1 }
 0x3c6   : > { %4402 = vmatpush2.bf16.msra.mxu0 %v6881_v45  ;;  %4445 = vmatpush2.bf16.msra.mxu1 %v6884_v46  ;;  %v6937_v45 = vld [vmem:[#allocation14 + $0xb4] ss:$8 sps:$4 sm:$0xff]   ;;  %v4069_v46 = vpop.f32.mrf.mxu0 }
 0x3c7   : > { %4403 = vmatprep.subr.bf16.mxu0 %v6889_v48  ;;  %4446 = vmatprep.subr.bf16.mxu1 %v6892_v49  ;;  %v6974_v48 = vld [vmem:[#allocation14 + $0x1e0] ss:$8 sps:$4 sm:$0xff]   ;;  %v6935_v49 = vld [vmem:[#allocation14 + $0xb0] ss:$8 sps:$4 sm:$0xff]  }
 0x3ca   : > { %4404 = vmatpush2.bf16.msra.mxu0 %v6887_v51  ;;  %4447 = vmatpush2.bf16.msra.mxu1 %v6890_v58  ;;  %v6979_v51 = vld [vmem:[#allocation14 + $0x1d4] ss:$8 sps:$4 sm:$0xff]   ;;  %v4110_v58 = vpop.f32.mrf.mxu1 }
 0x3cb   : > { %4405 = vmatprep.subr.bf16.mxu0 %v6895_v52  ;;  %4448 = vmatprep.subr.bf16.mxu1 %v6898_v53  ;;  %v6940_v52 = vld [vmem:[#allocation14 + $0xa4] ss:$8 sps:$4 sm:$0xff]   ;;  %v4071_v53 = vpop.f32.mrf.mxu0 }
 0x3ce   : > { %4406 = vmatpush2.bf16.msra.mxu0 %v6893_v54  ;;  %4449 = vmatpush2.bf16.msra.mxu1 %v6896_v55  ;;  %v6977_v54 = vld [vmem:[#allocation14 + $0x1d0] ss:$8 sps:$4 sm:$0xff]   ;;  %v6938_v55 = vld [vmem:[#allocation14 + $0xa0] ss:$8 sps:$4 sm:$0xff]  }
 0x3cf   : > { %4899 = vmatprep.subr.bf16.mxu0 %v6901_v44  ;;  %4942 = vmatprep.subr.bf16.mxu1 %v6949_v0  ;;  %v6982_v44 = vld [vmem:[#allocation14 + $0x1c4] ss:$8 sps:$4 sm:$0xff]   ;;  %v4068_v0 = vadd.f32 %v4067_v37, %v7928_v19 }
 0x3d0   : > { %v6988_v37 = vld [vmem:[#allocation14 + $0x1a4] ss:$8 sps:$4 sm:$0xff]  }
 0x3d1   : > { %4408 = vmatmul.mubr.bf16.vlgmr.msra.gmra.mxu0 %v7906_v33  ;;  %4451 = vmatmul.mubr.bf16.vlgmr.msra.gmra.mxu1 %v7914_v50  ;;  %v6950_v33 = vld [vmem:[#allocation14 + $0x160] ss:$8 sps:$4 sm:$0xff]   ;;  %v6911_v50 = vld [vmem:[#allocation14 + $0x30] ss:$8 sps:$4 sm:$0xff]  }
 0x3d2   : > { %4900 = vmatpush1.bf16.msra.mxu0 %v6899_v56  ;;  %4943 = vmatpush1.bf16.msra.mxu1 %v6947_v63  ;;  %v4112_v56 = vpop.f32.mrf.mxu1  ;;  %v6946_v63 = vld [vmem:[#allocation14 + $0x84] ss:$8 sps:$4 sm:$0xff]  }
 0x3d3   : > { %4901 = vmatprep.subr.bf16.mxu0 %v6904_v57  ;;  %4944 = vmatprep.subr.bf16.mxu1 %v6952_v32  ;;  %v4151_v57 = vpop.f32.mrf.mxu0 }
 0x3d6   : > { %4902 = vmatpush1.bf16.msra.mxu0 %v6902_v59  ;;  %4945 = vmatpush1.bf16.msra.mxu1 %v6950_v33  ;;  %v6943_v59 = vld [vmem:[#allocation14 + $0x94] ss:$8 sps:$4 sm:$0xff]   ;;  %v4463_v33 = vlaneseq }
 0x3d7   : > { %4903 = vmatprep.subr.bf16.mxu0 %v6907_v60  ;;  %4946 = vmatprep.subr.bf16.mxu1 %v6955_v1  ;;  %v6980_v60 = vld [vmem:[#allocation14 + $0x1c0] ss:$8 sps:$4 sm:$0xff]  }
 0x3d8   : > { %v6944_v1 = vld [vmem:[#allocation14 + $0x80] ss:$8 sps:$4 sm:$0xff]  }
 0x3da   : > { %4904 = vmatpush1.bf16.msra.mxu0 %v6905_v14  ;;  %4947 = vmatpush1.bf16.msra.mxu1 %v6953_v35  ;;  %v6941_v14 = vld [vmem:[#allocation14 + $0x90] ss:$8 sps:$4 sm:$0xff]   ;;  %v4111_v35 = vadd.f32 %v4110_v58, %v4068_v0 }
 0x3db   : > { %4905 = vmatprep.subr.bf16.mxu0 %v6910_v61  ;;  %4948 = vmatprep.subr.bf16.mxu1 %v6958_v41  ;;  %v4114_v61 = vpop.f32.mrf.mxu1  ;;  %v6999_v0 = vld [vmem:[#allocation17 + $0x68] sm:$0xff]  }
 0x3dd   : > { %v4194_v32 = vpop.f32.mrf.mxu1 }
 0x3de   : > { %4906 = vmatpush1.bf16.msra.mxu0 %v6908_v62  ;;  %4949 = vmatpush1.bf16.msra.mxu1 %v6956_v3  ;;  %v4153_v62 = vpop.f32.mrf.mxu0  ;;  %v7946_v3 = vshrl.u32 %v4463_v33, 7  ;;  %v7002_v33 = vld [vmem:[#allocation17 + $0x20] sm:$0xff]  }
 0x3df   : > { %4907 = vmatprep.subr.bf16.mxu0 %v6913_v15  ;;  %4950 = vmatprep.subr.bf16.mxu1 %v6961_v5  ;;  %v4066_v15 = vadd.f32 %v4065_v28, %v7926_v6  ;;  %v4154_v5 = vadd.f32 %v4153_v62, %v4111_v35  ;;  %v6997_v62 = vld [vmem:[#allocation17 + $0x70] sm:$0xff]  }
 0x3e1   : > { %v4109_v41 = vadd.f32 %v4108_v43, %v4066_v15  ;;  %v7000_v15 = vld [vmem:[#allocation17 + $0x28] sm:$0xff]  }
 0x3e2   : > { %4908 = vmatpush1.bf16.msra.mxu0 %v6911_v50  ;;  %4951 = vmatpush1.bf16.msra.mxu1 %v6959_v8  ;;  %v4070_v50 = vadd.f32 %v4069_v46, %v7932_v18 }
 0x3e3   : > { %4909 = vmatprep.subr.bf16.mxu0 %v6916_v47  ;;  %4952 = vmatprep.subr.bf16.mxu1 %v6964_v10  ;;  %v4155_v47 = vpop.f32.mrf.mxu0  ;;  %v4152_v6 = vadd.f32 %v4151_v57, %v4109_v41  ;;  %v4469_v10 = vsub.s32 1, %v7946_v3 }
 0x3e6   : > { %4910 = vmatpush1.bf16.msra.mxu0 %v6914_v2  ;;  %4953 = vmatpush1.bf16.msra.mxu1 %v6962_v13  ;;  %v4072_v2 = vadd.f32 %v4071_v53, %v7936_v25  ;;  %v4465_v13 = vsub.s32 0, %v7946_v3 }
 0x3e7   : > { %4911 = vmatprep.subr.bf16.mxu0 %v6919_v40  ;;  %4954 = vmatprep.subr.bf16.mxu1 %v6967_v17  ;;  %v4196_v40 = vpop.f32.mrf.mxu1 }
 0x3e8   : > { %v4115_v8 = vadd.f32 %v4114_v61, %v4072_v2  ;;  %v4197_v17 = vadd.f32 %v4196_v40, %v4154_v5  ;;  %v6996_v61 = vld [vmem:[#allocation17 + $0x38] sm:$0xff]  }
 0x3e9   : > { %v4198_v19 = vpop.f32.mrf.mxu1 }
 0x3ea   : > { %4912 = vmatpush1.bf16.msra.mxu0 %v6917_v4  ;;  %4955 = vmatpush1.bf16.msra.mxu1 %v6965_v22  ;;  %v4113_v4 = vadd.f32 %v4112_v56, %v4070_v50  ;;  %v6983_v22 = vld [vmem:[#allocation14 + $0x1b0] ss:$8 sps:$4 sm:$0xff]   ;;  %v6994_v56 = vld [vmem:[#allocation14 + $0x184] ss:$8 sps:$4 sm:$0xff]  }
 0x3eb   : > { %4913 = vmatprep.subr.bf16.mxu0 %v6922_v7  ;;  %4956 = vmatprep.subr.bf16.mxu1 %v6970_v24  ;;  %v4157_v7 = vpop.f32.mrf.mxu0  ;;  %v7003_v50 = vld [vmem:[#allocation17 + $0x58] sm:$0xff]  }
 0x3ec   : > { %v4158_v18 = vadd.f32 %v4157_v7, %v4115_v8 }
 0x3ee   : > { %4914 = vmatpush1.bf16.msra.mxu0 %v6920_v9  ;;  %4957 = vmatpush1.bf16.msra.mxu1 %v6968_v29  ;;  %v4156_v9 = vadd.f32 %v4155_v47, %v4113_v4  ;;  %v4200_v29 = vpop.f32.mrf.mxu1  ;;  %v7004_v47 = vld [vmem:[#allocation17 + $0x18] sm:$0xff]  }
 0x3ef   : > { %4915 = vmatprep.subr.bf16.mxu0 %v6925_v11  ;;  %4958 = vmatprep.subr.bf16.mxu1 %v6973_v31 }
 0x3f0   : > { %v4199_v25 = vadd.f32 %v4198_v19, %v4156_v9 }
 0x3f2   : > { %4916 = vmatpush2.bf16.msra.mxu0 %v6923_v16  ;;  %4959 = vmatpush2.bf16.msra.mxu1 %v6971_v38  ;;  %v6985_v16 = vld [vmem:[#allocation14 + $0x1b4] ss:$8 sps:$4 sm:$0xff]   ;;  %v4201_v38 = vadd.f32 %v4200_v29, %v4158_v18 }
 0x3f3   : > { %4917 = vmatprep.subr.bf16.mxu0 %v6928_v20  ;;  %4960 = vmatprep.subr.bf16.mxu1 %v6976_v42  ;;  %v7950_v20 = vld [vmem:[#allocation12] sm:$0xf]  ;;  %v6986_v42 = vld [vmem:[#allocation14 + $0x1a0] ss:$8 sps:$4 sm:$0xff]  }
 0x3f4   : > { %v4470_v28 = vrot.slane %v7950_v20, %v4469_v10  ;;  %v4466_v31 = vrot.slane %v7950_v20, %v4465_v13 }
 0x3f6   : > { %4918 = vmatpush2.bf16.msra.mxu0 %v6926_v23  ;;  %4961 = vmatpush2.bf16.msra.mxu1 %v6974_v48  ;;  %v4195_v23 = vadd.f32 %v4194_v32, %v4152_v6  ;;  %v7001_v32 = vld [vmem:[#allocation17 + $0x60] sm:$0xff]  }
 0x3f7   : > { %4919 = vmatprep.subr.bf16.mxu0 %v6931_v26  ;;  %4962 = vmatprep.subr.bf16.mxu1 %v6979_v51  ;;  %v6991_v51 = vld [vmem:[#allocation14 + $0x194] ss:$8 sps:$4 sm:$0xff]  }
 0x3fa   : > { %4920 = vmatpush2.bf16.msra.mxu0 %v6929_v30  ;;  %4963 = vmatpush2.bf16.msra.mxu1 %v6977_v54 }
 0x3fb   : > { %4921 = vmatprep.subr.bf16.mxu0 %v6934_v34  ;;  %4964 = vmatprep.subr.bf16.mxu1 %v6982_v44 }
 0x3fe   : > { %4922 = vmatpush2.bf16.msra.mxu0 %v6932_v39  ;;  %4965 = vmatpush2.bf16.msra.mxu1 %v6980_v60 }
 0x3ff   : > { %4923 = vmatprep.subr.bf16.mxu0 %v6937_v45  ;;  %4966 = vmatprep.subr.bf16.mxu1 %v6985_v16 }
 0x402   : > { %4924 = vmatpush2.bf16.msra.mxu0 %v6935_v49  ;;  %4967 = vmatpush2.bf16.msra.mxu1 %v6983_v22 }
 0x403   : > { %4925 = vmatprep.subr.bf16.mxu0 %v6940_v52  ;;  %4968 = vmatprep.subr.bf16.mxu1 %v6988_v37  ;;  %v6989_v52 = vld [vmem:[#allocation14 + $0x190] ss:$8 sps:$4 sm:$0xff]  }
 0x406   : > { %4926 = vmatpush2.bf16.msra.mxu0 %v6938_v55  ;;  %4969 = vmatpush2.bf16.msra.mxu1 %v6986_v42 }
 0x407   : > { %4927 = vmatprep.subr.bf16.mxu0 %v6943_v59  ;;  %4970 = vmatprep.subr.bf16.mxu1 %v6991_v51  ;;  %v6992_v59 = vld [vmem:[#allocation14 + $0x180] ss:$8 sps:$4 sm:$0xff]  }
 0x40a   : > { %4928 = vmatpush2.bf16.msra.mxu0 %v6941_v14  ;;  %4971 = vmatpush2.bf16.msra.mxu1 %v6989_v52  ;;  %v6995_v14 = vld [vmem:[#allocation17 + $0x78] sm:$0xff]  }
 0x40b   : > { %4929 = vmatprep.subr.bf16.mxu0 %v6946_v63  ;;  %4972 = vmatprep.subr.bf16.mxu1 %v6994_v56  ;;  %v6998_v63 = vld [vmem:[#allocation17 + $0x30] sm:$0xff]  }
 0x40e   : > { %4930 = vmatpush2.bf16.msra.mxu0 %v6944_v1  ;;  %4973 = vmatpush2.bf16.msra.mxu1 %v6992_v59 }
 0x40f   : > { %5957 = vmatprep.subr.bf16.mxu0 %v6995_v14 }
 0x411   : > { %v4237_v11 = vpop.f32.mrf.mxu0  ;;  %v4280_v1 = vpop.f32.mrf.mxu1 }
 0x412   : > { %v4238_v30 = vadd.f32 %v4237_v11, %v4195_v23  ;;  %v4281_v7 = vadd.f32 %v4280_v1, %v7930_v12  ;;  %v4477_v12 = vsub.s32 3, %v7946_v3 }
 0x413   : > { %v4239_v24 = vpop.f32.mrf.mxu0  ;;  %v4282_v35 = vpop.f32.mrf.mxu1 }
 0x414   : > { %v4240_v26 = vadd.f32 %v4239_v24, %v4197_v17  ;;  %v4483_v49 = vadd.f32 %v4466_v31, %v4238_v30  ;;  %v4283_v19 = vadd.f32 %v4282_v35, %v7934_v21  ;;  %v4567_v35 = vld [vmem:[#allocation15] sm:$0x3] }
 0x415   : > { %v4241_v34 = vpop.f32.mrf.mxu0  ;;  %v4284_v2 = vpop.f32.mrf.mxu1 }
 0x416   : > { %v4242_v39 = vadd.f32 %v4241_v34, %v4199_v25  ;;  %v4484_v45 = vadd.f32 %v4470_v28, %v4240_v26  ;;  %v4491_v44 = vmax.f32 %v4483_v49, 0.0  ;;  %v4285_v16 = vadd.f32 %v4284_v2, %v7938_v27 }
 0x417   : > { %v4243_v43 = vpop.f32.mrf.mxu0  ;;  %v4286_v41 = vpop.f32.mrf.mxu1  ;;  %v4473_v34 = vsub.s32 2, %v7946_v3 }
 0x418   : > { %v4487_v46 = vadd.f32 %v4466_v31, %v4242_v39  ;;  %v4244_v48 = vadd.f32 %v4243_v43, %v4201_v38  ;;  %v4492_v54 = vmax.f32 %v4484_v45, 0.0  ;;  %v4287_v23 = vadd.f32 %v4286_v41, %v7940_v36 }
 0x419   : > { %v4478_v36 = vrot.slane %v7950_v20, %v4477_v12  ;;  %v4474_v49 = vrot.slane %v7950_v20, %v4473_v34  ;;  %v7007_v20 = vld [vmem:[#allocation17 + $0x48] sm:$0xff]   ;;  %v4576_v41 = vrot.slane %v4567_v35, %v4469_v10 }
 0x41a   : > { %v4488_v58 = vadd.f32 %v4470_v28, %v4244_v48  ;;  %v4495_v53 = vmax.f32 %v4487_v46, 0.0 }
 0x41c   : > { %v4496_v55 = vmax.f32 %v4488_v58, 0.0  ;;  %v4499_v60 = vpack.c.bf16 %v4495_v53, %v4491_v44 }
 0x41e   : > { %v4500_v57 = vpack.c.bf16 %v4496_v55, %v4492_v54 }
 0x420   : > { %4931 = vmatprep.mubr.bf16.mxu0 %v4500_v57 }
 0x421   : > { %4932 = vmatmul.mubr.bf16.vlgmr.msra.gmra.mxu0 %v4499_v60 }
 0x422   : > { %5958 = vmatpush3.bf16.msra.mxu0 %v6996_v61 }
 0x423   : > { %5959 = vmatprep.subr.bf16.mxu0 %v6997_v62 }
 0x426   : > { %5960 = vmatpush3.bf16.msra.mxu0 %v6998_v63 }
 0x427   : > { %5961 = vmatprep.subr.bf16.mxu0 %v6999_v0  ;;  %v7005_v0 = vld [vmem:[#allocation17 + $0x50] sm:$0xff]  }
 0x42a   : > { %5962 = vmatpush3.bf16.msra.mxu0 %v7000_v15  ;;  %v7006_v15 = vld [vmem:[#allocation17 + $0x10] sm:$0xff]  }
 0x42b   : > { %5963 = vmatprep.subr.bf16.mxu0 %v7001_v32  ;;  %v7008_v32 = vld [vmem:[#allocation17 + $0x8] sm:$0xff]  }
 0x42e   : > { %5964 = vmatpush3.bf16.msra.mxu0 %v7002_v33  ;;  %v7009_v33 = vld [vmem:[#allocation17 + $0x40] sm:$0xff]  }
 0x42f   : > { %5965 = vmatprep.subr.bf16.mxu0 %v7003_v50  ;;  %v7010_v50 = vld [vmem:[#allocation17] sm:$0xff]  }
 0x432   : > { %5966 = vmatpush3.bf16.msra.mxu0 %v7004_v47 }
 0x433   : > { %5967 = vmatprep.subr.bf16.mxu0 %v7005_v0 }
 0x436   : > { %5968 = vmatpush3.bf16.msra.mxu0 %v7006_v15 }
 0x437   : > { %5969 = vmatprep.subr.bf16.mxu0 %v7007_v20 }
 0x43a   : > { %5970 = vmatpush3.bf16.msra.mxu0 %v7008_v32 }
 0x43b   : > { %5971 = vmatprep.subr.bf16.mxu0 %v7009_v33 }
 0x43e   : > { %5972 = vmatpush3.bf16.msra.mxu0 %v7010_v50 }
 0x451   : > { %v4323_v40 = vpop.f32.mrf.mxu0  ;;  %v4366_v4 = vpop.f32.mrf.mxu1 }
 0x452   : > { %v4324_v11 = vadd.f32 %v4323_v40, %v4281_v7  ;;  %v4572_v40 = vrot.slane %v4567_v35, %v4465_v13 }
 0x453   : > { %v4325_v5 = vpop.f32.mrf.mxu0  ;;  %v4368_v6 = vpop.f32.mrf.mxu1 }
 0x454   : > { %v4326_v17 = vadd.f32 %v4325_v5, %v4283_v19  ;;  %v4367_v25 = vadd.f32 %v4366_v4, %v4324_v11 }
 0x455   : > { %v4327_v8 = vpop.f32.mrf.mxu0  ;;  %v4370_v9 = vpop.f32.mrf.mxu1 }
 0x456   : > { %v4328_v24 = vadd.f32 %v4327_v8, %v4285_v16  ;;  %v4369_v29 = vadd.f32 %v4368_v6, %v4326_v17 }
 0x457   : > { %v4329_v18 = vpop.f32.mrf.mxu0  ;;  %v4372_v22 = vpop.f32.mrf.mxu1 }
 0x458   : > { %v4330_v30 = vadd.f32 %v4329_v18, %v4287_v23  ;;  %v4371_v38 = vadd.f32 %v4370_v9, %v4328_v24 }
 0x45a   : > { %v4373_v43 = vadd.f32 %v4372_v22, %v4330_v30 }
 0x491   : > { %v4409_v26 = vpop.f32.mrf.mxu0  ;;  %v4452_v28 = vpop.f32.mrf.mxu1 }
 0x492   : > { %v4410_v31 = vadd.f32 %v4409_v26, %v4367_v25 }
 0x493   : > { %v4411_v21 = vpop.f32.mrf.mxu0  ;;  %v4454_v37 = vpop.f32.mrf.mxu1 }
 0x494   : > { %v4412_v27 = vadd.f32 %v4411_v21, %v4369_v29  ;;  %v4453_v48 = vadd.f32 %v4452_v28, %v4410_v31  ;;  %v5935_v29 = vld [vmem:[#allocation18] ss:$0 sm:$0xff] }
 0x495   : > { %v4413_v39 = vpop.f32.mrf.mxu0  ;;  %v4456_v42 = vpop.f32.mrf.mxu1 }
 0x496   : > { %v4455_v45 = vadd.f32 %v4454_v37, %v4412_v27  ;;  %v4414_v46 = vadd.f32 %v4413_v39, %v4371_v38  ;;  %v4485_v56 = vadd.f32 %v4474_v49, %v4453_v48 }
 0x497   : > { %v4415_v51 = vpop.f32.mrf.mxu0  ;;  %v4458_v53 = vpop.f32.mrf.mxu1 }
 0x498   : > { %v4457_v58 = vadd.f32 %v4456_v42, %v4414_v46  ;;  %v4416_v52 = vadd.f32 %v4415_v51, %v4373_v43  ;;  %v4486_v54 = vadd.f32 %v4478_v36, %v4455_v45  ;;  %v4493_v61 = vmax.f32 %v4485_v56, 0.0 }
 0x49a   : > { %v4489_v55 = vadd.f32 %v4474_v49, %v4457_v58  ;;  %v4459_v44 = vadd.f32 %v4458_v53, %v4416_v52  ;;  %v4494_v60 = vmax.f32 %v4486_v54, 0.0 }
 0x49c   : > { %v4490_v57 = vadd.f32 %v4478_v36, %v4459_v44  ;;  %v4497_v59 = vmax.f32 %v4489_v55, 0.0 }
 0x49e   : > { %v4498_v14 = vmax.f32 %v4490_v57, 0.0  ;;  %v4501_v63 = vpack.c.bf16 %v4497_v59, %v4493_v61 }
 0x4a0   : > { %v4502_v62 = vpack.c.bf16 %v4498_v14, %v4494_v60 }
 0x4a2   : > { %4974 = vmatprep.mubr.bf16.mxu1 %v4502_v62 }
 0x4a3   : > { %4975 = vmatmul.mubr.bf16.vlgmr.msra.gmra.mxu1 %v4501_v63 }
 0x4e1   : > { %v4933_v1 = vpop.f32.mrf.mxu0 }
 0x4e2   : > { %v4934_v9 = vadd.f32 %v4933_v1, %v4572_v40 }
 0x4e3   : > { %v4935_v47 = vpop.f32.mrf.mxu0 }
 0x4e4   : > { %v4936_v7 = vadd.f32 %v4935_v47, %v4576_v41 }
 0x4e5   : > { %v4937_v2 = vpop.f32.mrf.mxu0 }
 0x4e6   : > { %v4938_v8 = vadd.f32 %v4937_v2, %v4572_v40 }
 0x4e7   : > { %v4939_v5 = vpop.f32.mrf.mxu0 }
 0x4e8   : > { %v4940_v11 = vadd.f32 %v4939_v5, %v4576_v41 }
 0x563   : > { %v4976_v4 = vpop.f32.mrf.mxu1 }
 0x564   : > { %v4977_v18 = vadd.f32 %v4976_v4, %v4934_v9 }
 0x565   : > { %v4978_v6 = vpop.f32.mrf.mxu1 }
 0x566   : > { %v4979_v16 = vadd.f32 %v4978_v6, %v4936_v7  ;;  %v4985_v10 = vmax.f32 %v4977_v18, 0.0 }
 0x567   : > { %v4980_v19 = vpop.f32.mrf.mxu1 }
 0x568   : > { %v4981_v17 = vadd.f32 %v4980_v19, %v4938_v8  ;;  %v4986_v25 = vmax.f32 %v4979_v16, 0.0 }
 0x569   : > { %v4982_v22 = vpop.f32.mrf.mxu1 }
 0x56a   : > { %v4983_v23 = vadd.f32 %v4982_v22, %v4940_v11  ;;  %v4987_v24 = vmax.f32 %v4981_v17, 0.0 }
 0x56c   : > { %v4988_v26 = vmax.f32 %v4983_v23, 0.0  ;;  %v4989_v3 = vpack.c.bf16 %v4987_v24, %v4985_v10 }
 0x56e   : > { %v4990_v28 = vpack.c.bf16 %v4988_v26, %v4986_v25 }
 0x570   : > { %5158 = vmatprep.mubr.bf16.mxu0 %v4990_v28 }
 0x571   : > { %5159 = vmatmul.mubr.bf16.vlgmr.msra.gmra.mxu0 %v4989_v3 }
 0x631   : > { %v5973_v13 = vpop.f32.mrf.mxu0 }
 0x633   : > { %v5974_v30 = vpop.f32.mrf.mxu0 }
 0x634   : > { %v5975_v12 = vadd.f32 %v5974_v30, %v5973_v13 }
 0x635   : > { %v5976_v31 = vpop.f32.mrf.mxu0 }
 0x636   : > { %v5161_v34 = vadd.f32 %v5975_v12, %v5935_v29 }
 0x637   : > { %v5977_v21 = vpop.f32.mrf.mxu0 }
 0x638   : > { %5167 = vst [vmem:[#allocation20] sm:$0xff] %v5161_v34  ;;  %v5978_v37 = vadd.f32 %v5977_v21, %v5976_v31 }
 0x63a   : > { %v5164_v38 = vadd.f32 %v5978_v37, %v5935_v29 }
 0x63c   : > { %5168 = vst [vmem:[#allocation20 + $0x8] sm:$0xff] %v5164_v38 }
 0x63d PF: > { %p6071_p11 = scmp.eq.s32.totalorder %s7463_s19, 2  ;;  %s7384_s5 = smov [#allocation20]  }
 0x63e   : > { %s5175_s20 = sshll.u32 %s7384_s5, 4  ;;  %s5176_s20 = int_to_ptr.vmem [resolvable:$true] %s5175_s20 }
 0x63f   : > { %s7275_s22 = scalar_lea.vmem %s5176_s20, 256  ;;  %p7282_p12 = scmp.lt.s32.totalorder %s5176_s20, %s5176_s20 }
 0x640   : > { %p7276_p4 = scmp.ne.s32.totalorder %s5176_s20, %s7275_s22  ;;  %p7283_p13 = scmp.lt.s32.totalorder %s7275_s22, %s7275_s22 }
 0x642   : > { %p7277_p6 = pnand %p7276_p4, %p6071_p11  ;;  %p7284_p0 = por %p7283_p13, %p7282_p12 }
 0x644   : > { %p7278_p10 = pneg %p7277_p6 }
 0x646   : > { %p7285_p2 = pnand %p7284_p0, %p7278_p10 }
 0x648   : > { %7288 = shalt.err (!%p7285_p2)
}
 0x649   : > { %s7385_s28 = smov 128   ;;  %s7386_s12 = smov 8  }
 0x64a   : > { %6019 = dma.vmem_to_hbm [thread:$0]  (%p6071_p11), %s5176_s20, 256, %s8005_s10, [#allocation5], %s7385_s28, %s7385_s28, %s7386_s12  }
 0x64b   : > { %7344 = dma.done.wait (%p6071_p11), [#allocation5], 256  }
 0x64c   : > { %7346 = vsyncadd (%p6071_p11), [#allocation5], 4294967040 }
 0x64d PF: > { %p28_p1 = scmp.ge.s32.totalorder %s7569_s26, 5   ;;  %s8046_s13 = smov %s7353_s14 }
 0x64e   : > { %s8047_s14 = smov %s7357_s15  ;;  %s8048_s15 = smov %s7581_s25 }
 0x64f   : > { %s8049_s16 = smov %s7569_s26  ;;  %30 = sbr.rel (!%p28_p1) target bundleno = 17 (0x11), region = 150 }
 0x654   :  { %5191 = vsyncpa [#allocation4], 1 }
 0x655   :  { %5193 = vsyncpa [#allocation4 + $0x1], 1 }
 0x656   :  { %5194 = vsyncpa [#allocation7], 1 }
 0x657   :  { %5196 = vsyncpa [#allocation7 + $0x1], 1 }
 0x658   :  { %5197 = vsyncpa [#allocation10], 1 }
 0x659   :  { %5198 = vsyncpa [#allocation13], 1 }
 0x65a   :  { %5199 = vsyncpa [#allocation16], 1 }
 0x65b   :  { %5200 = vsyncpa [#allocation19], 1 }
 0x65c   :  { %5201 = vsyncpa [#allocation5], 1 }
 0x65d   :  { %5203 = vsyncpa [#allocation5 + $0x1], 1 }

</bundles_post_ra>
